<compile_context>
chip_gen: v7x
topology: tpu7x:2x2x1
jax: 0.10.0
libtpu: 0.0.40
codegen_flags: <defaults>
</compile_context>

<pallas_src>
import jax
import jax.numpy as jnp
from jax import lax
from jax.experimental import pallas as pl
from jax.experimental.pallas import tpu as pltpu

MEAN = jnp.array([0.485, 0.456, 0.406], jnp.float32)
STD = jnp.array([0.229, 0.224, 0.225], jnp.float32)

LAYER_NAME_LIST = ["relu1_1", "relu2_1"]

K1 = 32  # conv1_1 im2col contraction: 3*3*3 = 27 real taps, zero-padded to 32


# ------------------------------- Pallas kernel ------------------------------ #

def _vgg_stage_kernel(pair_ref, w1_ref, b1_ref, w2_ref, b2_ref, w3_ref, b3_ref,
                      r11_ref, r21_ref, e_scr, o_scr, p_scr):
    """Fused conv1_1+relu -> conv1_2+relu+pool1 -> conv2_1+relu for one image.

    pair_ref: (1, H, W/2, 2*K1) bf16  conv1_1 im2col patches; even output column's
                                      patch in lanes [:K1], odd column's in [K1:].
    w1_ref:   (K1, 64) bf16           folded (norm+replicate-pad) conv1_1 weights
    b1_ref:   (1, 64) f32
    w2_ref:   (3, 192, 64) bf16       conv1_2 weights, [kh, kw*64+ci, co]
    b2_ref:   (1, 64) f32
    w3_ref:   (3, 192, 128) bf16      conv2_1 weights, [kh, kw*64+ci, co]
    b3_ref:   (1, 128) f32
    r11_ref:  (1, H, W/2, 128) f32    relu1_1, column pair (2j, 2j+1) packed on lanes
    r21_ref:  (1, H/2, W/2, 128) f32  relu2_1
    e_scr/o_scr: (H+2, W/2+1, 64) bf16  zero-padded even/odd relu1_1 columns
    p_scr:    (H/2+2, W/2+2, 64) bf16   zero-padded pool1 output
    """
    H = r11_ref.shape[1]
    Wh = r11_ref.shape[2]              # W // 2
    H2, W2 = H // 2, Wh                # pool1 output spatial dims

    # ---------------- conv1_1 + relu1_1 (even / odd output columns) ---------------- #
    pair = pair_ref[0]                                   # (H, Wh, 2*K1) bf16
    pe = pair[:, :, :K1].reshape(H * Wh, K1)             # patches of even columns 2j
    po = pair[:, :, K1:].reshape(H * Wh, K1)             # patches of odd columns 2j+1
    w1 = w1_ref[...]
    b1 = b1_ref[...]
    y_e = jnp.maximum(jnp.dot(pe, w1, preferred_element_type=jnp.float32) + b1, 0.0)
    y_o = jnp.maximum(jnp.dot(po, w1, preferred_element_type=jnp.float32) + b1, 0.0)
    e3 = y_e.reshape(H, Wh, 64)                          # relu1_1[:, 2j, :]
    o3 = y_o.reshape(H, Wh, 64)                          # relu1_1[:, 2j+1, :]

    # lane-dense (128-wide) export of relu1_1: channels of column pair (2j, 2j+1)
    r11_ref[0] = jnp.concatenate([e3, o3], axis=-1)

    # -------- conv1_2 + relu + 2x2 maxpool (even/odd column decomposition) -------- #
    # e_scr[r, j] = relu1_1[r-1, 2j]     (zero top/bottom rows, zero column at j = Wh)
    # o_scr[r, j] = relu1_1[r-1, 2j-1]   (zero top/bottom rows, zero column at j = 0)
    # Full re-zero each grid step keeps megacore-split grids safe; at production sizes
    # only the halo border needs re-zeroing.
    e_scr[...] = jnp.zeros(e_scr.shape, e_scr.dtype)
    o_scr[...] = jnp.zeros(o_scr.shape, o_scr.dtype)
    e_scr[1:H + 1, 0:Wh, :] = e3.astype(jnp.bfloat16)
    o_scr[1:H + 1, 1:Wh + 1, :] = o3.astype(jnp.bfloat16)

    acc_e = jnp.zeros((H * Wh, 64), jnp.float32)
    acc_o = jnp.zeros((H * Wh, 64), jnp.float32)
    b2 = b2_ref[...]
    for kh in range(3):                                  # per-kh split: K = 3*64 = 192
        w2k = w2_ref[kh]                                 # (192, 64)
        er = e_scr[kh:kh + H, 0:Wh, :]                   # relu1_1[h+kh-1, 2j]
        erp = e_scr[kh:kh + H, 1:Wh + 1, :]              # relu1_1[h+kh-1, 2j+2]
        om = o_scr[kh:kh + H, 0:Wh, :]                   # relu1_1[h+kh-1, 2j-1]
        orr = o_scr[kh:kh + H, 1:Wh + 1, :]              # relu1_1[h+kh-1, 2j+1]
        # even output col 2j:   taps at padded cols (2j, 2j+1, 2j+2) -> (om, er, orr)
        te = jnp.concatenate([om, er, orr], axis=-1).reshape(H * Wh, 192)
        # odd  output col 2j+1: taps at padded cols (2j+1, 2j+2, 2j+3) -> (er, orr, erp)
        to = jnp.concatenate([er, orr, erp], axis=-1).reshape(H * Wh, 192)
        acc_e += jnp.dot(te, w2k, preferred_element_type=jnp.float32)
        acc_o += jnp.dot(to, w2k, preferred_element_type=jnp.float32)
    be = jnp.maximum(acc_e + b2, 0.0)                    # relu1_2 at even columns
    bo = jnp.maximum(acc_o + b2, 0.0)                    # relu1_2 at odd columns
    # pool1: max over the column pair, then over the row pair (all in registers)
    m = jnp.maximum(be, bo).reshape(H2, 2, Wh, 64)
    pooled = jnp.max(m, axis=1)                          # (H2, W2, 64)

    # ------------------------------- conv2_1 + relu ------------------------------- #
    p_scr[...] = jnp.zeros(p_scr.shape, p_scr.dtype)
    p_scr[1:H2 + 1, 1:W2 + 1, :] = pooled.astype(jnp.bfloat16)
    acc = jnp.zeros((H2 * W2, 128), jnp.float32)
    for kh in range(3):
        t = jnp.concatenate([p_scr[kh:kh + H2, kw:kw + W2, :] for kw in range(3)],
                            axis=-1).reshape(H2 * W2, 192)
        acc += jnp.dot(t, w3_ref[kh], preferred_element_type=jnp.float32)
    r21_ref[0] = jnp.maximum(acc + b3_ref[...], 0.0).reshape(H2, W2, 128)


# --------------------------------- wrappers --------------------------------- #

def fold_normalization_into_conv1_1(w, b):
    """conv1_1(pad_rep((x-mean)/std)) == conv1_1'(pad_rep(x)) with folded w', b'.

    Exact: the module switches conv1_1 to replicate padding, and replicate padding
    commutes with the per-channel affine normalization.
    """
    inv_std = 1.0 / STD
    w_f = w * inv_std[None, None, :, None]
    b_f = b - jnp.einsum("hwio,i->o", w, MEAN * inv_std)
    return w_f, b_f


def _build_conv1_patches(x_nhwc):
    """im2col for conv1_1 on the replicate-padded RGB input, column-pair packed.

    Returns (N, H, W//2, 2*K1) bf16: 27 taps in (kh, kw, ci) order zero-padded to
    K1=32, with adjacent output columns (2j, 2j+1) packed along the lane axis.
    Cheap: only the 3-channel input is touched here (review item 7).
    """
    N, H, W, C = x_nhwc.shape
    xp = jnp.pad(x_nhwc, ((0, 0), (1, 1), (1, 1), (0, 0)), mode="edge")
    cols = [xp[:, kh:kh + H, kw:kw + W, :] for kh in range(3) for kw in range(3)]
    patch = jnp.concatenate(cols, axis=-1)                        # (N, H, W, 27)
    patch = jnp.pad(patch, ((0, 0), (0, 0), (0, 0), (0, K1 - 9 * C)))
    return patch.astype(jnp.bfloat16).reshape(N, H, W // 2, 2 * K1)


def _prep_weights(params):
    w1, b1 = fold_normalization_into_conv1_1(params["conv1_1_w"], params["conv1_1_b"])
    w1f = jnp.zeros((K1, 64), jnp.float32).at[:27].set(w1.reshape(27, 64))
    return (w1f.astype(jnp.bfloat16), b1.reshape(1, 64),
            params["conv1_2_w"].reshape(3, 192, 64).astype(jnp.bfloat16),
            params["conv1_2_b"].reshape(1, 64),
            params["conv2_1_w"].reshape(3, 192, 128).astype(jnp.bfloat16),
            params["conv2_1_b"].reshape(1, 128))


def vgg_forward(x_nchw, params):
    """Pallas implementation of VGG.forward for LAYER_NAME_LIST (NCHW in/out)."""
    x = jnp.transpose(x_nchw, (0, 2, 3, 1))              # NCHW -> NHWC
    N, H, W, C = x.shape
    assert C == 3 and H % 2 == 0 and W % 2 == 0
    Wh, H2, W2 = W // 2, H // 2, W // 2

    pair = _build_conv1_patches(x)
    w1, b1, w2, b2, w3, b3 = _prep_weights(params)

    flops = 2 * N * (H * W * K1 * 64 + H * W * 9 * 64 * 64 + H2 * W2 * 9 * 64 * 128)
    bytes_accessed = (pair.size * 2 + (w1.size + w2.size + w3.size) * 2
                      + (b1.size + b2.size + b3.size) * 4
                      + N * H * W * 64 * 4 + N * H2 * W2 * 128 * 4)

    r11, r21 = pl.pallas_call(
        _vgg_stage_kernel,
        out_shape=(jax.ShapeDtypeStruct((N, H, Wh, 128), jnp.float32),
                   jax.ShapeDtypeStruct((N, H2, W2, 128), jnp.float32)),
        grid=(N,),
        in_specs=[
            pl.BlockSpec((1, H, Wh, 2 * K1), lambda n: (n, 0, 0, 0)),
            pl.BlockSpec((K1, 64), lambda n: (0, 0)),
            pl.BlockSpec((1, 64), lambda n: (0, 0)),
            pl.BlockSpec((3, 192, 64), lambda n: (0, 0, 0)),
            pl.BlockSpec((1, 64), lambda n: (0, 0)),
            pl.BlockSpec((3, 192, 128), lambda n: (0, 0, 0)),
            pl.BlockSpec((1, 128), lambda n: (0, 0)),
        ],
        out_specs=[pl.BlockSpec((1, H, Wh, 128), lambda n: (n, 0, 0, 0)),
                   pl.BlockSpec((1, H2, W2, 128), lambda n: (n, 0, 0, 0))],
        scratch_shapes=[
            pltpu.VMEM((H + 2, Wh + 1, 64), jnp.bfloat16),
            pltpu.VMEM((H + 2, Wh + 1, 64), jnp.bfloat16),
            pltpu.VMEM((H2 + 2, W2 + 2, 64), jnp.bfloat16),
        ],
        compiler_params=pltpu.CompilerParams(
            dimension_semantics=("parallel",)),
        cost_estimate=pl.CostEstimate(flops=flops, transcendentals=0,
                                      bytes_accessed=bytes_accessed),
    )(pair, w1, b1, w2, b2, w3, b3)

    # (N, H, W/2, 128) -> (N, H, W, 64): pure row-major reinterpretation (free).
    relu11 = r11.reshape(N, H, W, 64)
    return {"relu1_1": jnp.transpose(relu11, (0, 3, 1, 2)),
            "relu2_1": jnp.transpose(r21, (0, 3, 1, 2))}


# ------------------------------- parameters --------------------------------- #

def init_params(key):
    ks = jax.random.split(key, 6)

    def w(k, shape):
        fan_in = shape[0] * shape[1] * shape[2]
        return jax.random.normal(k, shape, jnp.float32) / jnp.sqrt(float(fan_in))

    return {
        "conv1_1_w": w(ks[0], (3, 3, 3, 64)),
        "conv1_1_b": jax.random.normal(ks[1], (64,), jnp.float32) * 0.01,
        "conv1_2_w": w(ks[2], (3, 3, 64, 64)),
        "conv1_2_b": jax.random.normal(ks[3], (64,), jnp.float32) * 0.01,
        "conv2_1_w": w(ks[4], (3, 3, 64, 128)),
        "conv2_1_b": jax.random.normal(ks[5], (128,), jnp.float32) * 0.01,
    }


# -------------------------- pure-JAX reference checks ------------------------ #

def _conv_ref(x, w, b, pad_mode, *, bf16_operands):
    xp = jnp.pad(x, ((0, 0), (1, 1), (1, 1), (0, 0)), mode=pad_mode)
    if bf16_operands:
        xp = xp.astype(jnp.bfloat16)
        w = w.astype(jnp.bfloat16)
    y = lax.conv_general_dilated(
        xp, w, (1, 1), "VALID",
        dimension_numbers=("NHWC", "HWIO", "NHWC"),
        preferred_element_type=jnp.float32,
        precision=None if bf16_operands else lax.Precision.HIGHEST)
    return jnp.maximum(y + b, 0.0)


def _pool_ref(x):
    return lax.reduce_window(x, -jnp.inf, lax.max, (1, 2, 2, 1), (1, 2, 2, 1), "VALID")


def vgg_forward_ref(x_nchw, params, *, bf16_operands):
    """XLA reference. bf16_operands=True mirrors the kernel's MXU dtype / fold choice."""
    x = jnp.transpose(x_nchw, (0, 2, 3, 1))
    if bf16_operands:
        w1, b1 = fold_normalization_into_conv1_1(params["conv1_1_w"], params["conv1_1_b"])
        h = _conv_ref(x, w1, b1, "edge", bf16_operands=True)
    else:
        h = (x - MEAN) / STD
        h = _conv_ref(h, params["conv1_1_w"], params["conv1_1_b"], "edge",
                      bf16_operands=False)
    feats = {"relu1_1": h}
    h = _conv_ref(h, params["conv1_2_w"], params["conv1_2_b"], "constant",
                  bf16_operands=bf16_operands)
    h = _pool_ref(h)
    h = _conv_ref(h, params["conv2_1_w"], params["conv2_1_b"], "constant",
                  bf16_operands=bf16_operands)
    feats["relu2_1"] = h
    return {k: jnp.transpose(v, (0, 3, 1, 2)) for k, v in feats.items()}


# ----------------------------------- main ------------------------------------ #

if __name__ == "__main__":
    key = jax.random.PRNGKey(0)
    kx, kp = jax.random.split(key)

    # NCHW input like the PyTorch module (RGB image batch)
    x = jax.random.uniform(kx, (2, 3, 16, 16), jnp.float32)
    params = init_params(kp)

    feats = jax.jit(vgg_forward)(x, params)
    jax.block_until_ready(feats)

    assert feats["relu1_1"].shape == (2, 64, 16, 16)
    assert feats["relu2_1"].shape == (2, 128, 8, 8)
    for v in feats.values():
        assert v.dtype == jnp.float32

    # structural check: reference mirrors the kernel's bf16-operand / folded-norm choices
    ref_bf16 = vgg_forward_ref(x, params, bf16_operands=True)
    # semantic sanity check: faithful f32 module forward (gap explained by bf16 MXU operands)
    ref_f32 = vgg_forward_ref(x, params, bf16_operands=False)
    for k in LAYER_NAME_LIST:
        assert jnp.allclose(feats[k], ref_bf16[k], atol=1e-2, rtol=1e-2), k
        assert jnp.allclose(feats[k], ref_f32[k], atol=1e-1, rtol=1e-1), k

    print("KERNEL_OK")
</pallas_src>

<mosaic_0001>
module attributes {stable_mosaic.version = 11 : i64} {
  func.func @_vgg_stage_kernel(%arg0: i32, %arg1: memref<1x16x8x64xbf16, #tpu.memory_space<vmem>>, %arg2: memref<32x64xbf16, #tpu.memory_space<vmem>>, %arg3: memref<1x64xf32, #tpu.memory_space<vmem>>, %arg4: memref<3x192x64xbf16, #tpu.memory_space<vmem>>, %arg5: memref<1x64xf32, #tpu.memory_space<vmem>>, %arg6: memref<3x192x128xbf16, #tpu.memory_space<vmem>>, %arg7: memref<1x128xf32, #tpu.memory_space<vmem>>, %arg8: memref<1x16x8x128xf32, #tpu.memory_space<vmem>>, %arg9: memref<1x8x8x128xf32, #tpu.memory_space<vmem>>, %arg10: memref<18x9x64xbf16, #tpu.memory_space<vmem>>, %arg11: memref<18x9x64xbf16, #tpu.memory_space<vmem>>, %arg12: memref<10x10x64xbf16, #tpu.memory_space<vmem>>) attributes {dimension_semantics = [#tpu.dimension_semantics<parallel>], iteration_bounds = array<i64: 2>, scalar_prefetch = 0 : i64, scratch_operands = 3 : i64, tpu.core_type = #tpu.core_type<tc>, window_params = [{transform_indices = @transform_0, window_bounds = array<i64: 1, 16, 8, 64>}, {pipeline_mode = #tpu.pipeline_mode<synchronous>, transform_indices = @transform_1, window_bounds = array<i64: 32, 64>}, {pipeline_mode = #tpu.pipeline_mode<synchronous>, transform_indices = @transform_2, window_bounds = array<i64: 1, 64>}, {pipeline_mode = #tpu.pipeline_mode<synchronous>, transform_indices = @transform_3, window_bounds = array<i64: 3, 192, 64>}, {pipeline_mode = #tpu.pipeline_mode<synchronous>, transform_indices = @transform_4, window_bounds = array<i64: 1, 64>}, {pipeline_mode = #tpu.pipeline_mode<synchronous>, transform_indices = @transform_5, window_bounds = array<i64: 3, 192, 128>}, {pipeline_mode = #tpu.pipeline_mode<synchronous>, transform_indices = @transform_6, window_bounds = array<i64: 1, 128>}, {transform_indices = @transform_7, window_bounds = array<i64: 1, 16, 8, 128>}, {transform_indices = @transform_8, window_bounds = array<i64: 1, 8, 8, 128>}]} {
    %c0 = arith.constant 0 : index
    %c0_0 = arith.constant 0 : index
    %c0_1 = arith.constant 0 : index
    %c0_2 = arith.constant 0 : index
    %0 = vector.load %arg1[%c0, %c0_0, %c0_1, %c0_2] : memref<1x16x8x64xbf16, #tpu.memory_space<vmem>>, vector<1x16x8x64xbf16>
    %1 = vector.shape_cast %0 : vector<1x16x8x64xbf16> to vector<16x8x64xbf16>
    %2 = vector.extract_strided_slice %1 {offsets = [0, 0, 0], sizes = [16, 8, 32], strides = [1, 1, 1]} : vector<16x8x64xbf16> to vector<16x8x32xbf16>
    %3 = vector.shape_cast %2 : vector<16x8x32xbf16> to vector<128x32xbf16>
    %4 = vector.extract_strided_slice %1 {offsets = [0, 0, 32], sizes = [16, 8, 32], strides = [1, 1, 1]} : vector<16x8x64xbf16> to vector<16x8x32xbf16>
    %5 = vector.shape_cast %4 : vector<16x8x32xbf16> to vector<128x32xbf16>
    %c0_3 = arith.constant 0 : index
    %c0_4 = arith.constant 0 : index
    %6 = vector.load %arg2[%c0_3, %c0_4] : memref<32x64xbf16, #tpu.memory_space<vmem>>, vector<32x64xbf16>
    %c0_5 = arith.constant 0 : index
    %c0_6 = arith.constant 0 : index
    %7 = vector.load %arg3[%c0_5, %c0_6] : memref<1x64xf32, #tpu.memory_space<vmem>>, vector<1x64xf32>
    %cst = arith.constant dense<0.000000e+00> : vector<128x64xf32>
    %8 = tpu.matmul %3, %6, %cst {dimension_numbers = #tpu.dot_dimension_numbers<[1], [0], [0], [1], [0, 0, 1, 1], [], []>} : vector<128x32xbf16>, vector<32x64xbf16>, vector<128x64xf32> -> vector<128x64xf32>
    %9 = vector.broadcast %7 : vector<1x64xf32> to vector<128x64xf32>
    %10 = arith.addf %8, %9 : vector<128x64xf32>
    %cst_7 = arith.constant 0.000000e+00 : f32
    %11 = vector.broadcast %cst_7 : f32 to vector<128x64xf32>
    %12 = arith.maximumf %10, %11 : vector<128x64xf32>
    %cst_8 = arith.constant dense<0.000000e+00> : vector<128x64xf32>
    %13 = tpu.matmul %5, %6, %cst_8 {dimension_numbers = #tpu.dot_dimension_numbers<[1], [0], [0], [1], [0, 0, 1, 1], [], []>} : vector<128x32xbf16>, vector<32x64xbf16>, vector<128x64xf32> -> vector<128x64xf32>
    %14 = vector.broadcast %7 : vector<1x64xf32> to vector<128x64xf32>
    %15 = arith.addf %13, %14 : vector<128x64xf32>
    %cst_9 = arith.constant 0.000000e+00 : f32
    %16 = vector.broadcast %cst_9 : f32 to vector<128x64xf32>
    %17 = arith.maximumf %15, %16 : vector<128x64xf32>
    %18 = vector.shape_cast %12 : vector<128x64xf32> to vector<16x8x64xf32>
    %19 = vector.shape_cast %17 : vector<128x64xf32> to vector<16x8x64xf32>
    %20 = tpu.concatenate %18, %19 in 2 : vector<16x8x64xf32>, vector<16x8x64xf32> -> vector<16x8x128xf32>
    %c0_10 = arith.constant 0 : index
    %c0_11 = arith.constant 0 : index
    %c0_12 = arith.constant 0 : index
    %c0_13 = arith.constant 0 : index
    %21 = vector.load %arg8[%c0_10, %c0_11, %c0_12, %c0_13] : memref<1x16x8x128xf32, #tpu.memory_space<vmem>>, vector<1x16x8x128xf32>
    %22 = vector.shape_cast %21 : vector<1x16x8x128xf32> to vector<16x8x128xf32>
    %23 = vector.shape_cast %20 : vector<16x8x128xf32> to vector<1x16x8x128xf32>
    tpu.vector_store %arg8[%c0_10, %c0_11, %c0_12, %c0_13], %23 {strides = array<i32>} : memref<1x16x8x128xf32, #tpu.memory_space<vmem>>, vector<1x16x8x128xf32>,
    %cst_14 = arith.constant 0.000000e+00 : bf16
    %24 = vector.broadcast %cst_14 : bf16 to vector<18x9x64xbf16>
    %c0_15 = arith.constant 0 : index
    %c0_16 = arith.constant 0 : index
    %c0_17 = arith.constant 0 : index
    %25 = vector.load %arg10[%c0_15, %c0_16, %c0_17] : memref<18x9x64xbf16, #tpu.memory_space<vmem>>, vector<18x9x64xbf16>
    tpu.vector_store %arg10[%c0_15, %c0_16, %c0_17], %24 {strides = array<i32>} : memref<18x9x64xbf16, #tpu.memory_space<vmem>>, vector<18x9x64xbf16>,
    %cst_18 = arith.constant 0.000000e+00 : bf16
    %26 = vector.broadcast %cst_18 : bf16 to vector<18x9x64xbf16>
    %c0_19 = arith.constant 0 : index
    %c0_20 = arith.constant 0 : index
    %c0_21 = arith.constant 0 : index
    %27 = vector.load %arg11[%c0_19, %c0_20, %c0_21] : memref<18x9x64xbf16, #tpu.memory_space<vmem>>, vector<18x9x64xbf16>
    tpu.vector_store %arg11[%c0_19, %c0_20, %c0_21], %26 {strides = array<i32>} : memref<18x9x64xbf16, #tpu.memory_space<vmem>>, vector<18x9x64xbf16>,
    %28 = arith.truncf %18 : vector<16x8x64xf32> to vector<16x8x64xbf16>
    %c1 = arith.constant 1 : index
    %c0_22 = arith.constant 0 : index
    %c0_23 = arith.constant 0 : index
    %29 = vector.load %arg10[%c1, %c0_22, %c0_23] : memref<18x9x64xbf16, #tpu.memory_space<vmem>>, vector<16x8x64xbf16>
    tpu.vector_store %arg10[%c1, %c0_22, %c0_23], %28 {strides = array<i32>} : memref<18x9x64xbf16, #tpu.memory_space<vmem>>, vector<16x8x64xbf16>,
    %30 = arith.truncf %19 : vector<16x8x64xf32> to vector<16x8x64xbf16>
    %c1_24 = arith.constant 1 : index
    %c1_25 = arith.constant 1 : index
    %c0_26 = arith.constant 0 : index
    %31 = vector.load %arg11[%c1_24, %c1_25, %c0_26] : memref<18x9x64xbf16, #tpu.memory_space<vmem>>, vector<16x8x64xbf16>
    tpu.vector_store %arg11[%c1_24, %c1_25, %c0_26], %30 {strides = array<i32>} : memref<18x9x64xbf16, #tpu.memory_space<vmem>>, vector<16x8x64xbf16>,
    %cst_27 = arith.constant 0.000000e+00 : f32
    %32 = vector.broadcast %cst_27 : f32 to vector<128x64xf32>
    %cst_28 = arith.constant 0.000000e+00 : f32
    %33 = vector.broadcast %cst_28 : f32 to vector<128x64xf32>
    %c0_29 = arith.constant 0 : index
    %c0_30 = arith.constant 0 : index
    %34 = vector.load %arg5[%c0_29, %c0_30] : memref<1x64xf32, #tpu.memory_space<vmem>>, vector<1x64xf32>
    %c0_31 = arith.constant 0 : index
    %c0_32 = arith.constant 0 : index
    %c0_33 = arith.constant 0 : index
    %35 = vector.load %arg4[%c0_31, %c0_32, %c0_33] : memref<3x192x64xbf16, #tpu.memory_space<vmem>>, vector<1x192x64xbf16>
    %36 = vector.shape_cast %35 : vector<1x192x64xbf16> to vector<192x64xbf16>
    %c0_34 = arith.constant 0 : index
    %c0_35 = arith.constant 0 : index
    %c0_36 = arith.constant 0 : index
    %37 = vector.load %arg10[%c0_34, %c0_35, %c0_36] : memref<18x9x64xbf16, #tpu.memory_space<vmem>>, vector<16x8x64xbf16>
    %c0_37 = arith.constant 0 : index
    %c1_38 = arith.constant 1 : index
    %c0_39 = arith.constant 0 : index
    %38 = vector.load %arg10[%c0_37, %c1_38, %c0_39] : memref<18x9x64xbf16, #tpu.memory_space<vmem>>, vector<16x8x64xbf16>
    %c0_40 = arith.constant 0 : index
    %c0_41 = arith.constant 0 : index
    %c0_42 = arith.constant 0 : index
    %39 = vector.load %arg11[%c0_40, %c0_41, %c0_42] : memref<18x9x64xbf16, #tpu.memory_space<vmem>>, vector<16x8x64xbf16>
    %c0_43 = arith.constant 0 : index
    %c1_44 = arith.constant 1 : index
    %c0_45 = arith.constant 0 : index
    %40 = vector.load %arg11[%c0_43, %c1_44, %c0_45] : memref<18x9x64xbf16, #tpu.memory_space<vmem>>, vector<16x8x64xbf16>
    %41 = tpu.concatenate %39, %37, %40 in 2 : vector<16x8x64xbf16>, vector<16x8x64xbf16>, vector<16x8x64xbf16> -> vector<16x8x192xbf16>
    %42 = vector.shape_cast %41 : vector<16x8x192xbf16> to vector<128x192xbf16>
    %43 = tpu.concatenate %37, %40, %38 in 2 : vector<16x8x64xbf16>, vector<16x8x64xbf16>, vector<16x8x64xbf16> -> vector<16x8x192xbf16>
    %44 = vector.shape_cast %43 : vector<16x8x192xbf16> to vector<128x192xbf16>
    %cst_46 = arith.constant dense<0.000000e+00> : vector<128x64xf32>
    %45 = tpu.matmul %42, %36, %cst_46 {dimension_numbers = #tpu.dot_dimension_numbers<[1], [0], [0], [1], [0, 0, 1, 1], [], []>} : vector<128x192xbf16>, vector<192x64xbf16>, vector<128x64xf32> -> vector<128x64xf32>
    %46 = arith.addf %32, %45 : vector<128x64xf32>
    %cst_47 = arith.constant dense<0.000000e+00> : vector<128x64xf32>
    %47 = tpu.matmul %44, %36, %cst_47 {dimension_numbers = #tpu.dot_dimension_numbers<[1], [0], [0], [1], [0, 0, 1, 1], [], []>} : vector<128x192xbf16>, vector<192x64xbf16>, vector<128x64xf32> -> vector<128x64xf32>
    %48 = arith.addf %33, %47 : vector<128x64xf32>
    %c1_48 = arith.constant 1 : index
    %c0_49 = arith.constant 0 : index
    %c0_50 = arith.constant 0 : index
    %49 = vector.load %arg4[%c1_48, %c0_49, %c0_50] : memref<3x192x64xbf16, #tpu.memory_space<vmem>>, vector<1x192x64xbf16>
    %50 = vector.shape_cast %49 : vector<1x192x64xbf16> to vector<192x64xbf16>
    %c1_51 = arith.constant 1 : index
    %c0_52 = arith.constant 0 : index
    %c0_53 = arith.constant 0 : index
    %51 = vector.load %arg10[%c1_51, %c0_52, %c0_53] : memref<18x9x64xbf16, #tpu.memory_space<vmem>>, vector<16x8x64xbf16>
    %c1_54 = arith.constant 1 : index
    %c1_55 = arith.constant 1 : index
    %c0_56 = arith.constant 0 : index
    %52 = vector.load %arg10[%c1_54, %c1_55, %c0_56] : memref<18x9x64xbf16, #tpu.memory_space<vmem>>, vector<16x8x64xbf16>
    %c1_57 = arith.constant 1 : index
    %c0_58 = arith.constant 0 : index
    %c0_59 = arith.constant 0 : index
    %53 = vector.load %arg11[%c1_57, %c0_58, %c0_59] : memref<18x9x64xbf16, #tpu.memory_space<vmem>>, vector<16x8x64xbf16>
    %c1_60 = arith.constant 1 : index
    %c1_61 = arith.constant 1 : index
    %c0_62 = arith.constant 0 : index
    %54 = vector.load %arg11[%c1_60, %c1_61, %c0_62] : memref<18x9x64xbf16, #tpu.memory_space<vmem>>, vector<16x8x64xbf16>
    %55 = tpu.concatenate %53, %51, %54 in 2 : vector<16x8x64xbf16>, vector<16x8x64xbf16>, vector<16x8x64xbf16> -> vector<16x8x192xbf16>
    %56 = vector.shape_cast %55 : vector<16x8x192xbf16> to vector<128x192xbf16>
    %57 = tpu.concatenate %51, %54, %52 in 2 : vector<16x8x64xbf16>, vector<16x8x64xbf16>, vector<16x8x64xbf16> -> vector<16x8x192xbf16>
    %58 = vector.shape_cast %57 : vector<16x8x192xbf16> to vector<128x192xbf16>
    %cst_63 = arith.constant dense<0.000000e+00> : vector<128x64xf32>
    %59 = tpu.matmul %56, %50, %cst_63 {dimension_numbers = #tpu.dot_dimension_numbers<[1], [0], [0], [1], [0, 0, 1, 1], [], []>} : vector<128x192xbf16>, vector<192x64xbf16>, vector<128x64xf32> -> vector<128x64xf32>
    %60 = arith.addf %46, %59 : vector<128x64xf32>
    %cst_64 = arith.constant dense<0.000000e+00> : vector<128x64xf32>
    %61 = tpu.matmul %58, %50, %cst_64 {dimension_numbers = #tpu.dot_dimension_numbers<[1], [0], [0], [1], [0, 0, 1, 1], [], []>} : vector<128x192xbf16>, vector<192x64xbf16>, vector<128x64xf32> -> vector<128x64xf32>
    %62 = arith.addf %48, %61 : vector<128x64xf32>
    %c2 = arith.constant 2 : index
    %c0_65 = arith.constant 0 : index
    %c0_66 = arith.constant 0 : index
    %63 = vector.load %arg4[%c2, %c0_65, %c0_66] : memref<3x192x64xbf16, #tpu.memory_space<vmem>>, vector<1x192x64xbf16>
    %64 = vector.shape_cast %63 : vector<1x192x64xbf16> to vector<192x64xbf16>
    %c2_67 = arith.constant 2 : index
    %c0_68 = arith.constant 0 : index
    %c0_69 = arith.constant 0 : index
    %65 = vector.load %arg10[%c2_67, %c0_68, %c0_69] : memref<18x9x64xbf16, #tpu.memory_space<vmem>>, vector<16x8x64xbf16>
    %c2_70 = arith.constant 2 : index
    %c1_71 = arith.constant 1 : index
    %c0_72 = arith.constant 0 : index
    %66 = vector.load %arg10[%c2_70, %c1_71, %c0_72] : memref<18x9x64xbf16, #tpu.memory_space<vmem>>, vector<16x8x64xbf16>
    %c2_73 = arith.constant 2 : index
    %c0_74 = arith.constant 0 : index
    %c0_75 = arith.constant 0 : index
    %67 = vector.load %arg11[%c2_73, %c0_74, %c0_75] : memref<18x9x64xbf16, #tpu.memory_space<vmem>>, vector<16x8x64xbf16>
    %c2_76 = arith.constant 2 : index
    %c1_77 = arith.constant 1 : index
    %c0_78 = arith.constant 0 : index
    %68 = vector.load %arg11[%c2_76, %c1_77, %c0_78] : memref<18x9x64xbf16, #tpu.memory_space<vmem>>, vector<16x8x64xbf16>
    %69 = tpu.concatenate %67, %65, %68 in 2 : vector<16x8x64xbf16>, vector<16x8x64xbf16>, vector<16x8x64xbf16> -> vector<16x8x192xbf16>
    %70 = vector.shape_cast %69 : vector<16x8x192xbf16> to vector<128x192xbf16>
    %71 = tpu.concatenate %65, %68, %66 in 2 : vector<16x8x64xbf16>, vector<16x8x64xbf16>, vector<16x8x64xbf16> -> vector<16x8x192xbf16>
    %72 = vector.shape_cast %71 : vector<16x8x192xbf16> to vector<128x192xbf16>
    %cst_79 = arith.constant dense<0.000000e+00> : vector<128x64xf32>
    %73 = tpu.matmul %70, %64, %cst_79 {dimension_numbers = #tpu.dot_dimension_numbers<[1], [0], [0], [1], [0, 0, 1, 1], [], []>} : vector<128x192xbf16>, vector<192x64xbf16>, vector<128x64xf32> -> vector<128x64xf32>
    %74 = arith.addf %60, %73 : vector<128x64xf32>
    %cst_80 = arith.constant dense<0.000000e+00> : vector<128x64xf32>
    %75 = tpu.matmul %72, %64, %cst_80 {dimension_numbers = #tpu.dot_dimension_numbers<[1], [0], [0], [1], [0, 0, 1, 1], [], []>} : vector<128x192xbf16>, vector<192x64xbf16>, vector<128x64xf32> -> vector<128x64xf32>
    %76 = arith.addf %62, %75 : vector<128x64xf32>
    %77 = vector.broadcast %34 : vector<1x64xf32> to vector<128x64xf32>
    %78 = arith.addf %74, %77 : vector<128x64xf32>
    %cst_81 = arith.constant 0.000000e+00 : f32
    %79 = vector.broadcast %cst_81 : f32 to vector<128x64xf32>
    %80 = arith.maximumf %78, %79 : vector<128x64xf32>
    %81 = vector.broadcast %34 : vector<1x64xf32> to vector<128x64xf32>
    %82 = arith.addf %76, %81 : vector<128x64xf32>
    %cst_82 = arith.constant 0.000000e+00 : f32
    %83 = vector.broadcast %cst_82 : f32 to vector<128x64xf32>
    %84 = arith.maximumf %82, %83 : vector<128x64xf32>
    %85 = arith.maximumf %80, %84 : vector<128x64xf32>
    %86 = vector.shape_cast %85 : vector<128x64xf32> to vector<8x2x8x64xf32>
    %cst_83 = arith.constant dense<0xFF800000> : vector<8x8x64xf32>
    %87 = vector.multi_reduction <maximumf>, %86, %cst_83 [1] : vector<8x2x8x64xf32> to vector<8x8x64xf32>
    %cst_84 = arith.constant 0.000000e+00 : bf16
    %88 = vector.broadcast %cst_84 : bf16 to vector<10x10x64xbf16>
    %c0_85 = arith.constant 0 : index
    %c0_86 = arith.constant 0 : index
    %c0_87 = arith.constant 0 : index
    %89 = vector.load %arg12[%c0_85, %c0_86, %c0_87] : memref<10x10x64xbf16, #tpu.memory_space<vmem>>, vector<10x10x64xbf16>
    tpu.vector_store %arg12[%c0_85, %c0_86, %c0_87], %88 {strides = array<i32>} : memref<10x10x64xbf16, #tpu.memory_space<vmem>>, vector<10x10x64xbf16>,
    %90 = arith.truncf %87 : vector<8x8x64xf32> to vector<8x8x64xbf16>
    %c1_88 = arith.constant 1 : index
    %c1_89 = arith.constant 1 : index
    %c0_90 = arith.constant 0 : index
    %91 = vector.load %arg12[%c1_88, %c1_89, %c0_90] : memref<10x10x64xbf16, #tpu.memory_space<vmem>>, vector<8x8x64xbf16>
    tpu.vector_store %arg12[%c1_88, %c1_89, %c0_90], %90 {strides = array<i32>} : memref<10x10x64xbf16, #tpu.memory_space<vmem>>, vector<8x8x64xbf16>,
    %cst_91 = arith.constant 0.000000e+00 : f32
    %92 = vector.broadcast %cst_91 : f32 to vector<64x128xf32>
    %c0_92 = arith.constant 0 : index
    %c0_93 = arith.constant 0 : index
    %c0_94 = arith.constant 0 : index
    %93 = vector.load %arg12[%c0_92, %c0_93, %c0_94] : memref<10x10x64xbf16, #tpu.memory_space<vmem>>, vector<8x8x64xbf16>
    %c0_95 = arith.constant 0 : index
    %c1_96 = arith.constant 1 : index
    %c0_97 = arith.constant 0 : index
    %94 = vector.load %arg12[%c0_95, %c1_96, %c0_97] : memref<10x10x64xbf16, #tpu.memory_space<vmem>>, vector<8x8x64xbf16>
    %c0_98 = arith.constant 0 : index
    %c2_99 = arith.constant 2 : index
    %c0_100 = arith.constant 0 : index
    %95 = vector.load %arg12[%c0_98, %c2_99, %c0_100] : memref<10x10x64xbf16, #tpu.memory_space<vmem>>, vector<8x8x64xbf16>
    %96 = tpu.concatenate %93, %94, %95 in 2 : vector<8x8x64xbf16>, vector<8x8x64xbf16>, vector<8x8x64xbf16> -> vector<8x8x192xbf16>
    %97 = vector.shape_cast %96 : vector<8x8x192xbf16> to vector<64x192xbf16>
    %c0_101 = arith.constant 0 : index
    %c0_102 = arith.constant 0 : index
    %c0_103 = arith.constant 0 : index
    %98 = vector.load %arg6[%c0_101, %c0_102, %c0_103] : memref<3x192x128xbf16, #tpu.memory_space<vmem>>, vector<1x192x128xbf16>
    %99 = vector.shape_cast %98 : vector<1x192x128xbf16> to vector<192x128xbf16>
    %cst_104 = arith.constant dense<0.000000e+00> : vector<64x128xf32>
    %100 = tpu.matmul %97, %99, %cst_104 {dimension_numbers = #tpu.dot_dimension_numbers<[1], [0], [0], [1], [0, 0, 1, 1], [], []>} : vector<64x192xbf16>, vector<192x128xbf16>, vector<64x128xf32> -> vector<64x128xf32>
    %101 = arith.addf %92, %100 : vector<64x128xf32>
    %c1_105 = arith.constant 1 : index
    %c0_106 = arith.constant 0 : index
    %c0_107 = arith.constant 0 : index
    %102 = vector.load %arg12[%c1_105, %c0_106, %c0_107] : memref<10x10x64xbf16, #tpu.memory_space<vmem>>, vector<8x8x64xbf16>
    %c1_108 = arith.constant 1 : index
    %c1_109 = arith.constant 1 : index
    %c0_110 = arith.constant 0 : index
    %103 = vector.load %arg12[%c1_108, %c1_109, %c0_110] : memref<10x10x64xbf16, #tpu.memory_space<vmem>>, vector<8x8x64xbf16>
    %c1_111 = arith.constant 1 : index
    %c2_112 = arith.constant 2 : index
    %c0_113 = arith.constant 0 : index
    %104 = vector.load %arg12[%c1_111, %c2_112, %c0_113] : memref<10x10x64xbf16, #tpu.memory_space<vmem>>, vector<8x8x64xbf16>
    %105 = tpu.concatenate %102, %103, %104 in 2 : vector<8x8x64xbf16>, vector<8x8x64xbf16>, vector<8x8x64xbf16> -> vector<8x8x192xbf16>
    %106 = vector.shape_cast %105 : vector<8x8x192xbf16> to vector<64x192xbf16>
    %c1_114 = arith.constant 1 : index
    %c0_115 = arith.constant 0 : index
    %c0_116 = arith.constant 0 : index
    %107 = vector.load %arg6[%c1_114, %c0_115, %c0_116] : memref<3x192x128xbf16, #tpu.memory_space<vmem>>, vector<1x192x128xbf16>
    %108 = vector.shape_cast %107 : vector<1x192x128xbf16> to vector<192x128xbf16>
    %cst_117 = arith.constant dense<0.000000e+00> : vector<64x128xf32>
    %109 = tpu.matmul %106, %108, %cst_117 {dimension_numbers = #tpu.dot_dimension_numbers<[1], [0], [0], [1], [0, 0, 1, 1], [], []>} : vector<64x192xbf16>, vector<192x128xbf16>, vector<64x128xf32> -> vector<64x128xf32>
    %110 = arith.addf %101, %109 : vector<64x128xf32>
    %c2_118 = arith.constant 2 : index
    %c0_119 = arith.constant 0 : index
    %c0_120 = arith.constant 0 : index
    %111 = vector.load %arg12[%c2_118, %c0_119, %c0_120] : memref<10x10x64xbf16, #tpu.memory_space<vmem>>, vector<8x8x64xbf16>
    %c2_121 = arith.constant 2 : index
    %c1_122 = arith.constant 1 : index
    %c0_123 = arith.constant 0 : index
    %112 = vector.load %arg12[%c2_121, %c1_122, %c0_123] : memref<10x10x64xbf16, #tpu.memory_space<vmem>>, vector<8x8x64xbf16>
    %c2_124 = arith.constant 2 : index
    %c2_125 = arith.constant 2 : index
    %c0_126 = arith.constant 0 : index
    %113 = vector.load %arg12[%c2_124, %c2_125, %c0_126] : memref<10x10x64xbf16, #tpu.memory_space<vmem>>, vector<8x8x64xbf16>
    %114 = tpu.concatenate %111, %112, %113 in 2 : vector<8x8x64xbf16>, vector<8x8x64xbf16>, vector<8x8x64xbf16> -> vector<8x8x192xbf16>
    %115 = vector.shape_cast %114 : vector<8x8x192xbf16> to vector<64x192xbf16>
    %c2_127 = arith.constant 2 : index
    %c0_128 = arith.constant 0 : index
    %c0_129 = arith.constant 0 : index
    %116 = vector.load %arg6[%c2_127, %c0_128, %c0_129] : memref<3x192x128xbf16, #tpu.memory_space<vmem>>, vector<1x192x128xbf16>
    %117 = vector.shape_cast %116 : vector<1x192x128xbf16> to vector<192x128xbf16>
    %cst_130 = arith.constant dense<0.000000e+00> : vector<64x128xf32>
    %118 = tpu.matmul %115, %117, %cst_130 {dimension_numbers = #tpu.dot_dimension_numbers<[1], [0], [0], [1], [0, 0, 1, 1], [], []>} : vector<64x192xbf16>, vector<192x128xbf16>, vector<64x128xf32> -> vector<64x128xf32>
    %119 = arith.addf %110, %118 : vector<64x128xf32>
    %c0_131 = arith.constant 0 : index
    %c0_132 = arith.constant 0 : index
    %120 = vector.load %arg7[%c0_131, %c0_132] : memref<1x128xf32, #tpu.memory_space<vmem>>, vector<1x128xf32>
    %121 = vector.broadcast %120 : vector<1x128xf32> to vector<64x128xf32>
    %122 = arith.addf %119, %121 : vector<64x128xf32>
    %cst_133 = arith.constant 0.000000e+00 : f32
    %123 = vector.broadcast %cst_133 : f32 to vector<64x128xf32>
    %124 = arith.maximumf %122, %123 : vector<64x128xf32>
    %125 = vector.shape_cast %124 : vector<64x128xf32> to vector<8x8x128xf32>
    %c0_134 = arith.constant 0 : index
    %c0_135 = arith.constant 0 : index
    %c0_136 = arith.constant 0 : index
    %c0_137 = arith.constant 0 : index
    %126 = vector.load %arg9[%c0_134, %c0_135, %c0_136, %c0_137] : memref<1x8x8x128xf32, #tpu.memory_space<vmem>>, vector<1x8x8x128xf32>
    %127 = vector.shape_cast %126 : vector<1x8x8x128xf32> to vector<8x8x128xf32>
    %128 = vector.shape_cast %125 : vector<8x8x128xf32> to vector<1x8x8x128xf32>
    tpu.vector_store %arg9[%c0_134, %c0_135, %c0_136, %c0_137], %128 {strides = array<i32>} : memref<1x8x8x128xf32, #tpu.memory_space<vmem>>, vector<1x8x8x128xf32>,
    return
  }
  func.func @transform_0(%arg0: i32) -> (i32, i32, i32, i32) {
    %c0_i32 = arith.constant 0 : i32
    %c0_i32_0 = arith.constant 0 : i32
    %c0_i32_1 = arith.constant 0 : i32
    %c0_i32_2 = arith.constant 0 : i32
    return %arg0, %c0_i32, %c0_i32_0, %c0_i32_1 : i32, i32, i32, i32
  }
  func.func @transform_1(%arg0: i32) -> (i32, i32) {
    %c0_i32 = arith.constant 0 : i32
    %c0_i32_0 = arith.constant 0 : i32
    %c0_i32_1 = arith.constant 0 : i32
    return %c0_i32, %c0_i32_0 : i32, i32
  }
  func.func @transform_2(%arg0: i32) -> (i32, i32) {
    %c0_i32 = arith.constant 0 : i32
    %c0_i32_0 = arith.constant 0 : i32
    %c0_i32_1 = arith.constant 0 : i32
    return %c0_i32, %c0_i32_0 : i32, i32
  }
  func.func @transform_3(%arg0: i32) -> (i32, i32, i32) {
    %c0_i32 = arith.constant 0 : i32
    %c0_i32_0 = arith.constant 0 : i32
    %c0_i32_1 = arith.constant 0 : i32
    %c0_i32_2 = arith.constant 0 : i32
    return %c0_i32, %c0_i32_0, %c0_i32_1 : i32, i32, i32
  }
  func.func @transform_4(%arg0: i32) -> (i32, i32) {
    %c0_i32 = arith.constant 0 : i32
    %c0_i32_0 = arith.constant 0 : i32
    %c0_i32_1 = arith.constant 0 : i32
    return %c0_i32, %c0_i32_0 : i32, i32
  }
  func.func @transform_5(%arg0: i32) -> (i32, i32, i32) {
    %c0_i32 = arith.constant 0 : i32
    %c0_i32_0 = arith.constant 0 : i32
    %c0_i32_1 = arith.constant 0 : i32
    %c0_i32_2 = arith.constant 0 : i32
    return %c0_i32, %c0_i32_0, %c0_i32_1 : i32, i32, i32
  }
  func.func @transform_6(%arg0: i32) -> (i32, i32) {
    %c0_i32 = arith.constant 0 : i32
    %c0_i32_0 = arith.constant 0 : i32
    %c0_i32_1 = arith.constant 0 : i32
    return %c0_i32, %c0_i32_0 : i32, i32
  }
  func.func @transform_7(%arg0: i32) -> (i32, i32, i32, i32) {
    %c0_i32 = arith.constant 0 : i32
    %c0_i32_0 = arith.constant 0 : i32
    %c0_i32_1 = arith.constant 0 : i32
    %c0_i32_2 = arith.constant 0 : i32
    return %arg0, %c0_i32, %c0_i32_0, %c0_i32_1 : i32, i32, i32, i32
  }
  func.func @transform_8(%arg0: i32) -> (i32, i32, i32, i32) {
    %c0_i32 = arith.constant 0 : i32
    %c0_i32_0 = arith.constant 0 : i32
    %c0_i32_1 = arith.constant 0 : i32
    %c0_i32_2 = arith.constant 0 : i32
    return %arg0, %c0_i32, %c0_i32_0, %c0_i32_1 : i32, i32, i32, i32
  }
}

</mosaic_0001>

<bundles_post_ra>
// kernel: vgg_forward.1
= control target key start
LH: loop header
LB: loop body
LE: loop exit
PB: predicated region body
PF: predicated region fallthrough
CT: control target
= control target key end

     0   :  { %14 = vsyncpa [#allocation6], 0  ;;  %s10228_s0 = inlined_call_operand.vmem [shape: bf16[2,16,8,64], index: 0, kind: input, shape index: {}]   ;;  %s10229_s1 = inlined_call_operand.vmem [shape: bf16[32,64], index: 1, kind: input, shape index: {}]   ;;  %s10230_s2 = inlined_call_operand.vmem [shape: f32[1,64], index: 2, kind: input, shape index: {}]   ;;  %s10231_s3 = inlined_call_operand.vmem [shape: bf16[3,192,64], index: 3, kind: input, shape index: {}]   ;;  %s10232_s4 = inlined_call_operand.vmem [shape: f32[1,64], index: 4, kind: input, shape index: {}]   ;;  %s10233_s5 = inlined_call_operand.vmem [shape: bf16[3,192,128], index: 5, kind: input, shape index: {}]   ;;  %s10234_s6 = inlined_call_operand.vmem [shape: f32[1,128], index: 6, kind: input, shape index: {}]   ;;  %s10235_s7 = inlined_call_operand.vmem [shape: f32[2,16,8,128], index: 7, kind: output, shape index: {0}]   ;;  %s10236_s8 = inlined_call_operand.hbm [shape: f32[2,8,8,128], index: 8, kind: output, shape index: {1}]  }
   0x1   :  { %16 = vsyncpa [#allocation6 + $0x1], 0  ;;  %s7527_s27 = smov 0   ;;  %s7529_s28 = smov 0  }
   0x2   :  { %s7531_s29 = smov 0   ;;  %s7533_s30 = smov 0  }
   0x3 LB: > { %s7548_s9 = sadd.s32 4294967295, %s7474_s30   ;;  %s6291_s10 = sadd.s32 4294967294, %s7474_s30   ;;  %s7474_s30 = sphi %s7533_s30, %s10439_s30   ;;  %s7470_s29 = sphi %s7531_s29, %s10438_s29   ;;  %s7466_s28 = sphi %s7529_s28, %s10437_s28   ;;  %s7462_s27 = sphi %s7527_s27, %s10436_s27  }
   0x4   : > { %s7552_s11 = sadd.s32 1, %s7474_s30   ;;  %s207_s12 = sadd.s32 1, %s7470_s29 }
   0x5   : > { %s204_s13 = ssub.s32 %s7474_s30, %s7552_s11  ;;  %p217_p0 = scmp.ne.s32.totalorder %s7470_s29, %s7466_s28 }
   0x6   : > { %p205_p1 = scmp.eq.s32.totalorder %s204_s13, 0  ;;  %p218_p2 = scmp.eq.s32.totalorder %s7548_s9, 1 }
   0x7   : > { %p223_p3 = scmp.ne.s32.totalorder %s7466_s28, %s7462_s27  ;;  %p224_p4 = scmp.eq.s32.totalorder %s6291_s10, 1 }
   0x8   : > { %s7563_s14 = scalar_select %p205_p1, %s7470_s29, %s207_s12  }
   0x9   : > { %p7565_p5 = por %p218_p2, %p217_p0  ;;  %p7569_p6 = por %p224_p4, %p223_p3 }
   0xa   : > { %p6294_p7 = scmp.ge.s32.totalorder %s7474_s30, 1  ;;  %p268_p8 = scmp.lt.s32.totalorder %s7474_s30, 3 }
   0xc   : > { %p269_p9 = pnand %p6294_p7, %p268_p8 }
   0xe   : > { %272 = sbr.rel (%p269_p9) target bundleno = 1288 (0x508), region = 48 }
  0x15   : > { %v7053_v0 = vld [vmem:[%s10229_s1] sm:$0xff]   ;;  %p307_p10 = scmp.lt.s32.totalorder %s7548_s9, 1  ;;  %v7054_v1 = vld [vmem:[%s10229_s1 + $0x8] sm:$0xff]   ;;  %vm397_vm0 = vcmask 261120   ;;  %s7476_s26 = smov 96   ;;  %vm785_vm1 = vcmask 519168  }
  0x16   : > { %6945 = vmatprep.subr.bf16.mxu0 %v7053_v0  ;;  %6965 = vmatprep.subr.bf16.mxu1 %v7053_v0  ;;  %v10237_v10 = vmov 0   ;;  %vm787_vm2 = vcmask 516096   ;;  %vm788_vm3 = vsmask.f32 256  ;;  %v790_v11 = vld [vmem:[#allocation2 + $0x4] sm:$0x1] }
  0x17   : > { %s7583_s21 = scalar_select %p307_p10, %s7548_s9, 1  ;;  %6946 = vmatpush3.bf16.msra.mxu0 %v7053_v0  ;;  %6966 = vmatpush3.bf16.msra.mxu1 %v7053_v0  ;;  %801 = vst.msk [vmem:[#allocation2 + $0x18] sm:$0xf] %vm785_vm1, %v10237_v10  ;;  %786 = vst.msk [vmem:[#allocation2] sm:$0xf] %vm785_vm1, %v10237_v10  ;;  %v10298_v12 = vmov 0 }
  0x18   : > { %6947 = vmatprep.subr.bf16.mxu0 %v7054_v1  ;;  %6967 = vmatprep.subr.bf16.mxu1 %v7054_v1  ;;  %793 = vst.msk [vmem:[#allocation2 + $0x8] sm:$0xf] %vm785_vm1, %v10237_v10  ;;  %797 = vst.msk [vmem:[#allocation2 + $0x10] sm:$0xf] %vm785_vm1, %v10237_v10  ;;  %s7478_s10 = smov 64   ;;  %v7127_v56 = vld [vmem:[%s10231_s3] sm:$0xff]  }
  0x19   : > { %s6898_s22 = sshll.u32 %s7583_s21, 6  ;;  %805 = vst.msk [vmem:[#allocation2 + $0x20] sm:$0xf] %vm785_vm1, %v10237_v10  ;;  %809 = vst.msk [vmem:[#allocation2 + $0x28] sm:$0xf] %vm785_vm1, %v10237_v10  ;;  %v7128_v57 = vld [vmem:[%s10231_s3 + $0x60] sm:$0xff]  }
  0x1a   : > { %s311_s25 = scalar_lea.vmem %s10228_s0, %s6898_s22  ;;  %813 = vst.msk [vmem:[#allocation2 + $0x30] sm:$0xf] %vm785_vm1, %v10237_v10  ;;  %817 = vst.msk [vmem:[#allocation2 + $0x38] sm:$0xf] %vm785_vm1, %v10237_v10  ;;  %v794_v16 = vld [vmem:[#allocation2 + $0xc] sm:$0x1] }
  0x1b   : > { %v7055_v2 = vld [vmem:[%s311_s25] sm:$0xff]   ;;  %6948 = vmatpush3.bf16.msra.mxu0 %v7054_v1  ;;  %v7056_v3 = vld [vmem:[%s311_s25 + $0x8] sm:$0xff]   ;;  %6968 = vmatpush3.bf16.msra.mxu1 %v7054_v1  ;;  %v7057_v4 = vld [vmem:[%s311_s25 + $0x10] sm:$0xff]   ;;  %821 = vst.msk [vmem:[#allocation2 + $0x40] sm:$0xf] %vm785_vm1, %v10237_v10  ;;  %vm752_vm5 = vcmask 523264  }
  0x1c   : > { %535 = vrot.lane.b32.xlu0 %v7055_v2, %s7476_s26  ;;  %6949 = vmatprep.mubr.msk.bf16.mxu0 %vm397_vm0, %v7055_v2  ;;  %v7058_v5 = vld [vmem:[%s311_s25 + $0x18] sm:$0xff]   ;;  %v7059_v6 = vld [vmem:[%s311_s25 + $0x20] sm:$0xff]   ;;  %v7060_v7 = vld [vmem:[%s311_s25 + $0x28] sm:$0xff]   ;;  %825 = vst.msk [vmem:[#allocation2 + $0x48] sm:$0xf] %vm785_vm1, %v10237_v10  ;;  %s6924_s20 = sshll.u32 %s7548_s9, 10 }
  0x1d   : > { %539 = vrot.lane.b32.xlu1 %v7057_v4, %s7476_s26  ;;  %v7061_v8 = vld [vmem:[%s311_s25 + $0x30] sm:$0xff]   ;;  %v7062_v9 = vld [vmem:[%s311_s25 + $0x38] sm:$0xff]   ;;  %829 = vst.msk [vmem:[#allocation2 + $0x50] sm:$0xf] %vm785_vm1, %v10237_v10  ;;  %833 = vst.msk [vmem:[#allocation2 + $0x58] sm:$0xf] %vm785_vm1, %v10237_v10  ;;  %3117 = vmatprep.subr.bf16.mxu1 %v10237_v10 }
  0x1e   : > { %6950 = vmatmul.mubr.msk.bf16.vlgmr.msra.gmra.mrb[0].mxu0 %vm397_vm0, %v7056_v3  ;;  %837 = vst.msk [vmem:[#allocation2 + $0x60] sm:$0xf] %vm785_vm1, %v10237_v10  ;;  %841 = vst.msk [vmem:[#allocation2 + $0x68] sm:$0xf] %vm785_vm1, %v10237_v10  ;;  %2900 = vmatprep.subr.bf16.mxu0 %v10237_v10  ;;  %v7695_v13 = vld [vmem:[#allocation2] sm:$0xf] }
  0x1f   : > { %6953 = vmatprep.mubr.msk.bf16.mxu0 %vm397_vm0, %v7057_v4  ;;  %845 = vst.msk [vmem:[#allocation2 + $0x70] sm:$0xf] %vm785_vm1, %v10237_v10  ;;  %849 = vst.msk [vmem:[#allocation2 + $0x78] sm:$0xf] %vm785_vm1, %v10237_v10  ;;  %v6343_v15 = vcombine.low %v7695_v13, %v7695_v13  ;;  %v802_v18 = vld [vmem:[#allocation2 + $0x1c] sm:$0x1]  ;;  %2901 = vmatpush1.bf16.msra.mxu0 %v7128_v57 }
  0x20   : > { %537 = vrot.lane.b32.xlu0 %v7056_v3, %s7476_s26  ;;  %853 = vst.msk [vmem:[#allocation2 + $0x80] sm:$0xf] %vm785_vm1, %v10237_v10  ;;  %857 = vst.msk [vmem:[#allocation2 + $0x88] sm:$0xf] %vm785_vm1, %v10237_v10  ;;  %v798_v20 = vld [vmem:[#allocation2 + $0x14] sm:$0x1]  ;;  %2902 = vmatprep.subr.bf16.mxu0 %v10237_v10 }
  0x21   : > { %541 = vrot.lane.b32.xlu1 %v7058_v5, %s7476_s26  ;;  %861 = vst.msk [vmem:[#allocation3] sm:$0xf] %vm785_vm1, %v10237_v10  ;;  %865 = vst.msk [vmem:[#allocation3 + $0x8] sm:$0xf] %vm785_vm1, %v10237_v10  ;;  %v806_v22 = vld [vmem:[#allocation2 + $0x24] sm:$0x1] }
  0x22   : > { %869 = vst.msk [vmem:[#allocation3 + $0x10] sm:$0xf] %vm785_vm1, %v10237_v10  ;;  %873 = vst.msk [vmem:[#allocation3 + $0x18] sm:$0xf] %vm785_vm1, %v10237_v10  ;;  %v810_v25 = vld [vmem:[#allocation2 + $0x2c] sm:$0x1] }
  0x23   : > { %877 = vst.msk [vmem:[#allocation3 + $0x20] sm:$0xf] %vm785_vm1, %v10237_v10  ;;  %881 = vst.msk [vmem:[#allocation3 + $0x28] sm:$0xf] %vm785_vm1, %v10237_v10  ;;  %v818_v29 = vld [vmem:[#allocation2 + $0x3c] sm:$0x1] }
  0x24   : > { %543 = vrot.lane.b32.xlu0 %v7059_v6, %s7476_s26  ;;  %885 = vst.msk [vmem:[#allocation3 + $0x30] sm:$0xf] %vm785_vm1, %v10237_v10  ;;  %889 = vst.msk [vmem:[#allocation3 + $0x38] sm:$0xf] %vm785_vm1, %v10237_v10  ;;  %v814_v31 = vld [vmem:[#allocation2 + $0x34] sm:$0x1] }
  0x25   : > { %545 = vrot.lane.b32.xlu1 %v7060_v7, %s7476_s26  ;;  %893 = vst.msk [vmem:[#allocation3 + $0x40] sm:$0xf] %vm785_vm1, %v10237_v10  ;;  %897 = vst.msk [vmem:[#allocation3 + $0x48] sm:$0xf] %vm785_vm1, %v10237_v10  ;;  %v822_v35 = vld [vmem:[#allocation2 + $0x44] sm:$0x1] }
  0x26   : > { %6954 = vmatmul.mubr.msk.bf16.gmra.mrb[4].mxu0 %vm397_vm0, %v7058_v5  ;;  %901 = vst.msk [vmem:[#allocation3 + $0x50] sm:$0xf] %vm785_vm1, %v10237_v10  ;;  %905 = vst.msk [vmem:[#allocation3 + $0x58] sm:$0xf] %vm785_vm1, %v10237_v10  ;;  %v826_v37 = vld [vmem:[#allocation2 + $0x4c] sm:$0x1] }
  0x27   : > { %6957 = vmatprep.mubr.msk.bf16.mxu0 %vm397_vm0, %v7059_v6  ;;  %909 = vst.msk [vmem:[#allocation3 + $0x60] sm:$0xf] %vm785_vm1, %v10237_v10  ;;  %913 = vst.msk [vmem:[#allocation3 + $0x68] sm:$0xf] %vm785_vm1, %v10237_v10  ;;  %v834_v41 = vld [vmem:[#allocation2 + $0x5c] sm:$0x1] }
  0x28   : > { %547 = vrot.lane.b32.xlu0 %v7061_v8, %s7476_s26  ;;  %917 = vst.msk [vmem:[#allocation3 + $0x70] sm:$0xf] %vm785_vm1, %v10237_v10  ;;  %921 = vst.msk [vmem:[#allocation3 + $0x78] sm:$0xf] %vm785_vm1, %v10237_v10  ;;  %v830_v43 = vld [vmem:[#allocation2 + $0x54] sm:$0x1] }
  0x29   : > { %549 = vrot.lane.b32.xlu1 %v7062_v9, %s7476_s26  ;;  %925 = vst.msk [vmem:[#allocation3 + $0x80] sm:$0xf] %vm785_vm1, %v10237_v10  ;;  %929 = vst.msk [vmem:[#allocation3 + $0x88] sm:$0xf] %vm785_vm1, %v10237_v10  ;;  %v838_v46 = vld [vmem:[#allocation2 + $0x64] sm:$0x1] }
  0x2a   : > { %4755 = vst.msk [vmem:[#allocation4] sm:$0xf] %vm785_vm1, %v10237_v10  ;;  %4758 = vst.msk [vmem:[#allocation4 + $0x8] sm:$0xf] %vm785_vm1, %v10237_v10  ;;  %v842_v48 = vld [vmem:[#allocation2 + $0x6c] sm:$0x1] }
  0x2b   : > { %4760 = vst.msk [vmem:[#allocation4 + $0x10] sm:$0xf] %vm785_vm1, %v10237_v10  ;;  %4762 = vst.msk [vmem:[#allocation4 + $0x18] sm:$0xf] %vm785_vm1, %v10237_v10  ;;  %v850_v50 = vld [vmem:[#allocation2 + $0x7c] sm:$0x1] }
  0x2c   : > { %4764 = vst.msk [vmem:[#allocation4 + $0x20] sm:$0xf] %vm785_vm1, %v10237_v10  ;;  %4766 = vst.msk [vmem:[#allocation4 + $0x28] sm:$0xf] %vm785_vm1, %v10237_v10  ;;  %1427 = vrot.lane.b32.xlu0 %v6343_v15, %s7478_s10  ;;  %v846_v52 = vld [vmem:[#allocation2 + $0x74] sm:$0x1] }
  0x2d   : > { %4768 = vst.msk [vmem:[#allocation4 + $0x30] sm:$0xf] %vm785_vm1, %v10237_v10  ;;  %4770 = vst.msk [vmem:[#allocation4 + $0x38] sm:$0xf] %vm785_vm1, %v10237_v10  ;;  %v854_v54 = vld [vmem:[#allocation2 + $0x84] sm:$0x1] }
  0x2e   : > { %6958 = vmatmul.mubr.msk.bf16.gmra.mrb[8].mxu0 %vm397_vm0, %v7060_v7  ;;  %4772 = vst.msk [vmem:[#allocation4 + $0x40] sm:$0xf] %vm785_vm1, %v10237_v10  ;;  %4774 = vst.msk [vmem:[#allocation4 + $0x48] sm:$0xf] %vm785_vm1, %v10237_v10  ;;  %v7129_v58 = vld [vmem:[%s10231_s3 + $0x8] sm:$0xff]   ;;  %v7131_v60 = vld [vmem:[%s10231_s3 + $0x10] sm:$0xff]  }
  0x2f   : > { %6961 = vmatprep.mubr.msk.bf16.mxu0 %vm397_vm0, %v7061_v8  ;;  %vm7691_vm4 = vmand %vm787_vm2, %vm788_vm3  ;;  %4757 = vst.msk [vmem:[#allocation4 + $0x4] sm:$0x1] %vm787_vm2, %v10237_v10  ;;  %v7130_v59 = vld [vmem:[%s10231_s3 + $0x68] sm:$0xff]   ;;  %v7132_v61 = vld [vmem:[%s10231_s3 + $0x70] sm:$0xff]   ;;  %vm1192_vm6 = vsmask.f32 7938 }
  0x30   : > { %v10299_v12 = vsel %vm7691_vm4, 4294967295, %v10298_v12  ;;  %4759 = vst.msk [vmem:[#allocation4 + $0xc] sm:$0x1] %vm787_vm2, %v10237_v10  ;;  %4761 = vst.msk [vmem:[#allocation4 + $0x14] sm:$0x1] %vm787_vm2, %v10237_v10  ;;  %v791_v14 = vsel %vm7691_vm4, 0, %v790_v11  ;;  %2903 = vmatpush1.bf16.msra.mxu0 %v7130_v59 }
  0x31   : > { %10300 = vst [vmem:[#allocation8_spill] sm:$0xff] %v10299_v12  ;;  %4763 = vst.msk [vmem:[#allocation4 + $0x1c] sm:$0x1] %vm787_vm2, %v10237_v10  ;;  %v795_v17 = vsel %vm7691_vm4, 0, %v794_v16  ;;  %v803_v19 = vsel %vm7691_vm4, 0, %v802_v18  ;;  %v799_v21 = vsel %vm7691_vm4, 0, %v798_v20  ;;  %2904 = vmatprep.subr.bf16.mxu0 %v10237_v10 }
  0x32   : > { %4765 = vst.msk [vmem:[#allocation4 + $0x24] sm:$0x1] %vm787_vm2, %v10237_v10  ;;  %4767 = vst.msk [vmem:[#allocation4 + $0x2c] sm:$0x1] %vm787_vm2, %v10237_v10  ;;  %v807_v23 = vsel %vm7691_vm4, 0, %v806_v22  ;;  %v811_v26 = vsel %vm7691_vm4, 0, %v810_v25 }
  0x33   : > { %4769 = vst.msk [vmem:[#allocation4 + $0x34] sm:$0x1] %vm787_vm2, %v10237_v10  ;;  %4771 = vst.msk [vmem:[#allocation4 + $0x3c] sm:$0x1] %vm787_vm2, %v10237_v10  ;;  %v819_v30 = vsel %vm7691_vm4, 0, %v818_v29  ;;  %v815_v33 = vsel %vm7691_vm4, 0, %v814_v31 }
  0x34   : > { %4773 = vst.msk [vmem:[#allocation4 + $0x44] sm:$0x1] %vm787_vm2, %v10237_v10  ;;  %4775 = vst.msk [vmem:[#allocation4 + $0x4c] sm:$0x1] %vm787_vm2, %v10237_v10  ;;  %v823_v36 = vsel %vm7691_vm4, 0, %v822_v35  ;;  %v827_v39 = vsel %vm7691_vm4, 0, %v826_v37  ;;  %2905 = vmatpush1.bf16.msra.mxu0 %v7132_v61 }
  0x35   : > { %792 = vst [vmem:[#allocation2 + $0x4] sm:$0x1] %v791_v14  ;;  %796 = vst [vmem:[#allocation2 + $0xc] sm:$0x1] %v795_v17  ;;  %v835_v42 = vsel %vm7691_vm4, 0, %v834_v41  ;;  %v831_v45 = vsel %vm7691_vm4, 0, %v830_v43  ;;  %2906 = vmatprep.subr.bf16.mxu0 %v10237_v10 }
  0x36   : > { %6962 = vmatmul.mubr.msk.bf16.gmra.mrb[12].mxu0 %vm397_vm0, %v7062_v9  ;;  %804 = vst [vmem:[#allocation2 + $0x1c] sm:$0x1] %v803_v19  ;;  %800 = vst [vmem:[#allocation2 + $0x14] sm:$0x1] %v799_v21  ;;  %v839_v47 = vsel %vm7691_vm4, 0, %v838_v46  ;;  %v843_v49 = vsel %vm7691_vm4, 0, %v842_v48 }
  0x37   : > { %808 = vst [vmem:[#allocation2 + $0x24] sm:$0x1] %v807_v23  ;;  %812 = vst [vmem:[#allocation2 + $0x2c] sm:$0x1] %v811_v26  ;;  %v851_v51 = vsel %vm7691_vm4, 0, %v850_v50  ;;  %v847_v53 = vsel %vm7691_vm4, 0, %v846_v52 }
  0x38   : > { %820 = vst [vmem:[#allocation2 + $0x3c] sm:$0x1] %v819_v30  ;;  %816 = vst [vmem:[#allocation2 + $0x34] sm:$0x1] %v815_v33  ;;  %v855_v55 = vsel %vm7691_vm4, 0, %v854_v54  ;;  %v7133_v62 = vld [vmem:[%s10231_s3 + $0x18] sm:$0xff]  }
  0x39   : > { %824 = vst [vmem:[#allocation2 + $0x44] sm:$0x1] %v823_v36  ;;  %828 = vst [vmem:[#allocation2 + $0x4c] sm:$0x1] %v827_v39  ;;  %v7134_v63 = vld [vmem:[%s10231_s3 + $0x78] sm:$0xff]   ;;  %v7135_v0 = vld [vmem:[%s10231_s3 + $0x20] sm:$0xff]  }
  0x3a   : > { %836 = vst [vmem:[#allocation2 + $0x5c] sm:$0x1] %v835_v42  ;;  %832 = vst [vmem:[#allocation2 + $0x54] sm:$0x1] %v831_v45  ;;  %2907 = vmatpush1.bf16.msra.mxu0 %v7134_v63  ;;  %v874_v1 = vld [vmem:[#allocation3 + $0x1c] sm:$0x1] }
  0x3b   : > { %840 = vst [vmem:[#allocation2 + $0x64] sm:$0x1] %v839_v47  ;;  %844 = vst [vmem:[#allocation2 + $0x6c] sm:$0x1] %v843_v49  ;;  %2908 = vmatprep.subr.bf16.mxu0 %v10237_v10  ;;  %v7136_v2 = vld [vmem:[%s10231_s3 + $0x80] sm:$0xff]   ;;  %v875_v3 = vsel %vm7691_vm4, 0, %v874_v1 }
  0x3c   : > { %852 = vst [vmem:[#allocation2 + $0x7c] sm:$0x1] %v851_v51  ;;  %848 = vst [vmem:[#allocation2 + $0x74] sm:$0x1] %v847_v53  ;;  %v866_v4 = vld [vmem:[#allocation3 + $0xc] sm:$0x1] }
  0x3d   : > { %856 = vst [vmem:[#allocation2 + $0x84] sm:$0x1] %v855_v55  ;;  %876 = vst [vmem:[#allocation3 + $0x1c] sm:$0x1] %v875_v3  ;;  %v867_v5 = vsel %vm7691_vm4, 0, %v866_v4  ;;  %v7137_v7 = vld [vmem:[%s10231_s3 + $0x28] sm:$0xff]  }
  0x3e   : > { %v878_v6 = vld [vmem:[#allocation3 + $0x24] sm:$0x1]  ;;  %2909 = vmatpush1.bf16.msra.mxu0 %v7136_v2  ;;  %868 = vst [vmem:[#allocation3 + $0xc] sm:$0x1] %v867_v5  ;;  %v870_v9 = vld [vmem:[#allocation3 + $0x14] sm:$0x1]  ;;  %vm8084_vm7 = vmand %vm785_vm1, %vm1192_vm6 }
  0x3f   : > { %v879_v8 = vsel %vm7691_vm4, 0, %v878_v6  ;;  %2910 = vmatprep.subr.bf16.mxu0 %v10237_v10  ;;  %v871_v11 = vsel %vm7691_vm4, 0, %v870_v9  ;;  %v7138_v14 = vld [vmem:[%s10231_s3 + $0x88] sm:$0xff]   ;;  %v7810_v15 = vld [vmem:[%s10230_s2] ss:$0 sm:$0xff]  ;;  %v7141_v33 = vld [vmem:[%s10231_s3 + $0x90] sm:$0xff]  }
  0x40   : > { %880 = vst [vmem:[#allocation3 + $0x24] sm:$0x1] %v879_v8  ;;  %872 = vst [vmem:[#allocation3 + $0x14] sm:$0x1] %v871_v11  ;;  %v882_v19 = vld [vmem:[#allocation3 + $0x2c] sm:$0x1] }
  0x41   : > { %v883_v22 = vsel %vm7691_vm4, 0, %v882_v19  ;;  %v890_v31 = vld [vmem:[#allocation3 + $0x3c] sm:$0x1]  ;;  %v886_v41 = vld [vmem:[#allocation3 + $0x34] sm:$0x1]  ;;  %v7145_v42 = vld [vmem:[%s10231_s3 + $0x98] sm:$0xff]  }
  0x42   : > { %2911 = vmatpush1.bf16.msra.mxu0 %v7138_v14  ;;  %884 = vst [vmem:[#allocation3 + $0x2c] sm:$0x1] %v883_v22  ;;  %v891_v36 = vsel %vm7691_vm4, 0, %v890_v31  ;;  %v887_v46 = vsel %vm7691_vm4, 0, %v886_v41  ;;  %v7146_v51 = vld [vmem:[%s10231_s3 + $0x40] sm:$0xff]   ;;  %v7150_v14 = vld [vmem:[%s10231_s3 + $0x48] sm:$0xff]  }
  0x43   : > { %2912 = vmatprep.subr.bf16.mxu0 %v10237_v10  ;;  %892 = vst [vmem:[#allocation3 + $0x3c] sm:$0x1] %v891_v36  ;;  %888 = vst [vmem:[#allocation3 + $0x34] sm:$0x1] %v887_v46  ;;  %v898_v57 = vld [vmem:[#allocation3 + $0x4c] sm:$0x1] }
  0x44   : > { %v7149_v6 = vld [vmem:[%s10231_s3 + $0xa0] sm:$0xff]   ;;  %s6899_s25 = sshll.u32 %s7583_s21, 7  ;;  %s304_s21 = sand.u32 1, %s7466_s28  }
  0x45   : > { %v7360_v12 = vld [vmem:[#allocation2] sm:$0xf]  ;;  %s10094_s12 = scalar_lea.vmem %s10235_s7, %s6899_s25  ;;  %s6295_s18 = sshll.u32 %s304_s21, 6 }
  0x46   : > { %2913 = vmatpush1.bf16.msra.mxu0 %v7141_v33  ;;  %s10166_s19 = scalar_lea.vmem [#allocation5], %s6295_s18  ;;  %s10177_s25 = scalar_lea.hbm %s10236_s8, %s6924_s20 }
  0x47   : > { %2914 = vmatprep.subr.bf16.mxu0 %v10237_v10  ;;  %s6204_s22 = sshll.u32 %s10166_s19, 4  ;;  %s10187_s9 = scalar_lea.sflag [#allocation6], %s304_s21  ;;  %s10179_s22 = int_to_ptr.vmem [resolvable:$true] %s6204_s22 }
  0x48   : > { %s7412_s26 = scalar_lea.vmem %s10179_s22, 1024 }
  0x49   : > { %p7413_p11 = scmp.ne.s32.totalorder %s10179_s22, %s7412_s26 }
  0x4a   : > { %2915 = vmatpush1.bf16.msra.mxu0 %v7145_v42 }
  0x4b   : > { %2916 = vmatprep.subr.bf16.mxu0 %v10237_v10  ;;  %p7414_p12 = pnand %p7413_p11, %p7565_p5 }
  0x4d   : > { %p7415_p13 = pneg %p7414_p12 }
  0x4e   : > { %2917 = vmatpush1.bf16.msra.mxu0 %v7149_v6 }
  0x4f   : > { %2918 = vmatprep.subr.bf16.mxu0 %v10237_v10 }
  0x8e   : > { %v536_v24 = vpop.permute.xlu0 %535 }
  0x8f   : > { %6969 = vmatprep.mubr.msk.bf16.mxu1 %vm397_vm0, %v536_v24  ;;  %v540_v28 = vpop.permute.xlu1 %539 }
  0x92   : > { %v538_v27 = vpop.permute.xlu0 %537 }
  0x93   : > { %6970 = vmatmul.mubr.msk.bf16.vlgmr.msra.gmra.mrb[0].mxu1 %vm397_vm0, %v538_v27  ;;  %v542_v32 = vpop.permute.xlu1 %541 }
  0x94   : > { %6973 = vmatprep.mubr.msk.bf16.mxu1 %vm397_vm0, %v540_v28  ;;  %3118 = vmatpush1.bf16.msra.mxu1 %v7127_v56  ;;  %v7139_v28 = vld [vmem:[%s10231_s3 + $0x30] sm:$0xff]  }
  0x95   : > { %3119 = vmatprep.subr.bf16.mxu1 %v10237_v10 }
  0x96   : > { %v544_v34 = vpop.permute.xlu0 %543 }
  0x97   : > { %v546_v38 = vpop.permute.xlu1 %545 }
  0x98   : > { %3120 = vmatpush1.bf16.msra.mxu1 %v7129_v58 }
  0x99   : > { %3121 = vmatprep.subr.bf16.mxu1 %v10237_v10 }
  0x9a   : > { %v548_v40 = vpop.permute.xlu0 %547 }
  0x9b   : > { %6974 = vmatmul.mubr.msk.bf16.gmra.mrb[4].mxu1 %vm397_vm0, %v542_v32  ;;  %v550_v44 = vpop.permute.xlu1 %549  ;;  %v862_v32 = vld [vmem:[#allocation3 + $0x4] sm:$0x1] }
  0x9c   : > { %6977 = vmatprep.mubr.msk.bf16.mxu1 %vm397_vm0, %v544_v34  ;;  %3122 = vmatpush1.bf16.msra.mxu1 %v7131_v60  ;;  %v863_v37 = vsel %vm7691_vm4, 0, %v862_v32  ;;  %v899_v60 = vsel %vm7691_vm4, 0, %v898_v57 }
  0x9d   : > { %3123 = vmatprep.subr.bf16.mxu1 %v10237_v10  ;;  %864 = vst [vmem:[#allocation3 + $0x4] sm:$0x1] %v863_v37  ;;  %900 = vst [vmem:[#allocation3 + $0x4c] sm:$0x1] %v899_v60 }
  0xa0   : > { %3124 = vmatpush1.bf16.msra.mxu1 %v7133_v62 }
  0xa1   : > { %3125 = vmatprep.subr.bf16.mxu1 %v10237_v10 }
  0xa3   : > { %6978 = vmatmul.mubr.msk.bf16.gmra.mrb[8].mxu1 %vm397_vm0, %v546_v38  ;;  %v7142_v38 = vld [vmem:[%s10231_s3 + $0x38] sm:$0xff]  }
  0xa4   : > { %6981 = vmatprep.mubr.msk.bf16.mxu1 %vm397_vm0, %v548_v40  ;;  %3126 = vmatpush1.bf16.msra.mxu1 %v7135_v0  ;;  %v894_v40 = vld [vmem:[#allocation3 + $0x44] sm:$0x1] }
  0xa5   : > { %3127 = vmatprep.subr.bf16.mxu1 %v10237_v10  ;;  %v895_v45 = vsel %vm7691_vm4, 0, %v894_v40 }
  0xa6   : > { %896 = vst [vmem:[#allocation3 + $0x44] sm:$0x1] %v895_v45  ;;  %v7153_v45 = vld [vmem:[%s10231_s3 + $0xa8] sm:$0xff]  }
  0xa7   : > { %2919 = vmatpush1.bf16.msra.mxu0 %v7153_v45 }
  0xa8   : > { %3128 = vmatpush1.bf16.msra.mxu1 %v7137_v7  ;;  %2920 = vmatprep.subr.bf16.mxu0 %v10237_v10 }
  0xa9   : > { %3129 = vmatprep.subr.bf16.mxu1 %v10237_v10 }
  0xab   : > { %6982 = vmatmul.mubr.msk.bf16.gmra.mrb[12].mxu1 %vm397_vm0, %v550_v44 }
  0xac   : > { %3130 = vmatpush1.bf16.msra.mxu1 %v7139_v28 }
  0xad   : > { %3131 = vmatprep.subr.bf16.mxu1 %v10237_v10 }
  0xb0   : > { %3132 = vmatpush1.bf16.msra.mxu1 %v7142_v38 }
  0xb1   : > { %3133 = vmatprep.subr.bf16.mxu1 %v10237_v10 }
  0xb4   : > { %3134 = vmatpush1.bf16.msra.mxu1 %v7146_v51 }
  0xb5   : > { %3135 = vmatprep.subr.bf16.mxu1 %v10237_v10 }
  0xb8   : > { %3136 = vmatpush1.bf16.msra.mxu1 %v7150_v14 }
  0xb9   : > { %3137 = vmatprep.subr.bf16.mxu1 %v10237_v10 }
  0xf1   : > { %v6951_v16 = vpop.f32.mrb[0].mxu0 }
  0xf2   : > { %v465_v17 = vadd.f32 %v6951_v16, %v7810_v15  ;;  %v456_v18 = vpop.f32.mrb[1].mxu0 }
  0xf3   : > { %v457_v20 = vadd.f32 %v7810_v15, %v456_v18  ;;  %v6952_v21 = vpop.f32.mrb[2].mxu0 }
  0xf4   : > { %v7817_v23 = vmax.f32 %v465_v17, 0.0  ;;  %v468_v24 = vadd.f32 %v6952_v21, %v7810_v15  ;;  %v459_v25 = vpop.f32.mrb[3].mxu0 }
  0xf5   : > { %v7820_v26 = vmax.f32 %v457_v20, 0.0  ;;  %v460_v27 = vadd.f32 %v7810_v15, %v459_v25 }
  0xf6   : > { %10301 = vst [vmem:[#allocation9_spill] sm:$0xff] %v7817_v23  ;;  %v935_v29 = vpack.c.bf16 %v7817_v23, %v7817_v23  ;;  %v7828_v30 = vmax.f32 %v468_v24, 0.0 }
  0xf7   : > { %10302 = vst [vmem:[#allocation10_spill] sm:$0xff] %v7820_v26  ;;  %v933_v34 = vpack.c.bf16 %v7820_v26, %v7820_v26  ;;  %v7835_v35 = vmax.f32 %v460_v27, 0.0 }
  0xf8   : > { %10303 = vst [vmem:[#allocation11_spill] sm:$0xff] %v7828_v30  ;;  %952 = vst.msk [vmem:[#allocation2 + $0x18] sm:$0xf] %vm785_vm1, %v935_v29  ;;  %v936_v39 = vpack.c.bf16 %v7828_v30, %v7828_v30 }
  0xf9   : > { %10304 = vst [vmem:[#allocation12_spill] sm:$0xff] %v7835_v35  ;;  %950 = vst.msk [vmem:[#allocation2 + $0x8] sm:$0xf] %vm785_vm1, %v933_v34  ;;  %v934_v43 = vpack.c.bf16 %v7835_v35, %v7835_v35  ;;  %v6955_v44 = vpop.f32.mrb[4].mxu0  ;;  %v1242_v35 = vld [vmem:[#allocation3 + $0x48] sm:$0xf] }
  0xfa   : > { %953 = vst.msk [vmem:[#allocation2 + $0x20] sm:$0xf] %vm785_vm1, %v936_v39  ;;  %v481_v47 = vadd.f32 %v6955_v44, %v7810_v15  ;;  %v472_v48 = vpop.f32.mrb[5].mxu0 }
  0xfb   : > { %951 = vst.msk [vmem:[#allocation2 + $0x10] sm:$0xf] %vm785_vm1, %v934_v43  ;;  %v473_v49 = vadd.f32 %v7810_v15, %v472_v48  ;;  %v6956_v50 = vpop.f32.mrb[6].mxu0 }
  0xfc   : > { %v7866_v52 = vmax.f32 %v481_v47, 0.0  ;;  %v484_v53 = vadd.f32 %v6956_v50, %v7810_v15  ;;  %v475_v54 = vpop.f32.mrb[7].mxu0  ;;  %v7154_v47 = vld [vmem:[%s10231_s3 + $0x50] sm:$0xff]  }
  0xfd   : > { %v7870_v55 = vmax.f32 %v473_v49, 0.0  ;;  %v476_v56 = vadd.f32 %v7810_v15, %v475_v54  ;;  %3138 = vmatpush1.bf16.msra.mxu1 %v7154_v47 }
  0xfe   : > { %10305 = vst [vmem:[#allocation13_spill] sm:$0xff] %v7866_v52  ;;  %v939_v58 = vpack.c.bf16 %v7866_v52, %v7866_v52  ;;  %v7876_v59 = vmax.f32 %v484_v53, 0.0  ;;  %3139 = vmatprep.subr.bf16.mxu1 %v10237_v10 }
  0xff   : > { %10306 = vst [vmem:[#allocation14_spill] sm:$0xff] %v7870_v55  ;;  %v937_v61 = vpack.c.bf16 %v7870_v55, %v7870_v55  ;;  %v7882_v62 = vmax.f32 %v476_v56, 0.0  ;;  %v2062_v2 = vld [vmem:[#allocation2 + $0x18] sm:$0xf]  ;;  %v7157_v56 = vld [vmem:[%s10231_s3 + $0xb0] sm:$0xff]  }
 0x100   : > { %10307 = vst [vmem:[#allocation15_spill] sm:$0xff] %v7876_v59  ;;  %956 = vst.msk [vmem:[#allocation2 + $0x38] sm:$0xf] %vm785_vm1, %v939_v58  ;;  %v7885_v63 = vld [vmem:[#allocation2 + $0x8] sm:$0xf]  ;;  %v940_v1 = vpack.c.bf16 %v7876_v59, %v7876_v59  ;;  %v6417_v9 = vcombine.low %v2062_v2, %v2062_v2  ;;  %v7158_v58 = vld [vmem:[%s10231_s3 + $0x58] sm:$0xff]   ;;  %2921 = vmatpush1.bf16.msra.mxu0 %v7157_v56 }
 0x101   : > { %10308 = vst [vmem:[#allocation16_spill] sm:$0xff] %v7882_v62  ;;  %v7887_v0 = vld [vmem:[#allocation2 + $0x8] sm:$0xf]  ;;  %954 = vst.msk [vmem:[#allocation2 + $0x28] sm:$0xf] %vm785_vm1, %v937_v61  ;;  %v6415_v3 = vcombine.low %v7885_v63, %v7885_v63  ;;  %v6959_v5 = vpop.f32.mrb[8].mxu0  ;;  %v938_v7 = vpack.c.bf16 %v7882_v62, %v7882_v62  ;;  %3140 = vmatpush1.bf16.msra.mxu1 %v7158_v58  ;;  %2922 = vmatprep.subr.bf16.mxu0 %v10237_v10 }
 0x102   : > { %v6344_v4 = vcombine.low %v7887_v0, %v7887_v0  ;;  %957 = vst.msk [vmem:[#allocation2 + $0x40] sm:$0xf] %vm785_vm1, %v940_v1  ;;  %v7903_v8 = vld [vmem:[#allocation2 + $0x10] sm:$0xf]  ;;  %v488_v11 = vpop.f32.mrb[9].mxu0  ;;  %v497_v27 = vadd.f32 %v6959_v5, %v7810_v15  ;;  %3407 = vmatprep.subr.bf16.mxu1 %v10237_v10 }
 0x103   : > { %2172 = vrot.lane.b32.xlu0 %v6415_v3, %s7478_s10  ;;  %955 = vst.msk [vmem:[#allocation2 + $0x30] sm:$0xf] %vm785_vm1, %v938_v7  ;;  %v6416_v16 = vcombine.low %v7903_v8, %v7903_v8  ;;  %v1317_v17 = vld [vmem:[#allocation2 + $0x10] sm:$0xf]  ;;  %v1318_v18 = vld [vmem:[#allocation2 + $0x18] sm:$0xf]  ;;  %v489_v28 = vadd.f32 %v7810_v15, %v488_v11 }
 0x104   : > { %1429 = vrot.lane.b32.xlu1 %v6344_v4, %s7478_s10  ;;  %v6960_v19 = vpop.f32.mrb[10].mxu0  ;;  %v6345_v21 = vcombine.low %v1317_v17, %v1317_v17  ;;  %v6346_v22 = vcombine.low %v1318_v18, %v1318_v18  ;;  %v1319_v24 = vld [vmem:[#allocation2 + $0x20] sm:$0xf]  ;;  %v7919_v31 = vmax.f32 %v497_v27, 0.0 }
 0x105   : > { %v491_v20 = vpop.f32.mrb[11].mxu0  ;;  %v2063_v25 = vld [vmem:[#allocation2 + $0x20] sm:$0xf]  ;;  %v6347_v33 = vcombine.low %v1319_v24, %v1319_v24  ;;  %v7923_v36 = vmax.f32 %v489_v28, 0.0  ;;  %v500_v40 = vadd.f32 %v6960_v19, %v7810_v15 }
 0x106   : > { %10309 = vst [vmem:[#allocation17_spill] sm:$0xff] %v7919_v31  ;;  %v6418_v34 = vcombine.low %v2063_v25, %v2063_v25  ;;  %v943_v37 = vpack.c.bf16 %v7919_v31, %v7919_v31  ;;  %v492_v43 = vadd.f32 %v7810_v15, %v491_v20 }
 0x107   : > { %2176 = vrot.lane.b32.xlu0 %v6417_v9, %s7478_s10  ;;  %10310 = vst [vmem:[#allocation18_spill] sm:$0xff] %v7923_v36  ;;  %v941_v42 = vpack.c.bf16 %v7923_v36, %v7923_v36  ;;  %v7935_v46 = vmax.f32 %v500_v40, 0.0  ;;  %v2066_v53 = vld [vmem:[#allocation2 + $0x38] sm:$0xf] }
 0x108   : > { %2174 = vrot.lane.b32.xlu1 %v6416_v16, %s7478_s10  ;;  %v2064_v38 = vld [vmem:[#allocation2 + $0x28] sm:$0xf]  ;;  %960 = vst.msk [vmem:[#allocation2 + $0x58] sm:$0xf] %vm785_vm1, %v943_v37  ;;  %v7943_v50 = vmax.f32 %v492_v43, 0.0  ;;  %v6421_v60 = vcombine.low %v2066_v53, %v2066_v53 }
 0x109   : > { %v6963_v29 = vpop.f32.mrb[12].mxu0  ;;  %v1320_v39 = vld [vmem:[#allocation2 + $0x28] sm:$0xf]  ;;  %10311 = vst [vmem:[#allocation19_spill] sm:$0xff] %v7935_v46  ;;  %958 = vst.msk [vmem:[#allocation2 + $0x48] sm:$0xf] %vm785_vm1, %v941_v42  ;;  %v6419_v48 = vcombine.low %v2064_v38, %v2064_v38  ;;  %v944_v51 = vpack.c.bf16 %v7935_v46, %v7935_v46 }
 0x10a   : > { %v504_v32 = vpop.f32.mrb[13].mxu0  ;;  %v6348_v49 = vcombine.low %v1320_v39, %v1320_v39  ;;  %10312 = vst [vmem:[#allocation20_spill] sm:$0xff] %v7943_v50  ;;  %v2065_v54 = vld [vmem:[#allocation2 + $0x30] sm:$0xf]  ;;  %v942_v57 = vpack.c.bf16 %v7943_v50, %v7943_v50  ;;  %v1322_v2 = vld [vmem:[#allocation2 + $0x38] sm:$0xf]  ;;  %v513_v3 = vadd.f32 %v6963_v29, %v7810_v15 }
 0x10b   : > { %1431 = vrot.lane.b32.xlu0 %v6345_v21, %s7478_s10  ;;  %v6964_v41 = vpop.f32.mrb[14].mxu0  ;;  %961 = vst.msk [vmem:[#allocation2 + $0x60] sm:$0xf] %vm785_vm1, %v944_v51  ;;  %v6420_v61 = vcombine.low %v2065_v54, %v2065_v54  ;;  %v1321_v1 = vld [vmem:[#allocation2 + $0x30] sm:$0xf]  ;;  %v505_v4 = vadd.f32 %v7810_v15, %v504_v32  ;;  %v6350_v6 = vcombine.low %v1322_v2, %v1322_v2  ;;  %v7161_v32 = vld [vmem:[%s10231_s3 + $0xb8] sm:$0xff]  }
 0x10c   : > { %1433 = vrot.lane.b32.xlu1 %v6346_v22, %s7478_s10  ;;  %v507_v44 = vpop.f32.mrb[15].mxu0  ;;  %959 = vst.msk [vmem:[#allocation2 + $0x50] sm:$0xf] %vm785_vm1, %v942_v57  ;;  %v6349_v5 = vcombine.low %v1321_v1, %v1321_v1  ;;  %v7967_v7 = vmax.f32 %v513_v3, 0.0  ;;  %v1323_v9 = vld [vmem:[#allocation2 + $0x40] sm:$0xf]  ;;  %v516_v17 = vadd.f32 %v6964_v41, %v7810_v15  ;;  %2923 = vmatpush1.bf16.msra.mxu0 %v7161_v32 }
 0x10d   : > { %v2067_v11 = vld [vmem:[#allocation2 + $0x40] sm:$0xf]  ;;  %v7969_v14 = vmax.f32 %v505_v4, 0.0  ;;  %v508_v19 = vadd.f32 %v7810_v15, %v507_v44  ;;  %v6351_v20 = vcombine.low %v1323_v9, %v1323_v9  ;;  %3262 = vmatprep.subr.bf16.mxu0 %v10237_v10  ;;  %v1363_v51 = vld [vmem:[#allocation3 + $0x4] sm:$0x1] }
 0x10e   : > { %10313 = vst [vmem:[#allocation21_spill] sm:$0xff] %v7967_v7  ;;  %v947_v16 = vpack.c.bf16 %v7967_v7, %v7967_v7  ;;  %v6422_v21 = vcombine.low %v2067_v11, %v2067_v11  ;;  %v7980_v22 = vmax.f32 %v516_v17, 0.0  ;;  %v910_v53 = vld [vmem:[#allocation3 + $0x64] sm:$0x1]  ;;  %v902_v54 = vld [vmem:[#allocation3 + $0x54] sm:$0x1] }
 0x10f   : > { %1435 = vrot.lane.b32.xlu0 %v6347_v33, %s7478_s10  ;;  %10314 = vst [vmem:[#allocation22_spill] sm:$0xff] %v7969_v14  ;;  %v945_v18 = vpack.c.bf16 %v7969_v14, %v7969_v14  ;;  %v7983_v27 = vmax.f32 %v508_v19, 0.0  ;;  %v2070_v37 = vld [vmem:[#allocation2 + $0x58] sm:$0xf]  ;;  %v926_v3 = vld [vmem:[#allocation3 + $0x84] sm:$0x1] }
 0x110   : > { %2178 = vrot.lane.b32.xlu1 %v6418_v34, %s7478_s10  ;;  %964 = vst.msk [vmem:[#allocation2 + $0x78] sm:$0xf] %vm785_vm1, %v947_v16  ;;  %10315 = vst [vmem:[#allocation23_spill] sm:$0xff] %v7980_v22  ;;  %v2068_v24 = vld [vmem:[#allocation2 + $0x48] sm:$0xf]  ;;  %v948_v28 = vpack.c.bf16 %v7980_v22, %v7980_v22  ;;  %v6425_v39 = vcombine.low %v2070_v37, %v2070_v37  ;;  %v911_v4 = vsel %vm7691_vm4, 0, %v910_v53 }
 0x111   : > { %962 = vst.msk [vmem:[#allocation2 + $0x68] sm:$0xf] %vm785_vm1, %v945_v18  ;;  %v1324_v25 = vld [vmem:[#allocation2 + $0x48] sm:$0xf]  ;;  %10316 = vst [vmem:[#allocation24_spill] sm:$0xff] %v7983_v27  ;;  %v946_v29 = vpack.c.bf16 %v7983_v27, %v7983_v27  ;;  %v6423_v33 = vcombine.low %v2068_v24, %v2068_v24  ;;  %v927_v18 = vsel %vm7691_vm4, 0, %v926_v3 }
 0x112   : > { %v6352_v34 = vcombine.low %v1324_v25, %v1324_v25  ;;  %965 = vst.msk [vmem:[#allocation2 + $0x80] sm:$0xf] %vm785_vm1, %v948_v28  ;;  %v1326_v42 = vld [vmem:[#allocation2 + $0x58] sm:$0xf]  ;;  %v1327_v45 = vld [vmem:[#allocation2 + $0x60] sm:$0xf] }
 0x113   : > { %2180 = vrot.lane.b32.xlu0 %v6419_v48, %s7478_s10  ;;  %963 = vst.msk [vmem:[#allocation2 + $0x70] sm:$0xf] %vm785_vm1, %v946_v29  ;;  %v2069_v38 = vld [vmem:[#allocation2 + $0x50] sm:$0xf]  ;;  %v6354_v44 = vcombine.low %v1326_v42, %v1326_v42  ;;  %v2071_v47 = vld [vmem:[#allocation2 + $0x60] sm:$0xf]  ;;  %v6355_v56 = vcombine.low %v1327_v45, %v1327_v45 }
 0x114   : > { %1437 = vrot.lane.b32.xlu1 %v6348_v49, %s7478_s10  ;;  %v6424_v40 = vcombine.low %v2069_v38, %v2069_v38  ;;  %v1325_v41 = vld [vmem:[#allocation2 + $0x50] sm:$0xf]  ;;  %v906_v49 = vld [vmem:[#allocation3 + $0x5c] sm:$0x1]  ;;  %v6426_v57 = vcombine.low %v2071_v47, %v2071_v47  ;;  %912 = vst [vmem:[#allocation3 + $0x64] sm:$0x1] %v911_v4 }
 0x115   : > { %v6353_v43 = vcombine.low %v1325_v41, %v1325_v41  ;;  %v8001_v48 = vld [vmem:[#allocation3] sm:$0xf]  ;;  %v907_v2 = vsel %vm7691_vm4, 0, %v906_v49  ;;  %v918_v19 = vld [vmem:[#allocation3 + $0x74] sm:$0x1] }
 0x116   : > { %908 = vst [vmem:[#allocation3 + $0x5c] sm:$0x1] %v907_v2  ;;  %928 = vst [vmem:[#allocation3 + $0x84] sm:$0x1] %v927_v18  ;;  %v919_v24 = vsel %vm7691_vm4, 0, %v918_v19 }
 0x117   : > { %2184 = vrot.lane.b32.xlu0 %v6421_v60, %s7478_s10  ;;  %v922_v60 = vld [vmem:[#allocation3 + $0x7c] sm:$0x1]  ;;  %920 = vst [vmem:[#allocation3 + $0x74] sm:$0x1] %v919_v24  ;;  %v1331_v45 = vld [vmem:[#allocation2 + $0x4] sm:$0x1] }
 0x118   : > { %2182 = vrot.lane.b32.xlu1 %v6420_v61, %s7478_s10  ;;  %v2072_v58 = vld [vmem:[#allocation2 + $0x68] sm:$0xf]  ;;  %v914_v61 = vld [vmem:[#allocation3 + $0x6c] sm:$0x1]  ;;  %v923_v9 = vsel %vm7691_vm4, 0, %v922_v60  ;;  %v6375_v53 = vcombine.low %v7695_v13, %v1331_v45 }
 0x119   : > { %v1328_v1 = vld [vmem:[#allocation2 + $0x68] sm:$0xf]  ;;  %v6427_v11 = vcombine.low %v2072_v58, %v2072_v58  ;;  %924 = vst [vmem:[#allocation3 + $0x7c] sm:$0x1] %v923_v9  ;;  %v915_v17 = vsel %vm7691_vm4, 0, %v914_v61 }
 0x11a   : > { %v6356_v16 = vcombine.low %v1328_v1, %v1328_v1  ;;  %916 = vst [vmem:[#allocation3 + $0x6c] sm:$0x1] %v915_v17  ;;  %v1329_v32 = vld [vmem:[#allocation2 + $0x70] sm:$0xf]  ;;  %v1332_v47 = vld [vmem:[#allocation2 + $0xc] sm:$0x1] }
 0x11b   : > { %1439 = vrot.lane.b32.xlu0 %v6349_v5, %s7478_s10  ;;  %v6359_v5 = vcombine.low %v8001_v48, %v1363_v51  ;;  %v2076_v49 = vld [vmem:[#allocation2 + $0xc] sm:$0x1]  ;;  %v2077_v51 = vld [vmem:[#allocation2 + $0x14] sm:$0x1]  ;;  %v1830_v58 = vshll.u32 %v6375_v53, 16  ;;  %v1828_v2 = vshrl.u32 %v6375_v53, 16 }
 0x11c   : > { %1441 = vrot.lane.b32.xlu1 %v6350_v6, %s7478_s10  ;;  %v903_v6 = vsel %vm7691_vm4, 0, %v902_v54  ;;  %v6376_v54 = vcombine.low %v7887_v0, %v1332_v47 }
 0x11d   : > { %904 = vst [vmem:[#allocation3 + $0x54] sm:$0x1] %v903_v6  ;;  %v1542_v29 = vshll.u32 %v6359_v5, 16  ;;  %v1540_v38 = vshrl.u32 %v6359_v5, 16  ;;  %v1832_v3 = vrot.slane %v1830_v58, 1 }
 0x11e   : > { %v1837_v60 = vshll.u32 %v6376_v54, 16  ;;  %v1835_v4 = vshrl.u32 %v6376_v54, 16 }
 0x11f   : > { %1443 = vrot.lane.b32.xlu0 %v6351_v20, %s7478_s10  ;;  %v2074_v20 = vld [vmem:[#allocation2 + $0x78] sm:$0xf] }
 0x120   : > { %2186 = vrot.lane.b32.xlu1 %v6422_v21, %s7478_s10  ;;  %v2073_v21 = vld [vmem:[#allocation2 + $0x70] sm:$0xf]  ;;  %v6429_v25 = vcombine.low %v2074_v20, %v2074_v20  ;;  %v1839_v5 = vrot.slane %v1837_v60, 1 }
 0x121   : > { %v6428_v28 = vcombine.low %v2073_v21, %v2073_v21 }
 0x122   : > { %v8043_v19 = vor.u32 %v1839_v5, %v1835_v4 }
 0x123   : > { %2188 = vrot.lane.b32.xlu0 %v6423_v33, %s7478_s10  ;;  %v1330_v33 = vld [vmem:[#allocation2 + $0x78] sm:$0xf] }
 0x124   : > { %1445 = vrot.lane.b32.xlu1 %v6352_v34, %s7478_s10  ;;  %v6357_v34 = vcombine.low %v1329_v32, %v1329_v32  ;;  %v6358_v37 = vcombine.low %v1330_v33, %v1330_v33  ;;  %v930_v33 = vld [vmem:[#allocation3 + $0x8c] sm:$0x1] }
 0x127   : > { %2192 = vrot.lane.b32.xlu0 %v6425_v39, %s7478_s10  ;;  %v1544_v39 = vrot.slane %v1542_v29, 1 }
 0x128   : > { %2190 = vrot.lane.b32.xlu1 %v6424_v40, %s7478_s10  ;;  %v2075_v40 = vld [vmem:[#allocation2 + $0x80] sm:$0xf] }
 0x129   : > { %v6430_v41 = vcombine.low %v2075_v40, %v2075_v40  ;;  %v8028_v42 = vor.u32 %v1544_v39, %v1540_v38  ;;  %v1428_v38 = vpop.permute.xlu0 %1427  ;;  %v8059_v39 = vld [vmem:[#allocation2 + $0x10] sm:$0xf]  ;;  %v931_v40 = vsel %vm7691_vm4, 0, %v930_v33 }
 0x12a   : > { %932 = vst [vmem:[#allocation3 + $0x8c] sm:$0x1] %v931_v40 }
 0x12b   : > { %1447 = vrot.lane.b32.xlu0 %v6353_v43, %s7478_s10  ;;  %v858_v43 = vld [vmem:[#allocation2 + $0x8c] sm:$0x1] }
 0x12c   : > { %1449 = vrot.lane.b32.xlu1 %v6354_v44, %s7478_s10  ;;  %v859_v44 = vsel %vm7691_vm4, 0, %v858_v43 }
 0x12d   : > { %860 = vst [vmem:[#allocation2 + $0x8c] sm:$0x1] %v859_v44  ;;  %v8069_v44 = vsel %vm752_vm5, %v8001_v48, %v1428_v38 }
 0x12f   : > { %1451 = vrot.lane.b32.xlu0 %v6355_v56, %s7478_s10  ;;  %v6447_v56 = vcombine.low %v7885_v63, %v2076_v49 }
 0x130   : > { %2194 = vrot.lane.b32.xlu1 %v6426_v57, %s7478_s10  ;;  %v6448_v57 = vcombine.low %v7903_v8, %v2077_v51  ;;  %v8041_v8 = vor.u32 %v1832_v3, %v1828_v2  ;;  %v1194_v2 = vld [vmem:[#allocation3 + $0x8] sm:$0xf] }
 0x131   : > { %v2575_v61 = vshll.u32 %v6447_v56, 16  ;;  %v2573_v6 = vshrl.u32 %v6447_v56, 16  ;;  %v1206_v56 = vld [vmem:[#allocation3 + $0x18] sm:$0xf] }
 0x132   : > { %v2582_v1 = vshll.u32 %v6448_v57, 16 }
 0x133   : > { %2196 = vrot.lane.b32.xlu0 %v6427_v11, %s7478_s10  ;;  %v2577_v9 = vrot.slane %v2575_v61, 1  ;;  %v2580_v11 = vshrl.u32 %v6448_v57, 16  ;;  %v1209_v57 = vld [vmem:[#allocation3 + $0x1c] sm:$0x1] }
 0x134   : > { %1453 = vrot.lane.b32.xlu1 %v6356_v16, %s7478_s10  ;;  %v2584_v16 = vrot.slane %v2582_v1, 1 }
 0x137   : > { %2200 = vrot.lane.b32.xlu0 %v6429_v25, %s7478_s10  ;;  %v8048_v25 = vor.u32 %v2577_v9, %v2573_v6  ;;  %v10321_v9 = vmov 0 }
 0x138   : > { %2198 = vrot.lane.b32.xlu1 %v6428_v28, %s7478_s10  ;;  %v8050_v28 = vor.u32 %v2584_v16, %v2580_v11  ;;  %v10322_v9 = vsel %vm8084_vm7, 4294967295, %v10321_v9  ;;  %v1197_v16 = vld [vmem:[#allocation3 + $0xc] sm:$0x1] }
 0x139   : > { %10323 = vst [vmem:[#allocation29_spill] sm:$0xff] %v10322_v9 }
 0x13b   : > { %1455 = vrot.lane.b32.xlu0 %v6357_v34, %s7478_s10 }
 0x13c   : > { %1457 = vrot.lane.b32.xlu1 %v6358_v37, %s7478_s10 }
 0x13f   : > { %1747 = vrot.lane.b32.xlu0 %v8028_v42, %s7478_s10 }
 0x140   : > { %2202 = vrot.lane.b32.xlu1 %v6430_v41, %s7478_s10 }
 0x166   : > { %v6971_v17 = vpop.f32.mrb[0].mxu1 }
 0x167   : > { %v618_v13 = vadd.f32 %v6971_v17, %v7810_v15  ;;  %v609_v0 = vpop.f32.mrb[1].mxu1 }
 0x168   : > { %v610_v63 = vadd.f32 %v7810_v15, %v609_v0  ;;  %v6972_v18 = vpop.f32.mrb[2].mxu1 }
 0x169   : > { %v8045_v20 = vmax.f32 %v618_v13, 0.0  ;;  %v621_v21 = vadd.f32 %v6972_v18, %v7810_v15  ;;  %v612_v24 = vpop.f32.mrb[3].mxu1 }
 0x16a   : > { %v8052_v29 = vmax.f32 %v610_v63, 0.0  ;;  %v613_v32 = vadd.f32 %v7810_v15, %v612_v24 }
 0x16b   : > { %10317 = vst [vmem:[#allocation25_spill] sm:$0xff] %v8045_v20  ;;  %v6902_v34 = vpack.c.bf16 %v8045_v20, %v8045_v20  ;;  %v8057_v37 = vmax.f32 %v621_v21, 0.0 }
 0x16c   : > { %10318 = vst [vmem:[#allocation26_spill] sm:$0xff] %v8052_v29  ;;  %v6900_v41 = vpack.c.bf16 %v8052_v29, %v8052_v29  ;;  %v8065_v43 = vmax.f32 %v613_v32, 0.0  ;;  %v1212_v32 = vld [vmem:[#allocation3 + $0x20] sm:$0xf]  ;;  %v1338_v29 = vld [vmem:[#allocation2 + $0x3c] sm:$0x1] }
 0x16d   : > { %10319 = vst [vmem:[#allocation27_spill] sm:$0xff] %v8057_v37  ;;  %v1047_v47 = vshrl.u32 %v6902_v34, 16  ;;  %v6903_v49 = vpack.c.bf16 %v8057_v37, %v8057_v37  ;;  %v1050_v54 = vshll.u32 %v6902_v34, 16 }
 0x16e   : > { %10320 = vst [vmem:[#allocation28_spill] sm:$0xff] %v8065_v43  ;;  %v1031_v58 = vshrl.u32 %v6900_v41, 16  ;;  %v1034_v48 = vshll.u32 %v6900_v41, 16  ;;  %v6901_v60 = vpack.c.bf16 %v8065_v43, %v8065_v43  ;;  %v6975_v61 = vpop.f32.mrb[4].mxu1  ;;  %v1215_v41 = vld [vmem:[#allocation3 + $0x24] sm:$0x1] }
 0x16f   : > { %v1049_v1 = vrot.slane %v1047_v47, 7  ;;  %v1055_v3 = vshrl.u32 %v6903_v49, 16  ;;  %v1058_v4 = vshll.u32 %v6903_v49, 16  ;;  %v634_v5 = vadd.f32 %v6975_v61, %v7810_v15  ;;  %v625_v6 = vpop.f32.mrb[5].mxu1 }
 0x170   : > { %v1033_v11 = vrot.slane %v1031_v58, 7  ;;  %v1039_v17 = vshrl.u32 %v6901_v60, 16  ;;  %v1042_v13 = vshll.u32 %v6901_v60, 16  ;;  %v626_v0 = vadd.f32 %v7810_v15, %v625_v6  ;;  %v6976_v63 = vpop.f32.mrb[6].mxu1 }
 0x171   : > { %v1052_v18 = vor.u32 %v1050_v54, %v1049_v1  ;;  %v1053_v21 = vrot.slane %v1049_v1, 4  ;;  %v1057_v24 = vrot.slane %v1055_v3, 7  ;;  %v8089_v33 = vmax.f32 %v634_v5, 0.0  ;;  %v628_v34 = vpop.f32.mrb[7].mxu1  ;;  %v1200_v1 = vld [vmem:[#allocation3 + $0x10] sm:$0xf] }
 0x172   : > { %v1036_v38 = vor.u32 %v1034_v48, %v1033_v11  ;;  %v1037_v40 = vrot.slane %v1033_v11, 4  ;;  %v1041_v47 = vrot.slane %v1039_v17, 7  ;;  %v8091_v49 = vmax.f32 %v626_v0, 0.0  ;;  %v1203_v3 = vld [vmem:[#allocation3 + $0x14] sm:$0x1] }
 0x173   : > { %10324 = vst [vmem:[#allocation30_spill] sm:$0xff] %v8089_v33  ;;  %v1207_v58 = vsel %vm8084_vm7, %v1052_v18, %v1206_v56  ;;  %v1210_v60 = vsel %vm7691_vm4, %v1053_v21, %v1209_v57  ;;  %v1060_v61 = vor.u32 %v1058_v4, %v1057_v24  ;;  %v1061_v54 = vrot.slane %v1057_v24, 4 }
 0x174   : > { %10325 = vst [vmem:[#allocation31_spill] sm:$0xff] %v8091_v49  ;;  %1208 = vst [vmem:[#allocation3 + $0x18] sm:$0xf] %v1207_v58  ;;  %v1195_v48 = vsel %vm8084_vm7, %v1036_v38, %v1194_v2  ;;  %v1198_v5 = vsel %vm7691_vm4, %v1037_v40, %v1197_v16  ;;  %v1044_v6 = vor.u32 %v1042_v13, %v1041_v47  ;;  %v1045_v11 = vrot.slane %v1041_v47, 4  ;;  %v3594_v38 = vld [vmem:[#allocation3 + $0x8c] sm:$0x1] }
 0x175   : > { %1211 = vst [vmem:[#allocation3 + $0x1c] sm:$0x1] %v1210_v60  ;;  %1196 = vst [vmem:[#allocation3 + $0x8] sm:$0xf] %v1195_v48  ;;  %v1213_v56 = vsel %vm8084_vm7, %v1060_v61, %v1212_v32  ;;  %v1216_v57 = vsel %vm7691_vm4, %v1061_v54, %v1215_v41  ;;  %v6906_v4 = vpack.c.bf16 %v8089_v33, %v8089_v33  ;;  %v8109_v2 = vpop.permute.xlu0 %2172  ;;  %v3578_v32 = vld [vmem:[#allocation3 + $0x88] sm:$0xf] }
 0x176   : > { %1199 = vst [vmem:[#allocation3 + $0xc] sm:$0x1] %v1198_v5  ;;  %v6904_v17 = vpack.c.bf16 %v8091_v49, %v8091_v49  ;;  %v8111_v0 = vpop.permute.xlu1 %1429  ;;  %1214 = vst [vmem:[#allocation3 + $0x20] sm:$0xf] %v1213_v56  ;;  %v1201_v16 = vsel %vm8084_vm7, %v1044_v6, %v1200_v1  ;;  %v1204_v13 = vsel %vm7691_vm4, %v1045_v11, %v1203_v3  ;;  %v6979_v24 = vpop.f32.mrb[8].mxu1 }
 0x177   : > { %1217 = vst [vmem:[#allocation3 + $0x24] sm:$0x1] %v1216_v57  ;;  %v637_v18 = vadd.f32 %v6976_v63, %v7810_v15  ;;  %v629_v21 = vadd.f32 %v7810_v15, %v628_v34  ;;  %1202 = vst [vmem:[#allocation3 + $0x10] sm:$0xf] %v1201_v16  ;;  %v1079_v40 = vshrl.u32 %v6906_v4, 16  ;;  %v1082_v41 = vshll.u32 %v6906_v4, 16 }
 0x178   : > { %1205 = vst [vmem:[#allocation3 + $0x14] sm:$0x1] %v1204_v13  ;;  %v1063_v47 = vshrl.u32 %v6904_v17, 16  ;;  %v1066_v58 = vshll.u32 %v6904_v17, 16  ;;  %v641_v60 = vpop.f32.mrb[9].mxu1  ;;  %v650_v3 = vadd.f32 %v6979_v24, %v7810_v15  ;;  %v8132_v17 = vcombine.low %v3578_v32, %v3594_v38 }
 0x179   : > { %v1230_v61 = vld [vmem:[#allocation3 + $0x38] sm:$0xf]  ;;  %v8119_v54 = vmax.f32 %v637_v18, 0.0  ;;  %v8121_v1 = vmax.f32 %v629_v21, 0.0  ;;  %v642_v63 = vadd.f32 %v7810_v15, %v641_v60  ;;  %v6980_v34 = vpop.f32.mrb[10].mxu1  ;;  %v1081_v48 = vrot.slane %v1079_v40, 7  ;;  %v8125_v56 = vpop.permute.xlu0 %2176 }
 0x17a   : > { %v1065_v5 = vrot.slane %v1063_v47, 7  ;;  %v1218_v6 = vld [vmem:[#allocation3 + $0x28] sm:$0xf]  ;;  %v1221_v11 = vld [vmem:[#allocation3 + $0x2c] sm:$0x1]  ;;  %v8127_v57 = vpop.permute.xlu1 %2174  ;;  %v8130_v4 = vadd.f32 %v6980_v34, %v7810_v15  ;;  %v8138_v21 = vmax.f32 %v650_v3, 0.0 }
 0x17b   : > { %10326 = vst [vmem:[#allocation32_spill] sm:$0xff] %v8119_v54  ;;  %10327 = vst [vmem:[#allocation33_spill] sm:$0xff] %v8121_v1  ;;  %v1233_v16 = vld [vmem:[#allocation3 + $0x3c] sm:$0x1]  ;;  %v6907_v13 = vpack.c.bf16 %v8119_v54, %v8119_v54  ;;  %v6905_v18 = vpack.c.bf16 %v8121_v1, %v8121_v1  ;;  %v8140_v24 = vmax.f32 %v642_v63, 0.0  ;;  %v8142_v40 = vpop.f32.mrb[11].mxu1  ;;  %v1084_v47 = vor.u32 %v1082_v41, %v1081_v48 }
 0x17c   : > { %10328 = vst [vmem:[#allocation34_spill] sm:$0xff] %v8138_v21  ;;  %v1085_v60 = vrot.slane %v1081_v48, 4  ;;  %v1068_v45 = vor.u32 %v1066_v58, %v1065_v5  ;;  %v1069_v34 = vrot.slane %v1065_v5, 4  ;;  %v2092_v10 = vld [vmem:[#allocation3 + $0x8] sm:$0xf] }
 0x17d   : > { %10329 = vst [vmem:[#allocation35_spill] sm:$0xff] %v8140_v24  ;;  %v1087_v51 = vshrl.u32 %v6907_v13, 16  ;;  %v1090_v32 = vshll.u32 %v6907_v13, 16  ;;  %v1071_v38 = vshrl.u32 %v6905_v18, 16  ;;  %v1074_v53 = vshll.u32 %v6905_v18, 16  ;;  %v8152_v18 = vpop.permute.xlu0 %1431 }
 0x17e   : > { %v1231_v22 = vsel %vm8084_vm7, %v1084_v47, %v1230_v61  ;;  %v1234_v3 = vsel %vm7691_vm4, %v1085_v60, %v1233_v16  ;;  %v1219_v63 = vsel %vm8084_vm7, %v1068_v45, %v1218_v6  ;;  %v1222_v41 = vsel %vm7691_vm4, %v1069_v34, %v1221_v11  ;;  %v1236_v48 = vld [vmem:[#allocation3 + $0x40] sm:$0xf]  ;;  %v1239_v58 = vld [vmem:[#allocation3 + $0x44] sm:$0x1]  ;;  %v1224_v5 = vld [vmem:[#allocation3 + $0x30] sm:$0xf]  ;;  %v8154_v7 = vpop.permute.xlu1 %1433 }
 0x17f   : > { %v2108_v27 = vld [vmem:[#allocation3 + $0xc] sm:$0x1]  ;;  %v1348_v13 = vld [vmem:[#allocation3 + $0x8] sm:$0xf]  ;;  %1232 = vst [vmem:[#allocation3 + $0x38] sm:$0xf] %v1231_v22  ;;  %v8160_v11 = vsel %vm752_vm5, %v2092_v10, %v8109_v2  ;;  %v6910_v22 = vpack.c.bf16 %v8138_v21, %v8138_v21 }
 0x180   : > { %v1364_v46 = vld [vmem:[#allocation3 + $0xc] sm:$0x1]  ;;  %1235 = vst [vmem:[#allocation3 + $0x3c] sm:$0x1] %v1234_v3  ;;  %1220 = vst [vmem:[#allocation3 + $0x28] sm:$0xf] %v1219_v63  ;;  %v8156_v6 = vcombine.low %v2092_v10, %v2108_v27  ;;  %v8166_v34 = vsel %vm752_vm5, %v1348_v13, %v8111_v0 }
 0x181   : > { %1223 = vst [vmem:[#allocation3 + $0x2c] sm:$0x1] %v1222_v41  ;;  %v1089_v61 = vrot.slane %v1087_v51, 7  ;;  %v1073_v16 = vrot.slane %v1071_v38, 7  ;;  %v1227_v45 = vld [vmem:[#allocation3 + $0x34] sm:$0x1]  ;;  %v8162_v60 = vcombine.low %v1348_v13, %v1364_v46  ;;  %v6908_v51 = vpack.c.bf16 %v8140_v24, %v8140_v24  ;;  %v8174_v62 = vpop.permute.xlu0 %1435 }
 0x182   : > { %v2094_v47 = vld [vmem:[#allocation3 + $0x18] sm:$0xf]  ;;  %v2110_v38 = vld [vmem:[#allocation3 + $0x1c] sm:$0x1]  ;;  %v2093_v27 = vld [vmem:[#allocation3 + $0x10] sm:$0xf]  ;;  %v8176_v36 = vpop.permute.xlu1 %2178 }
 0x183   : > { %v2109_v3 = vld [vmem:[#allocation3 + $0x14] sm:$0x1]  ;;  %v1092_v63 = vor.u32 %v1090_v32, %v1089_v61  ;;  %v1093_v41 = vrot.slane %v1089_v61, 4  ;;  %v1076_v10 = vor.u32 %v1074_v53, %v1073_v16  ;;  %v1077_v2 = vrot.slane %v1073_v16, 4  ;;  %v1349_v50 = vld [vmem:[#allocation3 + $0x10] sm:$0xf] }
 0x184   : > { %v6983_v46 = vpop.f32.mrb[12].mxu1  ;;  %v1111_v0 = vshrl.u32 %v6910_v22, 16  ;;  %v1114_v13 = vshll.u32 %v6910_v22, 16  ;;  %v1095_v59 = vshrl.u32 %v6908_v51, 16  ;;  %v1365_v31 = vld [vmem:[#allocation3 + $0x14] sm:$0x1]  ;;  %v8186_v55 = vcombine.low %v2094_v47, %v2110_v38 }
 0x185   : > { %v1237_v30 = vsel %vm8084_vm7, %v1092_v63, %v1236_v48  ;;  %v1240_v53 = vsel %vm7691_vm4, %v1093_v41, %v1239_v58  ;;  %v1225_v32 = vsel %vm8084_vm7, %v1076_v10, %v1224_v5  ;;  %v1228_v61 = vsel %vm7691_vm4, %v1077_v2, %v1227_v45  ;;  %v1254_v16 = vld [vmem:[#allocation3 + $0x58] sm:$0xf]  ;;  %v8188_v48 = vpop.f32.mrb[13].mxu1  ;;  %v1257_v58 = vld [vmem:[#allocation3 + $0x5c] sm:$0x1] }
 0x186   : > { %1238 = vst [vmem:[#allocation3 + $0x40] sm:$0xf] %v1237_v30  ;;  %1241 = vst [vmem:[#allocation3 + $0x44] sm:$0x1] %v1240_v53  ;;  %v1113_v22 = vrot.slane %v1111_v0, 7  ;;  %v1097_v14 = vrot.slane %v1095_v59, 7  ;;  %v8192_v5 = vsel %vm752_vm5, %v2094_v47, %v8125_v56  ;;  %v8194_v45 = vcombine.low %v2093_v27, %v2109_v3 }
 0x187   : > { %1226 = vst [vmem:[#allocation3 + $0x30] sm:$0xf] %v1225_v32  ;;  %1229 = vst [vmem:[#allocation3 + $0x34] sm:$0x1] %v1228_v61  ;;  %v1098_v52 = vshll.u32 %v6908_v51, 16  ;;  %v8198_v30 = vsel %vm752_vm5, %v2093_v27, %v8127_v57  ;;  %v6361_v41 = vcombine.low %v1349_v50, %v1365_v31  ;;  %v8200_v59 = vpop.f32.mrb[14].mxu1  ;;  %v8202_v32 = vpop.permute.xlu0 %2180  ;;  %v8222_v56 = vsel %vm752_vm5, %v1349_v50, %v8152_v18 }
 0x188   : > { %v1245_v63 = vld [vmem:[#allocation3 + $0x4c] sm:$0x1]  ;;  %v1116_v51 = vor.u32 %v1114_v13, %v1113_v22  ;;  %v1117_v38 = vrot.slane %v1113_v22, 4  ;;  %v1101_v2 = vrot.slane %v1097_v14, 4  ;;  %v1350_v0 = vld [vmem:[#allocation3 + $0x18] sm:$0xf]  ;;  %v8204_v61 = vpop.permute.xlu1 %1437 }
 0x189   : > { %v1100_v10 = vor.u32 %v1098_v52, %v1097_v14  ;;  %v1366_v53 = vld [vmem:[#allocation3 + $0x1c] sm:$0x1]  ;;  %v2294_v47 = vshll.u32 %v8194_v45, 16  ;;  %v1554_v31 = vshrl.u32 %v6361_v41, 16  ;;  %v8210_v27 = vpop.f32.mrb[15].mxu1  ;;  %v1556_v57 = vshll.u32 %v6361_v41, 16 }
 0x18a   : > { %v1255_v52 = vsel %vm8084_vm7, %v1116_v51, %v1254_v16  ;;  %v1258_v14 = vsel %vm7691_vm4, %v1117_v38, %v1257_v58  ;;  %v1246_v13 = vsel %vm7691_vm4, %v1101_v2, %v1245_v63  ;;  %v6362_v16 = vcombine.low %v1350_v0, %v1366_v53  ;;  %v1351_v51 = vld [vmem:[#allocation3 + $0x20] sm:$0xf]  ;;  %v1367_v23 = vld [vmem:[#allocation3 + $0x24] sm:$0x1]  ;;  %v2096_v1 = vld [vmem:[#allocation3 + $0x28] sm:$0xf] }
 0x18b   : > { %v1243_v3 = vsel %vm8084_vm7, %v1100_v10, %v1242_v35  ;;  %1256 = vst [vmem:[#allocation3 + $0x58] sm:$0xf] %v1255_v52  ;;  %1259 = vst [vmem:[#allocation3 + $0x5c] sm:$0x1] %v1258_v14  ;;  %v2296_v22 = vrot.slane %v2294_v47, 1  ;;  %v8226_v58 = vsel %vm752_vm5, %v1350_v0, %v8154_v7  ;;  %v8229_v35 = vmax.f32 %v8130_v4, 0.0  ;;  %v8234_v2 = vpop.permute.xlu0 %2184 }
 0x18c   : > { %1244 = vst [vmem:[#allocation3 + $0x48] sm:$0xf] %v1243_v3  ;;  %1247 = vst [vmem:[#allocation3 + $0x4c] sm:$0x1] %v1246_v13  ;;  %v645_v63 = vadd.f32 %v7810_v15, %v8142_v40  ;;  %v666_v38 = vadd.f32 %v6983_v46, %v7810_v15  ;;  %v2095_v41 = vld [vmem:[#allocation3 + $0x20] sm:$0xf]  ;;  %v8236_v50 = vpop.permute.xlu1 %2182  ;;  %v8246_v15 = vcombine.low %v1351_v51, %v1367_v23 }
 0x18d   : > { %10330 = vst [vmem:[#allocation36_spill] sm:$0xff] %v8229_v35  ;;  %v2111_v10 = vld [vmem:[#allocation3 + $0x24] sm:$0x1]  ;;  %v1558_v18 = vrot.slane %v1556_v57, 1  ;;  %v1561_v53 = vshrl.u32 %v6362_v16, 16  ;;  %v1563_v47 = vshll.u32 %v6362_v16, 16  ;;  %v6911_v4 = vpack.c.bf16 %v8229_v35, %v8229_v35 }
 0x18e   : > { %v8242_v0 = vmax.f32 %v645_v63, 0.0  ;;  %v8244_v40 = vmax.f32 %v666_v38, 0.0  ;;  %v8252_v57 = vsel %vm752_vm5, %v1351_v51, %v8174_v62  ;;  %v8254_v14 = vcombine.low %v2095_v41, %v2111_v10  ;;  %v1263_v35 = vld [vmem:[#allocation3 + $0x64] sm:$0x1]  ;;  %v2112_v33 = vld [vmem:[#allocation3 + $0x2c] sm:$0x1] }
 0x18f   : > { %v8248_v46 = vor.u32 %v1558_v18, %v1554_v31  ;;  %v1565_v52 = vrot.slane %v1563_v47, 1  ;;  %v1119_v3 = vshrl.u32 %v6911_v4, 16  ;;  %v1122_v13 = vshll.u32 %v6911_v4, 16  ;;  %v8260_v38 = vpop.permute.xlu0 %1439  ;;  %v1260_v47 = vld [vmem:[#allocation3 + $0x60] sm:$0xf] }
 0x190   : > { %10331 = vst [vmem:[#allocation37_spill] sm:$0xff] %v8242_v0  ;;  %10332 = vst [vmem:[#allocation38_spill] sm:$0xff] %v8244_v40  ;;  %v6909_v16 = vpack.c.bf16 %v8242_v0, %v8242_v0  ;;  %v6914_v63 = vpack.c.bf16 %v8244_v40, %v8244_v40  ;;  %v8262_v23 = vpop.permute.xlu1 %1441  ;;  %v2308_v62 = vshll.u32 %v8254_v14, 16  ;;  %v8270_v51 = vsel %vm752_vm5, %v2095_v41, %v8176_v36  ;;  %v1248_v40 = vld [vmem:[#allocation3 + $0x50] sm:$0xf] }
 0x191   : > { %v8264_v31 = vor.u32 %v1565_v52, %v1561_v53  ;;  %v1121_v10 = vrot.slane %v1119_v3, 7  ;;  %v1251_v0 = vld [vmem:[#allocation3 + $0x54] sm:$0x1]  ;;  %v8279_v52 = vld [vmem:[%s10230_s2] ss:$0 sm:$0xff]  ;;  %v10334_v53 = vshrl.u32 %v8194_v45, 16 }
 0x192   : > { %v1103_v4 = vshrl.u32 %v6909_v16, 16  ;;  %v1106_v7 = vshll.u32 %v6909_v16, 16  ;;  %v1143_v26 = vshrl.u32 %v6914_v63, 16  ;;  %v1146_v54 = vshll.u32 %v6914_v63, 16  ;;  %v1353_v20 = vld [vmem:[#allocation3 + $0x30] sm:$0xf] }
 0x193   : > { %v8272_v21 = vrot.slane %v2308_v62, 1  ;;  %v658_v36 = vadd.f32 %v8279_v52, %v8188_v48  ;;  %v1124_v41 = vor.u32 %v1122_v13, %v1121_v10  ;;  %v1125_v3 = vrot.slane %v1121_v10, 4  ;;  %v8297_v49 = vpop.permute.xlu0 %1443 }
 0x194   : > { %v1105_v16 = vrot.slane %v1103_v4, 7  ;;  %v1145_v18 = vrot.slane %v1143_v26, 7  ;;  %v2285_v63 = vshrl.u32 %v8156_v6, 16  ;;  %v2287_v62 = vshll.u32 %v8156_v6, 16  ;;  %v8291_v43 = vpop.permute.xlu1 %2186  ;;  %v1278_v4 = vld [vmem:[#allocation3 + $0x78] sm:$0xf] }
 0x195   : > { %v8283_v24 = vmax.f32 %v658_v36, 0.0  ;;  %v8289_v37 = vor.u32 %v2296_v22, %v10334_v53  ;;  %v1261_v48 = vsel %vm8084_vm7, %v1124_v41, %v1260_v47  ;;  %v1264_v26 = vsel %vm7691_vm4, %v1125_v3, %v1263_v35  ;;  %v1281_v36 = vld [vmem:[#allocation3 + $0x7c] sm:$0x1]  ;;  %v1352_v3 = vld [vmem:[#allocation3 + $0x28] sm:$0xf] }
 0x196   : > { %v1108_v13 = vor.u32 %v1106_v7, %v1105_v16  ;;  %v1109_v10 = vrot.slane %v1105_v16, 4  ;;  %1262 = vst [vmem:[#allocation3 + $0x60] sm:$0xf] %v1261_v48  ;;  %1265 = vst [vmem:[#allocation3 + $0x64] sm:$0x1] %v1264_v26  ;;  %v1148_v6 = vor.u32 %v1146_v54, %v1145_v18  ;;  %v1149_v45 = vrot.slane %v1145_v18, 4 }
 0x197   : > { %10333 = vst [vmem:[#allocation39_spill] sm:$0xff] %v8283_v24  ;;  %v6912_v22 = vpack.c.bf16 %v8283_v24, %v8283_v24  ;;  %v2289_v53 = vrot.slane %v2287_v62, 1  ;;  %v6435_v7 = vcombine.low %v2096_v1, %v2112_v33  ;;  %v8307_v41 = vsel %vm752_vm5, %v2096_v1, %v8202_v32  ;;  %v1368_v16 = vld [vmem:[#allocation3 + $0x2c] sm:$0x1] }
 0x198   : > { %v1249_v47 = vsel %vm8084_vm7, %v1108_v13, %v1248_v40  ;;  %v1252_v35 = vsel %vm7691_vm4, %v1109_v10, %v1251_v0  ;;  %v1279_v54 = vsel %vm8084_vm7, %v1148_v6, %v1278_v4  ;;  %v1282_v18 = vsel %vm7691_vm4, %v1149_v45, %v1281_v36  ;;  %v1266_v0 = vld [vmem:[#allocation3 + $0x68] sm:$0xf]  ;;  %v1269_v13 = vld [vmem:[#allocation3 + $0x6c] sm:$0x1]  ;;  %v2098_v36 = vld [vmem:[#allocation3 + $0x38] sm:$0xf]  ;;  %v8321_v6 = vpop.permute.xlu1 %1445 }
 0x199   : > { %1250 = vst [vmem:[#allocation3 + $0x50] sm:$0xf] %v1249_v47  ;;  %1253 = vst [vmem:[#allocation3 + $0x54] sm:$0x1] %v1252_v35  ;;  %v1127_v62 = vshrl.u32 %v6912_v22, 16  ;;  %v1130_v40 = vshll.u32 %v6912_v22, 16  ;;  %v2290_v33 = vor.u32 %v2289_v53, %v2285_v63  ;;  %v8315_v47 = vcombine.low %v1352_v3, %v1368_v16 }
 0x19a   : > { %1280 = vst [vmem:[#allocation3 + $0x78] sm:$0xf] %v1279_v54  ;;  %1283 = vst [vmem:[#allocation3 + $0x7c] sm:$0x1] %v1282_v18  ;;  %v2313_v48 = vshrl.u32 %v6435_v7, 16  ;;  %v2315_v26 = vshll.u32 %v6435_v7, 16  ;;  %v8319_v4 = vsel %vm752_vm5, %v1352_v3, %v8204_v61  ;;  %v8328_v7 = vpop.permute.xlu0 %2188 }
 0x19b   : > { %v1547_v1 = vshrl.u32 %v8162_v60, 16  ;;  %v1129_v32 = vrot.slane %v1127_v62, 7  ;;  %v1549_v10 = vshll.u32 %v8162_v60, 16  ;;  %v6464_v45 = vcombine.low %v2290_v33, %v8289_v37  ;;  %2492 = vrot.lane.b32.xlu0 %v2290_v33, %s7478_s10  ;;  %v2114_v60 = vld [vmem:[#allocation3 + $0x3c] sm:$0x1] }
 0x19c   : > { %v2317_v63 = vrot.slane %v2315_v26, 1  ;;  %v2299_v53 = vshrl.u32 %v8186_v55, 16  ;;  %v2097_v35 = vld [vmem:[#allocation3 + $0x30] sm:$0xf]  ;;  %v1575_v54 = vshrl.u32 %v8315_v47, 16  ;;  %v1577_v33 = vshll.u32 %v8315_v47, 16 }
 0x19d   : > { %v1132_v16 = vor.u32 %v1130_v40, %v1129_v32  ;;  %v1133_v61 = vrot.slane %v1129_v32, 4  ;;  %v1551_v3 = vrot.slane %v1549_v10, 1  ;;  %v2113_v18 = vld [vmem:[#allocation3 + $0x34] sm:$0x1]  ;;  %6491 = vmatprep.mubr.msk.bf16.mxu0 %vm752_vm5, %v6464_v45  ;;  %v2301_v26 = vshll.u32 %v8186_v55, 16 }
 0x19e   : > { %v8331_v62 = vor.u32 %v2317_v63, %v2313_v48  ;;  %v10335_v22 = vshrl.u32 %v8254_v14, 16  ;;  %v1369_v40 = vld [vmem:[#allocation3 + $0x34] sm:$0x1]  ;;  %v8345_v63 = vcombine.low %v2098_v36, %v2114_v60  ;;  %v10336_v47 = vcombine.low %v8160_v11, %v8198_v30  ;;  %v1354_v55 = vld [vmem:[#allocation3 + $0x38] sm:$0xf] }
 0x19f   : > { %v1267_v32 = vsel %vm8084_vm7, %v1132_v16, %v1266_v0  ;;  %v1270_v48 = vsel %vm7691_vm4, %v1133_v61, %v1269_v13  ;;  %v1552_v10 = vor.u32 %v1551_v3, %v1547_v1  ;;  %v1370_v14 = vld [vmem:[#allocation3 + $0x3c] sm:$0x1]  ;;  %v2303_v45 = vrot.slane %v2301_v26, 1  ;;  %v7328_v1 = vld [vmem:[%s10231_s3 + $0x60] sm:$0xff]  }
 0x1a0   : > { %v8339_v24 = vor.u32 %v8272_v21, %v10335_v22  ;;  %2933 = vmatmul.mubr.bf16.vlgmr.msra.gmra.mrb[16].mxu0 %v10336_v47  ;;  %1268 = vst [vmem:[#allocation3 + $0x68] sm:$0xf] %v1267_v32  ;;  %1271 = vst [vmem:[#allocation3 + $0x6c] sm:$0x1] %v1270_v48  ;;  %v1579_v21 = vrot.slane %v1577_v33, 1  ;;  %v8352_v22 = vsel %vm752_vm5, %v2098_v36, %v8234_v2  ;;  %v8365_v2 = vpop.permute.xlu1 %2190  ;;  %v10337_v33 = vmov 0  }
 0x1a1   : > { %v6502_v0 = vcombine.low %v8248_v46, %v8264_v31  ;;  %3263 = vmatpush1.bf16.msra.mxu0 %v7328_v1  ;;  %v6500_v11 = vcombine.low %v8028_v42, %v1552_v10  ;;  %1749 = vrot.lane.b32.xlu1 %v1552_v10, %s7478_s10  ;;  %v6436_v30 = vcombine.low %v2097_v35, %v2113_v18  ;;  %v8373_v42 = vpop.permute.xlu0 %2192  ;;  %v1355_v48 = vld [vmem:[#allocation3 + $0x40] sm:$0xf]  ;;  %v1371_v10 = vld [vmem:[#allocation3 + $0x44] sm:$0x1] }
 0x1a2   : > { %v8363_v13 = vsel %vm752_vm5, %v2097_v35, %v8236_v50  ;;  %v6365_v60 = vcombine.low %v1353_v20, %v1369_v40  ;;  %v2304_v36 = vor.u32 %v2303_v45, %v2299_v53  ;;  %v8371_v61 = vsel %vm752_vm5, %v1353_v20, %v8260_v38  ;;  %3264 = vmatprep.subr.bf16.mxu0 %v10337_v33  ;;  %v2099_v45 = vld [vmem:[#allocation3 + $0x40] sm:$0xf]  ;;  %v2115_v1 = vld [vmem:[#allocation3 + $0x44] sm:$0x1] }
 0x1a3   : > { %v6467_v16 = vcombine.low %v8307_v41, %v8363_v13  ;;  %v6366_v3 = vcombine.low %v1354_v55, %v1370_v14  ;;  %6527 = vmatprep.mubr.msk.bf16.mxu1 %vm752_vm5, %v6500_v11  ;;  %v2320_v50 = vshrl.u32 %v6436_v30, 16  ;;  %v2322_v35 = vshll.u32 %v6436_v30, 16 }
 0x1a4   : > { %v1582_v18 = vshrl.u32 %v6365_v60, 16  ;;  %v1584_v26 = vshll.u32 %v6365_v60, 16  ;;  %v10338_v53 = vcombine.low %v8069_v44, %v8166_v34  ;;  %v6466_v40 = vcombine.low %v2304_v36, %v8339_v24  ;;  %2496 = vrot.lane.b32.xlu0 %v2304_v36, %s7478_s10 }
 0x1a5   : > { %v1589_v20 = vshrl.u32 %v6366_v3, 16  ;;  %v1591_v38 = vshll.u32 %v6366_v3, 16  ;;  %v8384_v32 = vsel %vm752_vm5, %v1354_v55, %v8262_v23  ;;  %2494 = vrot.lane.b32.xlu1 %v8289_v37, %s7478_s10  ;;  %v2324_v47 = vrot.slane %v2322_v35, 1 }
 0x1a6   : > { %3150 = vmatmul.mubr.bf16.vlgmr.msra.gmra.mrb[16].mxu1 %v10338_v53  ;;  %v1586_v44 = vrot.slane %v1584_v26, 1  ;;  %v6505_v34 = vcombine.low %v8371_v61, %v8384_v32  ;;  %v669_v14 = vadd.f32 %v8279_v52, %v8200_v59  ;;  %6492 = vmatprep.mubr.msk.bf16.mxu0 %vm752_vm5, %v6466_v40  ;;  %v1568_v55 = vshrl.u32 %v8246_v15, 16  ;;  %v2116_v26 = vld [vmem:[#allocation3 + $0x4c] sm:$0x1]  ;;  %v2122_v32 = vld [vmem:[#allocation3 + $0x7c] sm:$0x1] }
 0x1a7   : > { %6528 = vmatprep.mubr.msk.bf16.mxu1 %vm752_vm5, %v6502_v0  ;;  %v1593_v23 = vrot.slane %v1591_v38, 1  ;;  %v1570_v11 = vshll.u32 %v8246_v15, 16  ;;  %v8396_v37 = vor.u32 %v1579_v21, %v1575_v54  ;;  %v7329_v0 = vld [vmem:[%s10231_s3] sm:$0xff]   ;;  %v8401_v30 = vor.u32 %v2324_v47, %v2320_v50  ;;  %v8412_v15 = vpop.permute.xlu1 %1449  ;;  %v1372_v38 = vld [vmem:[#allocation3 + $0x4c] sm:$0x1] }
 0x1a8   : > { %3408 = vmatpush1.bf16.msra.mxu1 %v7329_v0  ;;  %v8403_v60 = vor.u32 %v1586_v44, %v1582_v18  ;;  %v8405_v59 = vmax.f32 %v669_v14, 0.0  ;;  %v8407_v36 = vcombine.low %v1355_v48, %v1371_v10  ;;  %v10340_v3 = vcombine.low %v8192_v5, %v8270_v51  ;;  %1751 = vrot.lane.b32.xlu0 %v8248_v46, %s7478_s10  ;;  %v2100_v18 = vld [vmem:[#allocation3 + $0x48] sm:$0xf]  ;;  %v8425_v5 = vpop.permute.xlu0 %1447  ;;  %v7330_v51 = vld [vmem:[%s10231_s3 + $0x68] sm:$0xff]  }
 0x1a9   : > { %3409 = vmatprep.subr.bf16.mxu1 %v10337_v33  ;;  %v8417_v54 = vor.u32 %v1593_v23, %v1589_v20  ;;  %v1572_v21 = vrot.slane %v1570_v11, 1  ;;  %v8421_v50 = vsel %vm752_vm5, %v1355_v48, %v8297_v49  ;;  %v8423_v35 = vcombine.low %v2099_v45, %v2115_v1  ;;  %3265 = vmatpush1.bf16.msra.mxu0 %v7330_v51  ;;  %v1356_v20 = vld [vmem:[#allocation3 + $0x48] sm:$0xf]  ;;  %v1284_v1 = vld [vmem:[#allocation3 + $0x80] sm:$0xf] }
 0x1aa   : > { %10339 = vst [vmem:[#allocation40_spill] sm:$0xff] %v8405_v59  ;;  %2941 = vmatmul.mubr.bf16.gmra.mrb[20].mxu0 %v10340_v3  ;;  %1753 = vrot.lane.b32.xlu1 %v8264_v31, %s7478_s10  ;;  %v6915_v46 = vpack.c.bf16 %v8405_v59, %v8405_v59  ;;  %v8436_v49 = vsel %vm752_vm5, %v2099_v45, %v8291_v43  ;;  %v7331_v43 = vld [vmem:[%s10231_s3 + $0x8] sm:$0xff]   ;;  %v1287_v23 = vld [vmem:[#allocation3 + $0x84] sm:$0x1] }
 0x1ab   : > { %v661_v53 = vadd.f32 %v8279_v52, %v8210_v27  ;;  %v6468_v40 = vcombine.low %v8331_v62, %v8401_v30  ;;  %v1573_v48 = vor.u32 %v1572_v21, %v1568_v55  ;;  %v2334_v10 = vshrl.u32 %v8423_v35, 16  ;;  %3266 = vmatprep.subr.bf16.mxu0 %v10337_v33  ;;  %v8469_v51 = vpop.permute.xlu1 %2194 }
 0x1ac   : > { %v2336_v31 = vshll.u32 %v8423_v35, 16  ;;  %v6469_v47 = vcombine.low %v8352_v22, %v8436_v49  ;;  %3410 = vmatpush1.bf16.msra.mxu1 %v7331_v43  ;;  %v1151_v27 = vshrl.u32 %v6915_v46, 16  ;;  %v1154_v52 = vshll.u32 %v6915_v46, 16  ;;  %v7332_v46 = vld [vmem:[%s10231_s3 + $0x70] sm:$0xff]  }
 0x1ad   : > { %v8450_v44 = vmax.f32 %v661_v53, 0.0  ;;  %6493 = vmatprep.mubr.msk.bf16.mxu0 %vm752_vm5, %v6468_v40  ;;  %v6439_v14 = vcombine.low %v2100_v18, %v2116_v26  ;;  %3411 = vmatprep.subr.bf16.mxu1 %v10337_v33  ;;  %v10342_v45 = vcombine.low %v8222_v56, %v8226_v58  ;;  %v6504_v55 = vcombine.low %v1573_v48, %v8396_v37  ;;  %v2102_v26 = vld [vmem:[#allocation3 + $0x58] sm:$0xf]  ;;  %v2118_v40 = vld [vmem:[#allocation3 + $0x5c] sm:$0x1] }
 0x1ae   : > { %1755 = vrot.lane.b32.xlu0 %v1573_v48, %s7478_s10  ;;  %v2338_v11 = vrot.slane %v2336_v31, 1  ;;  %v8461_v0 = vsel %vm752_vm5, %v2100_v18, %v8328_v7  ;;  %v8463_v3 = vcombine.low %v1356_v20, %v1372_v38  ;;  %v1153_v21 = vrot.slane %v1151_v27, 7  ;;  %2498 = vrot.lane.b32.xlu1 %v8339_v24, %s7478_s10  ;;  %v8482_v38 = vpop.permute.xlu0 %1451  ;;  %v7333_v48 = vld [vmem:[%s10231_s3 + $0x10] sm:$0xff]  }
 0x1af   : > { %10341 = vst [vmem:[#allocation41_spill] sm:$0xff] %v8450_v44  ;;  %3158 = vmatmul.mubr.bf16.gmra.mrb[20].mxu1 %v10342_v45  ;;  %v6913_v56 = vpack.c.bf16 %v8450_v44, %v8450_v44  ;;  %v2341_v58 = vshrl.u32 %v6439_v14, 16  ;;  %v2343_v35 = vshll.u32 %v6439_v14, 16  ;;  %3267 = vmatpush1.bf16.msra.mxu0 %v7332_v46  ;;  %v8479_v24 = vsel %vm752_vm5, %v1356_v20, %v8321_v6  ;;  %v2101_v45 = vld [vmem:[#allocation3 + $0x50] sm:$0xf] }
 0x1b0   : > { %6529 = vmatprep.mubr.msk.bf16.mxu1 %vm752_vm5, %v6504_v55  ;;  %v1603_v7 = vshrl.u32 %v8463_v3, 16  ;;  %v1605_v18 = vshll.u32 %v8463_v3, 16  ;;  %v2327_v53 = vshrl.u32 %v8345_v63, 16  ;;  %3412 = vmatpush1.bf16.msra.mxu1 %v7333_v48  ;;  %v1156_v31 = vor.u32 %v1154_v52, %v1153_v21  ;;  %v1272_v46 = vld [vmem:[#allocation3 + $0x70] sm:$0xf] }
 0x1b1   : > { %v1157_v43 = vrot.slane %v1153_v21, 4  ;;  %v1135_v27 = vshrl.u32 %v6913_v56, 16  ;;  %v1138_v14 = vshll.u32 %v6913_v56, 16  ;;  %3268 = vmatprep.subr.bf16.mxu0 %v10337_v33  ;;  %v2345_v6 = vrot.slane %v2343_v35, 1  ;;  %v2117_v21 = vld [vmem:[#allocation3 + $0x54] sm:$0x1]  ;;  %3413 = vmatprep.subr.bf16.mxu1 %v10337_v33 }
 0x1b2   : > { %2949 = vmatmul.mubr.bf16.gmra.mrb[24].mxu0 %v6467_v16  ;;  %2500 = vrot.lane.b32.xlu0 %v8331_v62, %s7478_s10  ;;  %v8493_v20 = vrot.slane %v1605_v18, 1  ;;  %v6507_v55 = vcombine.low %v8421_v50, %v8479_v24  ;;  %v2329_v52 = vshll.u32 %v8345_v63, 16  ;;  %v1285_v41 = vsel %vm8084_vm7, %v1156_v31, %v1284_v1  ;;  %v1357_v56 = vld [vmem:[#allocation3 + $0x50] sm:$0xf]  ;;  %v1373_v35 = vld [vmem:[#allocation3 + $0x54] sm:$0x1] }
 0x1b3   : > { %v1288_v13 = vsel %vm7691_vm4, %v1157_v43, %v1287_v23  ;;  %v1137_v16 = vrot.slane %v1135_v27, 7  ;;  %1757 = vrot.lane.b32.xlu1 %v8396_v37, %s7478_s10  ;;  %v8505_v62 = vor.u32 %v2338_v11, %v2334_v10  ;;  %v7334_v63 = vld [vmem:[%s10231_s3 + $0x78] sm:$0xff]   ;;  %1286 = vst [vmem:[#allocation3 + $0x80] sm:$0xf] %v1285_v41  ;;  %v1275_v1 = vld [vmem:[#allocation3 + $0x74] sm:$0x1]  ;;  %v8510_v18 = vor.u32 %v2345_v6, %v2341_v58  ;;  %v8524_v27 = vpop.permute.xlu1 %1453  ;;  %v8538_v41 = vpop.permute.xlu0 %2196 }
 0x1b4   : > { %3269 = vmatpush1.bf16.msra.mxu0 %v7334_v63  ;;  %1289 = vst [vmem:[#allocation3 + $0x84] sm:$0x1] %v1288_v13  ;;  %v2331_v23 = vrot.slane %v2329_v52, 1  ;;  %v8512_v48 = vcombine.low %v2102_v26, %v2118_v40  ;;  %v8516_v37 = vsel %vm752_vm5, %v2102_v26, %v8373_v42  ;;  %v7335_v10 = vld [vmem:[%s10231_s3 + $0x18] sm:$0xff]   ;;  %v6506_v58 = vcombine.low %v8403_v60, %v8417_v54  ;;  %v1358_v52 = vld [vmem:[#allocation3 + $0x58] sm:$0xf] }
 0x1b5   : > { %3414 = vmatpush1.bf16.msra.mxu1 %v7335_v10  ;;  %3270 = vmatprep.subr.bf16.mxu0 %v10337_v33  ;;  %v1140_v11 = vor.u32 %v1138_v14, %v1137_v16  ;;  %v1141_v31 = vrot.slane %v1137_v16, 4  ;;  %v6440_v43 = vcombine.low %v2101_v45, %v2117_v21  ;;  %v10343_v42 = vcombine.low %v8252_v57, %v8319_v4  ;;  %v1374_v21 = vld [vmem:[#allocation3 + $0x5c] sm:$0x1]  ;;  %v2103_v10 = vld [vmem:[#allocation3 + $0x60] sm:$0xf] }
 0x1b6   : > { %3415 = vmatprep.subr.bf16.mxu1 %v10337_v33  ;;  %v2332_v26 = vor.u32 %v2331_v23, %v2327_v53  ;;  %v8532_v40 = vsel %vm752_vm5, %v2101_v45, %v8365_v2  ;;  %v6369_v6 = vcombine.low %v1357_v56, %v1373_v35  ;;  %v8536_v14 = vsel %vm752_vm5, %v1357_v56, %v8425_v5  ;;  %v1359_v56 = vld [vmem:[#allocation3 + $0x60] sm:$0xf]  ;;  %v1375_v35 = vld [vmem:[#allocation3 + $0x64] sm:$0x1] }
 0x1b7   : > { %3166 = vmatmul.mubr.bf16.gmra.mrb[24].mxu1 %v10343_v42  ;;  %v1273_v13 = vsel %vm8084_vm7, %v1140_v11, %v1272_v46  ;;  %v1276_v57 = vsel %vm7691_vm4, %v1141_v31, %v1275_v1  ;;  %2502 = vrot.lane.b32.xlu1 %v8401_v30, %s7478_s10  ;;  %v2348_v4 = vshrl.u32 %v6440_v43, 16  ;;  %v2350_v2 = vshll.u32 %v6440_v43, 16  ;;  %v7336_v30 = vld [vmem:[%s10231_s3 + $0x80] sm:$0xff]   ;;  %v2119_v11 = vld [vmem:[#allocation3 + $0x64] sm:$0x1] }
 0x1b8   : > { %6530 = vmatprep.mubr.msk.bf16.mxu1 %vm752_vm5, %v6506_v58  ;;  %1274 = vst [vmem:[#allocation3 + $0x70] sm:$0xf] %v1273_v13  ;;  %1277 = vst [vmem:[#allocation3 + $0x74] sm:$0x1] %v1276_v57  ;;  %v6470_v5 = vcombine.low %v2332_v26, %v8505_v62  ;;  %2504 = vrot.lane.b32.xlu0 %v2332_v26, %s7478_s10  ;;  %v6471_v53 = vcombine.low %v8461_v0, %v8532_v40  ;;  %v1610_v45 = vshrl.u32 %v6369_v6, 16  ;;  %v7337_v31 = vld [vmem:[%s10231_s3 + $0x20] sm:$0xff]  }
 0x1b9   : > { %v1612_v16 = vshll.u32 %v6369_v6, 16  ;;  %3271 = vmatpush1.bf16.msra.mxu0 %v7336_v30  ;;  %v2352_v63 = vrot.slane %v2350_v2, 1  ;;  %v6370_v46 = vcombine.low %v1358_v52, %v1374_v21  ;;  %v8556_v1 = vsel %vm752_vm5, %v1358_v52, %v8412_v15  ;;  %3416 = vmatpush1.bf16.msra.mxu1 %v7337_v31  ;;  %v2104_v26 = vld [vmem:[#allocation3 + $0x68] sm:$0xf]  ;;  %v2120_v6 = vld [vmem:[#allocation3 + $0x6c] sm:$0x1] }
 0x1ba   : > { %v1596_v23 = vshrl.u32 %v8407_v36, 16  ;;  %3272 = vmatprep.subr.bf16.mxu0 %v10337_v33  ;;  %6494 = vmatprep.mubr.msk.bf16.mxu0 %vm752_vm5, %v6470_v5  ;;  %v6509_v43 = vcombine.low %v8536_v14, %v8556_v1  ;;  %v1598_v15 = vshll.u32 %v8407_v36, 16  ;;  %v8570_v42 = vor.u32 %v8493_v20, %v1603_v7  ;;  %v8582_v36 = vpop.permute.xlu1 %2198  ;;  %v7338_v2 = vld [vmem:[%s10231_s3 + $0x88] sm:$0xff]   ;;  %v1360_v5 = vld [vmem:[#allocation3 + $0x68] sm:$0xf] }
 0x1bb   : > { %v1614_v58 = vrot.slane %v1612_v16, 1  ;;  %3417 = vmatprep.subr.bf16.mxu1 %v10337_v33  ;;  %v8573_v52 = vor.u32 %v2352_v63, %v2348_v4  ;;  %1761 = vrot.lane.b32.xlu1 %v8417_v54, %s7478_s10  ;;  %v1617_v21 = vshrl.u32 %v6370_v46, 16  ;;  %v1619_v13 = vshll.u32 %v6370_v46, 16  ;;  %v2201_v4 = vpop.permute.xlu0 %2200  ;;  %v2106_v30 = vld [vmem:[#allocation3 + $0x78] sm:$0xf] }
 0x1bc   : > { %v8577_v57 = vcombine.low %v1359_v56, %v1375_v35  ;;  %2957 = vmatmul.mubr.bf16.gmra.mrb[28].mxu0 %v6469_v47  ;;  %1759 = vrot.lane.b32.xlu0 %v8403_v60, %s7478_s10  ;;  %v1600_v7 = vrot.slane %v1598_v15, 1  ;;  %v8590_v20 = vsel %vm752_vm5, %v1359_v56, %v8482_v38  ;;  %v6442_v54 = vcombine.low %v2103_v10, %v2119_v11  ;;  %v7339_v38 = vld [vmem:[%s10231_s3 + $0x28] sm:$0xff]   ;;  %v1337_v44 = vld [vmem:[#allocation2 + $0x34] sm:$0x1] }
 0x1bd   : > { %v8586_v3 = vor.u32 %v1614_v58, %v1610_v45  ;;  %3273 = vmatpush1.bf16.msra.mxu0 %v7338_v2  ;;  %v1621_v22 = vrot.slane %v1619_v13, 1  ;;  %v8597_v49 = vsel %vm752_vm5, %v2103_v10, %v8469_v51  ;;  %v6472_v60 = vcombine.low %v8510_v18, %v8573_v52  ;;  %v1376_v45 = vld [vmem:[#allocation3 + $0x6c] sm:$0x1]  ;;  %3418 = vmatpush1.bf16.msra.mxu1 %v7339_v38  ;;  %v7347_v14 = vld [vmem:[%s10231_s3 + $0x48] sm:$0xff]  }
 0x1be   : > { %v6443_v47 = vcombine.low %v2104_v26, %v2120_v6  ;;  %3274 = vmatprep.subr.bf16.mxu0 %v10337_v33  ;;  %v1601_v16 = vor.u32 %v1600_v7, %v1596_v23  ;;  %v2362_v51 = vshrl.u32 %v6442_v54, 16  ;;  %v2364_v56 = vshll.u32 %v6442_v54, 16  ;;  %3419 = vmatprep.subr.bf16.mxu1 %v10337_v33  ;;  %v1458_v54 = vpop.permute.xlu1 %1457 }
 0x1bf   : > { %3174 = vmatmul.mubr.bf16.gmra.mrb[28].mxu1 %v6505_v34  ;;  %v6473_v35 = vcombine.low %v8516_v37, %v8597_v49  ;;  %v8611_v63 = vor.u32 %v1621_v22, %v1617_v21  ;;  %2506 = vrot.lane.b32.xlu1 %v8505_v62, %s7478_s10  ;;  %v8618_v61 = vsel %vm752_vm5, %v2104_v26, %v8538_v41  ;;  %v2105_v34 = vld [vmem:[#allocation3 + $0x70] sm:$0xf]  ;;  %v2121_v58 = vld [vmem:[#allocation3 + $0x74] sm:$0x1]  ;;  %v7340_v41 = vld [vmem:[%s10231_s3 + $0x90] sm:$0xff]   ;;  %v2355_v21 = vshrl.u32 %v8512_v48, 16 }
 0x1c0   : > { %6495 = vmatprep.mubr.msk.bf16.mxu0 %vm752_vm5, %v6472_v60  ;;  %v2369_v46 = vshrl.u32 %v6443_v47, 16  ;;  %v2371_v10 = vshll.u32 %v6443_v47, 16  ;;  %v6508_v23 = vcombine.low %v1601_v16, %v8570_v42  ;;  %1763 = vrot.lane.b32.xlu0 %v1601_v16, %s7478_s10  ;;  %v2366_v11 = vrot.slane %v2364_v56, 1  ;;  %v1361_v15 = vld [vmem:[#allocation3 + $0x70] sm:$0xf] }
 0x1c1   : > { %v8622_v31 = vcombine.low %v1360_v5, %v1376_v45  ;;  %v8626_v62 = vsel %vm752_vm5, %v1360_v5, %v8524_v27  ;;  %3275 = vmatpush1.bf16.msra.mxu0 %v7340_v41  ;;  %v2357_v13 = vshll.u32 %v8512_v48, 16  ;;  %v1377_v7 = vld [vmem:[#allocation3 + $0x74] sm:$0x1]  ;;  %v7341_v27 = vld [vmem:[%s10231_s3 + $0x30] sm:$0xff]   ;;  %v8644_v47 = vcombine.low %v2106_v30, %v2122_v32  ;;  %v1456_v48 = vpop.permute.xlu0 %1455  ;;  %v1362_v5 = vld [vmem:[#allocation3 + $0x78] sm:$0xf] }
 0x1c2   : > { %v2373_v26 = vrot.slane %v2371_v10, 1  ;;  %v6511_v6 = vcombine.low %v8590_v20, %v8626_v62  ;;  %3420 = vmatpush1.bf16.msra.mxu1 %v7341_v27  ;;  %3276 = vmatprep.subr.bf16.mxu0 %v10337_v33  ;;  %v8642_v60 = vor.u32 %v2366_v11, %v2362_v51  ;;  %v1378_v45 = vld [vmem:[#allocation3 + $0x7c] sm:$0x1]  ;;  %v8652_v56 = vsel %vm752_vm5, %v2106_v30, %v2201_v4  ;;  %v7342_v4 = vld [vmem:[%s10231_s3 + $0x98] sm:$0xff]   ;;  %v2203_v50 = vpop.permute.xlu1 %2202 }
 0x1c3   : > { %6531 = vmatprep.mubr.msk.bf16.mxu1 %vm752_vm5, %v6508_v23  ;;  %v1631_v2 = vshrl.u32 %v8622_v31, 16  ;;  %v1633_v22 = vshll.u32 %v8622_v31, 16  ;;  %3421 = vmatprep.subr.bf16.mxu1 %v10337_v33  ;;  %v2359_v16 = vrot.slane %v2357_v13, 1  ;;  %v6510_v51 = vcombine.low %v8586_v3, %v8611_v63 }
 0x1c4   : > { %v8647_v38 = vor.u32 %v2373_v26, %v2369_v46  ;;  %1765 = vrot.lane.b32.xlu1 %v8570_v42, %s7478_s10  ;;  %2965 = vmatmul.mubr.bf16.gmra.mrb[32].mxu0 %v6471_v53  ;;  %v6444_v46 = vcombine.low %v2105_v34, %v2121_v58  ;;  %v8663_v32 = vsel %vm752_vm5, %v2105_v34, %v8582_v36  ;;  %v2107_v53 = vld [vmem:[#allocation3 + $0x80] sm:$0xf]  ;;  %v7343_v36 = vld [vmem:[%s10231_s3 + $0x38] sm:$0xff]   ;;  %v2123_v58 = vld [vmem:[#allocation3 + $0x84] sm:$0x1]  ;;  %v1626_v27 = vshll.u32 %v8577_v57, 16 }
 0x1c5   : > { %2508 = vrot.lane.b32.xlu0 %v8510_v18, %s7478_s10  ;;  %v1635_v10 = vrot.slane %v1633_v22, 1  ;;  %v6373_v42 = vcombine.low %v1361_v15, %v1377_v7  ;;  %3277 = vmatpush1.bf16.msra.mxu0 %v7342_v4  ;;  %v2360_v30 = vor.u32 %v2359_v16, %v2355_v21  ;;  %v6475_v0 = vcombine.low %v8618_v61, %v8663_v32  ;;  %v3580_v4 = vld [vmem:[#allocation3 + $0x1c] sm:$0x1]  ;;  %v8982_v61 = vld [vmem:[#allocation2 + $0x30] sm:$0xf] }
 0x1c6   : > { %v8671_v40 = vsel %vm752_vm5, %v1361_v15, %v1456_v48  ;;  %v6374_v18 = vcombine.low %v1362_v5, %v1378_v45  ;;  %3422 = vmatpush1.bf16.msra.mxu1 %v7343_v36  ;;  %v2376_v34 = vshrl.u32 %v6444_v46, 16  ;;  %v2378_v23 = vshll.u32 %v6444_v46, 16  ;;  %3278 = vmatprep.subr.bf16.mxu0 %v10337_v33  ;;  %v3563_v48 = vld [vmem:[#allocation3 + $0x10] sm:$0xf] }
 0x1c7   : > { %3182 = vmatmul.mubr.bf16.gmra.mrb[32].mxu1 %v6507_v55  ;;  %v1638_v11 = vshrl.u32 %v6373_v42, 16  ;;  %v1640_v31 = vshll.u32 %v6373_v42, 16  ;;  %v6474_v15 = vcombine.low %v2360_v30, %v8642_v60  ;;  %v8685_v21 = vsel %vm752_vm5, %v1362_v5, %v1458_v54  ;;  %3423 = vmatprep.subr.bf16.mxu1 %v10337_v33  ;;  %v3579_v5 = vld [vmem:[#allocation3 + $0x14] sm:$0x1]  ;;  %v3564_v42 = vld [vmem:[#allocation3 + $0x18] sm:$0xf] }
 0x1c8   : > { %2510 = vrot.lane.b32.xlu1 %v8573_v52, %s7478_s10  ;;  %6532 = vmatprep.mubr.msk.bf16.mxu1 %vm752_vm5, %v6510_v51  ;;  %v1645_v41 = vshrl.u32 %v6374_v18, 16  ;;  %v1647_v26 = vshll.u32 %v6374_v18, 16  ;;  %v2380_v24 = vrot.slane %v2378_v23, 1  ;;  %v6513_v13 = vcombine.low %v8671_v40, %v8685_v21  ;;  %v7344_v45 = vld [vmem:[%s10231_s3 + $0xa0] sm:$0xff]  }
 0x1c9   : > { %2512 = vrot.lane.b32.xlu0 %v2360_v30, %s7478_s10  ;;  %v1642_v55 = vrot.slane %v1640_v31, 1  ;;  %v1624_v7 = vshrl.u32 %v8577_v57, 16  ;;  %6496 = vmatprep.mubr.msk.bf16.mxu0 %vm752_vm5, %v6474_v15  ;;  %v8694_v22 = vor.u32 %v1635_v10, %v1631_v2  ;;  %v6446_v54 = vcombine.low %v2107_v53, %v2123_v58  ;;  %v3565_v57 = vld [vmem:[#allocation3 + $0x20] sm:$0xf]  ;;  %v7345_v2 = vld [vmem:[%s10231_s3 + $0x40] sm:$0xff]  }
 0x1ca   : > { %v1649_v52 = vrot.slane %v1647_v26, 1  ;;  %3279 = vmatpush1.bf16.msra.mxu0 %v7344_v45  ;;  %v8699_v16 = vor.u32 %v2380_v24, %v2376_v34  ;;  %v8704_v46 = vsel %vm752_vm5, %v2107_v53, %v2203_v50  ;;  %3424 = vmatpush1.bf16.msra.mxu1 %v7345_v2  ;;  %v1628_v30 = vrot.slane %v1626_v27, 1  ;;  %v3581_v53 = vld [vmem:[#allocation3 + $0x24] sm:$0x1]  ;;  %v3566_v31 = vld [vmem:[#allocation3 + $0x28] sm:$0xf] }
 0x1cb   : > { %v8701_v51 = vor.u32 %v1642_v55, %v1638_v11  ;;  %3280 = vmatprep.subr.bf16.mxu0 %v10337_v33  ;;  %v2390_v18 = vshrl.u32 %v6446_v54, 16  ;;  %v2392_v36 = vshll.u32 %v6446_v54, 16  ;;  %v2383_v23 = vshrl.u32 %v8644_v47, 16  ;;  %v3582_v58 = vld [vmem:[#allocation3 + $0x2c] sm:$0x1]  ;;  %3425 = vmatprep.subr.bf16.mxu1 %v10337_v33  ;;  %v7346_v50 = vld [vmem:[%s10231_s3 + $0xa8] sm:$0xff]  }
 0x1cc   : > { %1769 = vrot.lane.b32.xlu1 %v8611_v63, %s7478_s10  ;;  %v8712_v10 = vor.u32 %v1649_v52, %v1645_v41  ;;  %2973 = vmatmul.mubr.bf16.gmra.mrb[36].mxu0 %v6473_v35  ;;  %v6476_v34 = vcombine.low %v8647_v38, %v8699_v16  ;;  %v2385_v63 = vshll.u32 %v8644_v47, 16  ;;  %v6623_v11 = vcombine.low %v3563_v48, %v3579_v5  ;;  %v3567_v15 = vld [vmem:[#allocation3 + $0x30] sm:$0xf]  ;;  %v3568_v26 = vld [vmem:[#allocation3 + $0x38] sm:$0xf] }
 0x1cd   : > { %1767 = vrot.lane.b32.xlu0 %v8586_v3, %s7478_s10  ;;  %v1629_v41 = vor.u32 %v1628_v30, %v1624_v7  ;;  %v2394_v37 = vrot.slane %v2392_v36, 1  ;;  %v6624_v35 = vcombine.low %v3564_v42, %v3580_v4  ;;  %v3583_v3 = vld [vmem:[#allocation3 + $0x34] sm:$0x1]  ;;  %v6625_v7 = vcombine.low %v3565_v57, %v3581_v53  ;;  %v3584_v52 = vld [vmem:[#allocation3 + $0x3c] sm:$0x1] }
 0x1ce   : > { %v6514_v49 = vcombine.low %v8701_v51, %v8712_v10  ;;  %3281 = vmatpush1.bf16.msra.mxu0 %v7346_v50  ;;  %6497 = vmatprep.mubr.msk.bf16.mxu0 %vm752_vm5, %v6476_v34  ;;  %v2387_v47 = vrot.slane %v2385_v63, 1  ;;  %v3756_v24 = vshrl.u32 %v6623_v11, 16  ;;  %v3758_v55 = vshll.u32 %v6623_v11, 16  ;;  %v3569_v45 = vld [vmem:[#allocation3 + $0x40] sm:$0xf] }
 0x1cf   : > { %3190 = vmatmul.mubr.bf16.gmra.mrb[36].mxu1 %v6509_v43  ;;  %v6512_v27 = vcombine.low %v1629_v41, %v8694_v22  ;;  %v8736_v54 = vor.u32 %v2394_v37, %v2390_v18  ;;  %v3763_v48 = vshrl.u32 %v6624_v35, 16  ;;  %v3765_v5 = vshll.u32 %v6624_v35, 16  ;;  %v3585_v42 = vld [vmem:[#allocation3 + $0x44] sm:$0x1]  ;;  %v3570_v36 = vld [vmem:[#allocation3 + $0x48] sm:$0xf]  ;;  %3282 = vmatprep.subr.bf16.mxu0 %v10337_v33 }
 0x1d0   : > { %2514 = vrot.lane.b32.xlu1 %v8642_v60, %s7478_s10  ;;  %3426 = vmatpush1.bf16.msra.mxu1 %v7347_v14  ;;  %v2388_v1 = vor.u32 %v2387_v47, %v2383_v23  ;;  %v3760_v43 = vrot.slane %v3758_v55, 1  ;;  %v3770_v4 = vshrl.u32 %v6625_v7, 16  ;;  %v3772_v57 = vshll.u32 %v6625_v7, 16  ;;  %v3586_v53 = vld [vmem:[#allocation3 + $0x4c] sm:$0x1] }
 0x1d1   : > { %1771 = vrot.lane.b32.xlu0 %v1629_v41, %s7478_s10  ;;  %3427 = vmatprep.subr.bf16.mxu1 %v10337_v33  ;;  %v3767_v60 = vrot.slane %v3765_v5, 1  ;;  %v6626_v2 = vcombine.low %v3566_v31, %v3582_v58  ;;  %v6627_v30 = vcombine.low %v3567_v15, %v3583_v3  ;;  %v6628_v18 = vcombine.low %v3568_v26, %v3584_v52  ;;  %v3571_v41 = vld [vmem:[#allocation3 + $0x50] sm:$0xf]  ;;  %v3572_v37 = vld [vmem:[#allocation3 + $0x58] sm:$0xf]  ;;  %v7348_v31 = vld [vmem:[%s10231_s3 + $0xb0] sm:$0xff]  }
 0x1d2   : > { %6533 = vmatprep.mubr.msk.bf16.mxu1 %vm752_vm5, %v6512_v27  ;;  %v6478_v34 = vcombine.low %v2388_v1, %v8736_v54  ;;  %v8746_v63 = vor.u32 %v3760_v43, %v3756_v24  ;;  %v3774_v23 = vrot.slane %v3772_v57, 1  ;;  %v8748_v11 = vcombine.low %v3569_v45, %v3585_v42  ;;  %v3588_v35 = vld [vmem:[#allocation3 + $0x5c] sm:$0x1]  ;;  %v3573_v50 = vld [vmem:[#allocation3 + $0x60] sm:$0xf]  ;;  %3283 = vmatpush1.bf16.msra.mxu0 %v7348_v31 }
 0x1d3   : > { %v8758_v58 = vor.u32 %v3767_v60, %v3763_v48  ;;  %v3777_v15 = vshrl.u32 %v6626_v2, 16  ;;  %v3779_v3 = vshll.u32 %v6626_v2, 16  ;;  %v3784_v26 = vshrl.u32 %v6627_v30, 16  ;;  %v3587_v47 = vld [vmem:[#allocation3 + $0x54] sm:$0x1]  ;;  %3284 = vmatprep.subr.bf16.mxu0 %v10337_v33 }
 0x1d4   : > { %1773 = vrot.lane.b32.xlu1 %v8694_v22, %s7478_s10  ;;  %2981 = vmatmul.mubr.bf16.gmra.mrb[40].mxu0 %v6475_v0  ;;  %v8763_v24 = vor.u32 %v3774_v23, %v3770_v4  ;;  %v3786_v55 = vshll.u32 %v6627_v30, 16  ;;  %v3791_v7 = vshrl.u32 %v6628_v18, 16  ;;  %v3793_v22 = vshll.u32 %v6628_v18, 16  ;;  %v3589_v52 = vld [vmem:[#allocation3 + $0x64] sm:$0x1]  ;;  %v7350_v30 = vld [vmem:[%s10231_s3 + $0xb8] sm:$0xff]  }
 0x1d5   : > { %2516 = vrot.lane.b32.xlu0 %v8647_v38, %s7478_s10  ;;  %6498 = vmatprep.mubr.msk.bf16.mxu0 %vm752_vm5, %v6478_v34  ;;  %v3781_v32 = vrot.slane %v3779_v3, 1  ;;  %v3798_v0 = vshrl.u32 %v8748_v11, 16  ;;  %v3800_v27 = vshll.u32 %v8748_v11, 16  ;;  %v7349_v38 = vld [vmem:[%s10231_s3 + $0x50] sm:$0xff]   ;;  %v6630_v45 = vcombine.low %v3570_v36, %v3586_v53  ;;  %v3574_v2 = vld [vmem:[#allocation3 + $0x68] sm:$0xf] }
 0x1d6   : > { %3428 = vmatpush1.bf16.msra.mxu1 %v7349_v38  ;;  %v3788_v48 = vrot.slane %v3786_v55, 1  ;;  %v3795_v5 = vrot.slane %v3793_v22, 1  ;;  %v6631_v42 = vcombine.low %v3571_v41, %v3587_v47  ;;  %v6632_v4 = vcombine.low %v3572_v37, %v3588_v35  ;;  %3285 = vmatpush1.bf16.msra.mxu0 %v7350_v30  ;;  %v3575_v53 = vld [vmem:[#allocation3 + $0x70] sm:$0xf]  ;;  %v3591_v34 = vld [vmem:[#allocation3 + $0x74] sm:$0x1] }
 0x1d7   : > { %3198 = vmatmul.mubr.bf16.gmra.mrb[40].mxu1 %v6511_v6  ;;  %3429 = vmatprep.subr.bf16.mxu1 %v10337_v33  ;;  %v8783_v14 = vor.u32 %v3781_v32, %v3777_v15  ;;  %v3802_v43 = vrot.slane %v3800_v27, 1  ;;  %v6633_v20 = vcombine.low %v3573_v50, %v3589_v52  ;;  %v3805_v57 = vshrl.u32 %v6630_v45, 16  ;;  %v7351_v23 = vld [vmem:[%s10231_s3 + $0x58] sm:$0xff]   ;;  %v3592_v3 = vld [vmem:[#allocation3 + $0x7c] sm:$0x1] }
 0x1d8   : > { %2518 = vrot.lane.b32.xlu1 %v8699_v16, %s7478_s10  ;;  %6534 = vmatprep.mubr.msk.bf16.mxu1 %vm752_vm5, %v6514_v49  ;;  %v8786_v62 = vor.u32 %v3788_v48, %v3784_v26  ;;  %v8788_v6 = vor.u32 %v3795_v5, %v3791_v7  ;;  %v3807_v60 = vshll.u32 %v6630_v45, 16  ;;  %v3590_v16 = vld [vmem:[#allocation3 + $0x6c] sm:$0x1]  ;;  %v6477_v49 = vcombine.low %v8652_v56, %v8704_v46  ;;  %v3576_v46 = vld [vmem:[#allocation3 + $0x78] sm:$0xf] }
 0x1d9   : > { %2520 = vrot.lane.b32.xlu0 %v2388_v1, %s7478_s10  ;;  %v3812_v1 = vshrl.u32 %v6631_v42, 16  ;;  %v3814_v36 = vshll.u32 %v6631_v42, 16  ;;  %4371 = vmatprep.subr.bf16.mxu0 %v10337_v33  ;;  %v3819_v37 = vshrl.u32 %v6632_v4, 16  ;;  %v3821_v56 = vshll.u32 %v6632_v4, 16  ;;  %v3577_v22 = vld [vmem:[#allocation3 + $0x80] sm:$0xf] }
 0x1da   : > { %3430 = vmatpush1.bf16.msra.mxu1 %v7351_v23  ;;  %v3809_v41 = vrot.slane %v3807_v60, 1  ;;  %v3826_v50 = vshrl.u32 %v6633_v20, 16  ;;  %v3828_v31 = vshll.u32 %v6633_v20, 16  ;;  %v6634_v15 = vcombine.low %v3574_v2, %v3590_v16  ;;  %v3593_v52 = vld [vmem:[#allocation3 + $0x84] sm:$0x1] }
 0x1db   : > { %4532 = vmatprep.subr.bf16.mxu1 %v10337_v33  ;;  %v3816_v35 = vrot.slane %v3814_v36, 1  ;;  %v10344_v26 = vcombine.low %v8048_v25, %v8050_v28  ;;  %v8812_v47 = vor.u32 %v3802_v43, %v3798_v0  ;;  %v3823_v7 = vrot.slane %v3821_v56, 1  ;;  %v8837_v43 = vld [vmem:[#allocation2 + $0x18] sm:$0xf]  ;;  %v8972_v25 = vld [vmem:[#allocation2 + $0x28] sm:$0xf] }
 0x1dc   : > { %1777 = vrot.lane.b32.xlu1 %v8712_v10, %s7478_s10  ;;  %2989 = vmatmul.mubr.bf16.gmra.mrb[44].mxu0 %v6477_v49  ;;  %v8814_v55 = vor.u32 %v3809_v41, %v3805_v57  ;;  %v6635_v10 = vcombine.low %v3575_v53, %v3591_v34  ;;  %v3830_v27 = vrot.slane %v3828_v31, 1  ;;  %v3833_v38 = vshrl.u32 %v6634_v15, 16  ;;  %v8854_v34 = vld [vmem:[#allocation2 + $0x20] sm:$0xf]  ;;  %v8878_v31 = vld [vmem:[#allocation2 + $0x30] sm:$0xf] }
 0x1dd   : > { %1775 = vrot.lane.b32.xlu0 %v8701_v51, %s7478_s10  ;;  %6551 = vmatprep.mubr.msk.bf16.mxu0 %vm752_vm5, %v10344_v26  ;;  %10345 = vst [vmem:[#allocation42_spill] sm:$0xff] %v8812_v47  ;;  %v8816_v32 = vor.u32 %v3816_v35, %v3812_v1  ;;  %v3835_v48 = vshll.u32 %v6634_v15, 16  ;;  %v8823_v28 = vor.u32 %v3823_v7, %v3819_v37  ;;  %v3861_v16 = vshrl.u32 %v8132_v17, 16  ;;  %v8892_v7 = vld [vmem:[#allocation2 + $0x40] sm:$0xf] }
 0x1de   : > { %10346 = vst [vmem:[#allocation43_spill] sm:$0xff] %v8814_v55  ;;  %v3840_v51 = vshrl.u32 %v6635_v10, 16  ;;  %v3842_v0 = vshll.u32 %v6635_v10, 16  ;;  %v10349_v5 = vcombine.low %v8041_v8, %v8043_v19  ;;  %v8831_v45 = vor.u32 %v3830_v27, %v3826_v50  ;;  %v8906_v27 = vld [vmem:[#allocation2 + $0x50] sm:$0xf] }
 0x1df   : > { %10347 = vst [vmem:[#allocation44_spill] sm:$0xff] %v8816_v32  ;;  %3206 = vmatmul.mubr.bf16.gmra.mrb[44].mxu1 %v6513_v13  ;;  %10348 = vst [vmem:[#allocation45_spill] sm:$0xff] %v8823_v28  ;;  %v3837_v42 = vrot.slane %v3835_v48, 1  ;;  %v6636_v40 = vcombine.low %v3576_v46, %v3592_v3  ;;  %v6637_v21 = vcombine.low %v3577_v22, %v3593_v52  ;;  %v8869_v46 = vld [vmem:[#allocation2 + $0x28] sm:$0xf] }
 0x1e0   : > { %2522 = vrot.lane.b32.xlu1 %v8736_v54, %s7478_s10  ;;  %6575 = vmatprep.mubr.msk.bf16.mxu1 %vm752_vm5, %v10349_v5  ;;  %10350 = vst [vmem:[#allocation46_spill] sm:$0xff] %v8831_v45  ;;  %v10351_v13 = vcombine.low %v8059_v39, %v8059_v39  ;;  %v3844_v4 = vrot.slane %v3842_v0, 1  ;;  %v6608_v8 = vcombine.low %v8837_v43, %v8837_v43  ;;  %v3863_v39 = vshll.u32 %v8132_v17, 16  ;;  %v8885_v3 = vld [vmem:[#allocation2 + $0x38] sm:$0xf] }
 0x1e1   : > { %v8843_v19 = vor.u32 %v3837_v42, %v3833_v38  ;;  %v3847_v20 = vshrl.u32 %v6636_v40, 16  ;;  %v3849_v57 = vshll.u32 %v6636_v40, 16  ;;  %v3854_v60 = vshrl.u32 %v6637_v21, 16  ;;  %v8899_v22 = vld [vmem:[#allocation2 + $0x48] sm:$0xf] }
 0x1e2   : > { %3643 = vrot.lane.b32.xlu0 %v10351_v13, %s7478_s10  ;;  %v3856_v2 = vshll.u32 %v6637_v21, 16  ;;  %v8850_v49 = vor.u32 %v3844_v4, %v3840_v51  ;;  %v3865_v53 = vrot.slane %v3863_v39, 1  ;;  %v6609_v17 = vcombine.low %v8854_v34, %v8854_v34  ;;  %v8913_v48 = vld [vmem:[#allocation2 + $0x58] sm:$0xf]  ;;  %v1333_v0 = vld [vmem:[#allocation2 + $0x14] sm:$0x1] }
 0x1e3   : > { %10352 = vst [vmem:[#allocation47_spill] sm:$0xff] %v8843_v19  ;;  %v3851_v1 = vrot.slane %v3849_v57, 1  ;;  %v6610_v50 = vcombine.low %v8869_v46, %v8869_v46  ;;  %v6611_v15 = vcombine.low %v8878_v31, %v8878_v31  ;;  %v6612_v26 = vcombine.low %v8885_v3, %v8885_v3  ;;  %v1334_v5 = vld [vmem:[#allocation2 + $0x1c] sm:$0x1]  ;;  %v8920_v42 = vld [vmem:[#allocation2 + $0x60] sm:$0xf] }
 0x1e4   : > { %3645 = vrot.lane.b32.xlu1 %v6608_v8, %s7478_s10  ;;  %10353 = vst [vmem:[#allocation48_spill] sm:$0xff] %v8850_v49  ;;  %v3858_v36 = vrot.slane %v3856_v2, 1  ;;  %v8862_v37 = vor.u32 %v3865_v53, %v3861_v16  ;;  %v6613_v10 = vcombine.low %v8892_v7, %v8892_v7  ;;  %v6614_v52 = vcombine.low %v8899_v22, %v8899_v22  ;;  %v2078_v21 = vld [vmem:[#allocation2 + $0x1c] sm:$0x1]  ;;  %v8926_v13 = vld [vmem:[#allocation2 + $0x10] sm:$0xf] }
 0x1e5   : > { %v8856_v23 = vor.u32 %v3851_v1, %v3847_v20  ;;  %v6615_v38 = vcombine.low %v8906_v27, %v8906_v27  ;;  %v6616_v51 = vcombine.low %v8913_v48, %v8913_v48  ;;  %v6617_v40 = vcombine.low %v8920_v42, %v8920_v42  ;;  %v8929_v8 = vld [vmem:[#allocation2 + $0x18] sm:$0xf]  ;;  %v8933_v57 = vld [vmem:[#allocation2 + $0x68] sm:$0xf]  ;;  %v1335_v16 = vld [vmem:[#allocation2 + $0x24] sm:$0x1] }
 0x1e6   : > { %3963 = vrot.lane.b32.xlu0 %v8746_v63, %s7478_s10  ;;  %v8860_v41 = vor.u32 %v3858_v36, %v3854_v60  ;;  %v6377_v4 = vcombine.low %v8926_v13, %v1333_v0  ;;  %v6378_v20 = vcombine.low %v8929_v8, %v1334_v5  ;;  %10355 = vst [vmem:[#allocation50_spill] sm:$0xff] %v8933_v57  ;;  %v2079_v60 = vld [vmem:[#allocation2 + $0x24] sm:$0x1]  ;;  %v8937_v39 = vld [vmem:[#allocation2 + $0x18] sm:$0xf] }
 0x1e7   : > { %10354 = vst [vmem:[#allocation49_spill] sm:$0xff] %v8856_v23  ;;  %v6618_v2 = vcombine.low %v8933_v57, %v8933_v57  ;;  %v8940_v1 = vcombine.low %v8937_v39, %v2078_v21  ;;  %v1336_v36 = vld [vmem:[#allocation2 + $0x2c] sm:$0x1]  ;;  %v8957_v0 = vld [vmem:[#allocation2 + $0x28] sm:$0xf] }
 0x1e8   : > { %3965 = vrot.lane.b32.xlu1 %v8758_v58, %s7478_s10  ;;  %v1844_v53 = vshll.u32 %v6377_v4, 16  ;;  %v8960_v5 = vcombine.low %v8957_v0, %v1336_v36  ;;  %v8969_v54 = vld [vmem:[#allocation2 + $0x78] sm:$0xf]  ;;  %v7366_v57 = vld [vmem:[#allocation2 + $0x10] sm:$0xf] }
 0x1e9   : > { %v2589_v21 = vshll.u32 %v8940_v1, 16  ;;  %10357 = vst [vmem:[#allocation52_spill] sm:$0xff] %v8969_v54 }
 0x1ea   : > { %3647 = vrot.lane.b32.xlu0 %v6609_v17, %s7478_s10  ;;  %v1851_v17 = vshll.u32 %v6378_v20, 16  ;;  %v1846_v35 = vrot.slane %v1844_v53, 1 }
 0x1eb   : > { %v2591_v18 = vrot.slane %v2589_v21, 1 }
 0x1ec   : > { %3649 = vrot.lane.b32.xlu1 %v6610_v50, %s7478_s10  ;;  %v8943_v50 = vld [vmem:[#allocation2 + $0x20] sm:$0xf]  ;;  %v1853_v56 = vrot.slane %v1851_v17, 1  ;;  %v2587_v17 = vshrl.u32 %v8940_v1, 16 }
 0x1ee   : > { %3967 = vrot.lane.b32.xlu0 %v8763_v24, %s7478_s10 }
 0x1f0   : > { %3969 = vrot.lane.b32.xlu1 %v8783_v14, %s7478_s10 }
 0x1f2   : > { %3651 = vrot.lane.b32.xlu0 %v6611_v15, %s7478_s10  ;;  %v8946_v15 = vcombine.low %v8943_v50, %v2079_v60  ;;  %v1849_v60 = vshrl.u32 %v6378_v20, 16  ;;  %v6620_v20 = vcombine.low %v8969_v54, %v8969_v54 }
 0x1f4   : > { %3653 = vrot.lane.b32.xlu1 %v6612_v26, %s7478_s10  ;;  %v1748_v26 = vpop.permute.xlu0 %1747  ;;  %v2596_v30 = vshll.u32 %v8946_v15, 16  ;;  %v1854_v21 = vor.u32 %v1853_v56, %v1849_v60  ;;  %v7230_v56 = vld [vmem:[%s10231_s3 + $0xc0] sm:$0xff]   ;;  %v9005_v60 = vld [vmem:[#allocation2 + $0x30] sm:$0xf] }
 0x1f5   : > { %v1941_v9 = vsel %vm752_vm5, %v7360_v12, %v1748_v26  ;;  %v8999_v26 = vld [vmem:[#allocation2 + $0x88] sm:$0xf] }
 0x1f6   : > { %3971 = vrot.lane.b32.xlu0 %v8786_v62, %s7478_s10  ;;  %10359 = vst [vmem:[#allocation54_spill] sm:$0xff] %v8999_v26 }
 0x1f8   : > { %3973 = vrot.lane.b32.xlu1 %v8788_v6, %s7478_s10 }
 0x1fa   : > { %3655 = vrot.lane.b32.xlu0 %v6613_v10, %s7478_s10  ;;  %v8950_v10 = vld [vmem:[#allocation2 + $0x20] sm:$0xf] }
 0x1fc   : > { %3657 = vrot.lane.b32.xlu1 %v6614_v52, %s7478_s10  ;;  %v8953_v52 = vcombine.low %v8950_v10, %v1335_v16  ;;  %v1842_v16 = vshrl.u32 %v6377_v4, 16  ;;  %v1865_v4 = vshll.u32 %v8960_v5, 16 }
 0x1fe   : > { %3975 = vrot.lane.b32.xlu0 %v8812_v47, %s7478_s10  ;;  %v1858_v36 = vshll.u32 %v8953_v52, 16  ;;  %v1847_v1 = vor.u32 %v1846_v35, %v1842_v16  ;;  %v2082_v35 = vld [vmem:[#allocation2 + $0x3c] sm:$0x1]  ;;  %v7365_v47 = vld [vmem:[#allocation2 + $0x8] sm:$0xf] }
 0x200   : > { %3977 = vrot.lane.b32.xlu1 %v8814_v55, %s7478_s10  ;;  %v9023_v55 = vld [vmem:[#allocation2 + $0x38] sm:$0xf] }
 0x202   : > { %3659 = vrot.lane.b32.xlu0 %v6615_v38, %s7478_s10  ;;  %v8955_v38 = vld [vmem:[#allocation2 + $0x70] sm:$0xf] }
 0x203   : > { %10356 = vst [vmem:[#allocation51_spill] sm:$0xff] %v8955_v38 }
 0x204   : > { %3661 = vrot.lane.b32.xlu1 %v6616_v51, %s7478_s10  ;;  %v2080_v51 = vld [vmem:[#allocation2 + $0x2c] sm:$0x1] }
 0x205   : > { %v8975_v11 = vcombine.low %v8972_v25, %v2080_v51  ;;  %v2598_v51 = vrot.slane %v2596_v30, 1  ;;  %v1863_v30 = vshrl.u32 %v8960_v5, 16  ;;  %v9008_v5 = vcombine.low %v9005_v60, %v1337_v44 }
 0x206   : > { %3979 = vrot.lane.b32.xlu0 %v8816_v32, %s7478_s10  ;;  %v7361_v32 = vld [vmem:[#allocation2 + $0x8] sm:$0xf]  ;;  %v2592_v44 = vor.u32 %v2591_v18, %v2587_v17  ;;  %v9033_v17 = vld [vmem:[#allocation2 + $0x40] sm:$0xf] }
 0x208   : > { %3981 = vrot.lane.b32.xlu1 %v8823_v28, %s7478_s10  ;;  %v8993_v28 = vld [vmem:[#allocation2 + $0x80] sm:$0xf] }
 0x209   : > { %10358 = vst [vmem:[#allocation53_spill] sm:$0xff] %v8993_v28  ;;  %v6621_v12 = vcombine.low %v8993_v28, %v8993_v28  ;;  %v6562_v28 = vcombine.low %v1847_v1, %v1854_v21 }
 0x20a   : > { %3663 = vrot.lane.b32.xlu0 %v6617_v40, %s7478_s10  ;;  %v6619_v40 = vcombine.low %v8955_v38, %v8955_v38 }
 0x20c   : > { %3665 = vrot.lane.b32.xlu1 %v6618_v2, %s7478_s10  ;;  %v2081_v2 = vld [vmem:[#allocation2 + $0x34] sm:$0x1] }
 0x20d   : > { %v2493_v53 = vpop.permute.xlu0 %2492  ;;  %v8985_v59 = vcombine.low %v8982_v61, %v2081_v2 }
 0x20e   : > { %3983 = vrot.lane.b32.xlu0 %v8831_v45, %s7478_s10  ;;  %v2603_v45 = vshll.u32 %v8975_v11, 16 }
 0x210   : > { %3985 = vrot.lane.b32.xlu1 %v8843_v19, %s7478_s10  ;;  %v1860_v19 = vrot.slane %v1858_v36, 1  ;;  %v9014_v36 = vld [vmem:[#allocation2 + $0x38] sm:$0xf] }
 0x212   : > { %3667 = vrot.lane.b32.xlu0 %v6619_v40, %s7478_s10  ;;  %v2594_v40 = vshrl.u32 %v8946_v15, 16  ;;  %v1856_v15 = vshrl.u32 %v8953_v52, 16  ;;  %v2610_v52 = vshll.u32 %v8985_v59, 16 }
 0x213   : > { %v1750_v2 = vpop.permute.xlu1 %1749 }
 0x214   : > { %3669 = vrot.lane.b32.xlu1 %v6620_v20, %s7478_s10  ;;  %v1867_v20 = vrot.slane %v1865_v4, 1  ;;  %v1944_v54 = vsel %vm752_vm5, %v7361_v32, %v1750_v2  ;;  %v6622_v32 = vcombine.low %v8999_v26, %v8999_v26  ;;  %v9017_v4 = vcombine.low %v9014_v36, %v1338_v29  ;;  %v2083_v2 = vld [vmem:[#allocation2 + $0x44] sm:$0x1] }
 0x215   : > { %v6559_v16 = vcombine.low %v1941_v9, %v1944_v54  ;;  %v2599_v38 = vor.u32 %v2598_v51, %v2594_v40  ;;  %v2601_v9 = vshrl.u32 %v8975_v11, 16  ;;  %v2605_v54 = vrot.slane %v2603_v45, 1  ;;  %v1339_v45 = vld [vmem:[#allocation2 + $0x44] sm:$0x1] }
 0x216   : > { %3987 = vrot.lane.b32.xlu0 %v8850_v49, %s7478_s10  ;;  %v9020_v49 = vpop.permute.xlu0 %2496  ;;  %v9026_v26 = vcombine.low %v9023_v55, %v2082_v35  ;;  %v2608_v29 = vshrl.u32 %v8985_v59, 16  ;;  %v2612_v18 = vrot.slane %v2610_v52, 1  ;;  %v1872_v11 = vshll.u32 %v9008_v5, 16 }
 0x217   : > { %3440 = vmatmul.mubr.bf16.vlgmr.msra.gmra.mrb[48].mxu1 %v6559_v16  ;;  %v9036_v40 = vcombine.low %v9033_v17, %v2083_v2  ;;  %v1879_v59 = vshll.u32 %v9017_v4, 16  ;;  %v1870_v16 = vshrl.u32 %v9008_v5, 16 }
 0x218   : > { %3989 = vrot.lane.b32.xlu1 %v8856_v23, %s7478_s10  ;;  %v2495_v23 = vpop.permute.xlu1 %2494  ;;  %6576 = vmatprep.mubr.msk.bf16.mxu1 %vm752_vm5, %v6562_v28  ;;  %v6538_v28 = vcombine.low %v2592_v44, %v2599_v38  ;;  %v2617_v52 = vshll.u32 %v9026_v26, 16  ;;  %v2084_v44 = vld [vmem:[#allocation2 + $0x4c] sm:$0x1] }
 0x219   : > { %v2689_v1 = vsel %vm752_vm5, %v7366_v57, %v2495_v23  ;;  %4533 = vmatpush1.bf16.msra.mxu1 %v7230_v56  ;;  %v1861_v23 = vor.u32 %v1860_v19, %v1856_v15  ;;  %v1868_v57 = vor.u32 %v1867_v20, %v1863_v30  ;;  %v1340_v19 = vld [vmem:[#allocation2 + $0x4c] sm:$0x1]  ;;  %v1874_v15 = vrot.slane %v1872_v11, 1  ;;  %v7233_v11 = vld [vmem:[%s10231_s3 + $0xd0] sm:$0xff]  }
 0x21a   : > { %3671 = vrot.lane.b32.xlu0 %v6621_v12, %s7478_s10  ;;  %v2686_v12 = vsel %vm752_vm5, %v7365_v47, %v2493_v53  ;;  %4534 = vmatprep.subr.bf16.mxu1 %v10337_v33  ;;  %v1752_v47 = vpop.permute.xlu0 %1751  ;;  %v7232_v53 = vld [vmem:[%s10231_s3 + $0xc8] sm:$0xff]   ;;  %v2624_v30 = vshll.u32 %v9036_v40, 16  ;;  %v1881_v5 = vrot.slane %v1879_v59, 1 }
 0x21b   : > { %v6535_v51 = vcombine.low %v2686_v12, %v2689_v1  ;;  %v1947_v21 = vsel %vm752_vm5, %v8926_v13, %v1752_v47  ;;  %v1877_v13 = vshrl.u32 %v9017_v4, 16  ;;  %v2606_v1 = vor.u32 %v2605_v54, %v2601_v9  ;;  %v2085_v47 = vld [vmem:[#allocation2 + $0x54] sm:$0x1] }
 0x21c   : > { %3673 = vrot.lane.b32.xlu1 %v6622_v32, %s7478_s10  ;;  %v1754_v35 = vpop.permute.xlu1 %1753  ;;  %v9050_v32 = vld [vmem:[#allocation2 + $0x40] sm:$0xf]  ;;  %v2615_v4 = vshrl.u32 %v9026_v26, 16  ;;  %v2692_v54 = vsel %vm752_vm5, %v8937_v39, %v9020_v49 }
 0x21d   : > { %3295 = vmatmul.mubr.bf16.vlgmr.msra.gmra.mrb[48].mxu0 %v6535_v51  ;;  %v9053_v2 = vcombine.low %v9050_v32, %v1339_v45  ;;  %v1950_v38 = vsel %vm752_vm5, %v8929_v8, %v1754_v35  ;;  %4535 = vmatpush1.bf16.msra.mxu1 %v7232_v53  ;;  %v2613_v8 = vor.u32 %v2612_v18, %v2608_v29  ;;  %v9067_v45 = vld [vmem:[#allocation2 + $0x48] sm:$0xf]  ;;  %v2622_v29 = vshrl.u32 %v9036_v40, 16  ;;  %v9087_v35 = vld [vmem:[#allocation2 + $0x50] sm:$0xf]  ;;  %v7234_v40 = vld [vmem:[%s10231_s3 + $0xd8] sm:$0xff]  }
 0x21e   : > { %3991 = vrot.lane.b32.xlu0 %v8860_v41, %s7478_s10  ;;  %4372 = vmatpush1.bf16.msra.mxu0 %v7230_v56  ;;  %v6561_v20 = vcombine.low %v1947_v21, %v1950_v38  ;;  %v6564_v56 = vcombine.low %v1861_v23, %v1868_v57  ;;  %v9070_v51 = vcombine.low %v9067_v45, %v1340_v19  ;;  %v2626_v18 = vrot.slane %v2624_v30, 1  ;;  %v9081_v23 = vld [vmem:[#allocation2 + $0x48] sm:$0xf]  ;;  %v1341_v30 = vld [vmem:[#allocation2 + $0x54] sm:$0x1] }
 0x21f   : > { %6552 = vmatprep.mubr.msk.bf16.mxu0 %vm752_vm5, %v6538_v28  ;;  %4373 = vmatprep.subr.bf16.mxu0 %v10337_v33  ;;  %v2619_v28 = vrot.slane %v2617_v52, 1  ;;  %v1886_v9 = vshll.u32 %v9053_v2, 16  ;;  %v9084_v57 = vcombine.low %v9081_v23, %v2084_v44  ;;  %v9090_v49 = vcombine.low %v9087_v35, %v2085_v47 }
 0x220   : > { %3993 = vrot.lane.b32.xlu1 %v8862_v37, %s7478_s10  ;;  %v1756_v12 = vpop.permute.xlu0 %1755  ;;  %3448 = vmatmul.mubr.bf16.gmra.mrb[52].mxu1 %v6561_v20  ;;  %v2499_v59 = vpop.permute.xlu1 %2498  ;;  %v1882_v52 = vor.u32 %v1881_v5, %v1877_v13  ;;  %v1893_v19 = vshll.u32 %v9070_v51, 16  ;;  %v1342_v20 = vld [vmem:[#allocation2 + $0x5c] sm:$0x1] }
 0x221   : > { %4536 = vmatprep.subr.bf16.mxu1 %v10337_v33  ;;  %v2695_v26 = vsel %vm752_vm5, %v8943_v50, %v2499_v59  ;;  %6577 = vmatprep.mubr.msk.bf16.mxu1 %vm752_vm5, %v6564_v56  ;;  %v6540_v50 = vcombine.low %v2606_v1, %v2613_v8  ;;  %v1953_v44 = vsel %vm752_vm5, %v8950_v10, %v1756_v12  ;;  %v2631_v13 = vshll.u32 %v9084_v57, 16  ;;  %v2086_v5 = vld [vmem:[#allocation2 + $0x5c] sm:$0x1]  ;;  %v9110_v59 = vld [vmem:[#allocation2 + $0x50] sm:$0xf] }
 0x222   : > { %4374 = vmatpush1.bf16.msra.mxu0 %v7232_v53  ;;  %v6537_v21 = vcombine.low %v2692_v54, %v2695_v26  ;;  %4537 = vmatpush1.bf16.msra.mxu1 %v7233_v11  ;;  %v1875_v53 = vor.u32 %v1874_v15, %v1870_v16  ;;  %v1884_v16 = vshrl.u32 %v9053_v2, 16  ;;  %v1888_v15 = vrot.slane %v1886_v9, 1  ;;  %v9115_v54 = vld [vmem:[#allocation2 + $0x58] sm:$0xf] }
 0x223   : > { %4375 = vmatprep.subr.bf16.mxu0 %v10337_v33  ;;  %4538 = vmatprep.subr.bf16.mxu1 %v10337_v33  ;;  %v2638_v8 = vshll.u32 %v9090_v49, 16  ;;  %v2620_v10 = vor.u32 %v2619_v28, %v2615_v4  ;;  %v2627_v12 = vor.u32 %v2626_v18, %v2622_v29  ;;  %v1895_v2 = vrot.slane %v1893_v19, 1  ;;  %v9121_v28 = vld [vmem:[#allocation2 + $0x58] sm:$0xf] }
 0x224   : > { %v2501_v39 = vpop.permute.xlu0 %2500  ;;  %v6566_v47 = vcombine.low %v1875_v53, %v1882_v52  ;;  %v9113_v9 = vcombine.low %v9110_v59, %v1341_v30  ;;  %v9118_v26 = vcombine.low %v9115_v54, %v1342_v20  ;;  %v2629_v53 = vshrl.u32 %v9084_v57, 16  ;;  %v1343_v20 = vld [vmem:[#allocation2 + $0x64] sm:$0x1] }
 0x225   : > { %3303 = vmatmul.mubr.bf16.gmra.mrb[52].mxu0 %v6537_v21  ;;  %v1758_v38 = vpop.permute.xlu1 %1757  ;;  %v2087_v21 = vld [vmem:[#allocation2 + $0x64] sm:$0x1]  ;;  %v2698_v29 = vsel %vm752_vm5, %v8972_v25, %v2501_v39  ;;  %v2633_v52 = vrot.slane %v2631_v13, 1  ;;  %v2640_v30 = vrot.slane %v2638_v8, 1  ;;  %v6542_v39 = vcombine.low %v2620_v10, %v2627_v12 }
 0x226   : > { %v1956_v56 = vsel %vm752_vm5, %v8957_v0, %v1758_v38  ;;  %6553 = vmatprep.mubr.msk.bf16.mxu0 %vm752_vm5, %v6540_v50  ;;  %4376 = vmatpush1.bf16.msra.mxu0 %v7233_v11  ;;  %v7235_v0 = vld [vmem:[%s10231_s3 + $0xe0] sm:$0xff]   ;;  %v1891_v11 = vshrl.u32 %v9070_v51, 16  ;;  %v9124_v51 = vcombine.low %v9121_v28, %v2086_v5  ;;  %v2636_v38 = vshrl.u32 %v9090_v49, 16 }
 0x227   : > { %v6563_v1 = vcombine.low %v1953_v44, %v1956_v56  ;;  %4377 = vmatprep.subr.bf16.mxu0 %v10337_v33  ;;  %4539 = vmatpush1.bf16.msra.mxu1 %v7234_v40  ;;  %v9134_v44 = vld [vmem:[#allocation2 + $0x60] sm:$0xf]  ;;  %v1900_v57 = vshll.u32 %v9113_v9, 16  ;;  %v1889_v49 = vor.u32 %v1888_v15, %v1884_v16  ;;  %v1898_v10 = vshrl.u32 %v9113_v9, 16  ;;  %v7237_v9 = vld [vmem:[%s10231_s3 + $0xf0] sm:$0xff]  }
 0x228   : > { %4540 = vmatprep.subr.bf16.mxu1 %v10337_v33  ;;  %v9137_v25 = vcombine.low %v9134_v44, %v2087_v21  ;;  %v1896_v13 = vor.u32 %v1895_v2, %v1891_v11  ;;  %v2645_v5 = vshll.u32 %v9124_v51, 16  ;;  %v1905_v12 = vshrl.u32 %v9118_v26, 16  ;;  %v9151_v21 = vld [vmem:[#allocation2 + $0x60] sm:$0xf] }
 0x229   : > { %3456 = vmatmul.mubr.bf16.gmra.mrb[56].mxu1 %v6563_v1  ;;  %v2503_v4 = vpop.permute.xlu1 %2502  ;;  %v1344_v1 = vld [vmem:[#allocation2 + $0x6c] sm:$0x1]  ;;  %v9154_v16 = vcombine.low %v9151_v21, %v1343_v20 }
 0x22a   : > { %v2505_v18 = vpop.permute.xlu0 %2504  ;;  %v2701_v50 = vsel %vm752_vm5, %v8982_v61, %v2503_v4  ;;  %6578 = vmatprep.mubr.msk.bf16.mxu1 %vm752_vm5, %v6566_v47  ;;  %4378 = vmatpush1.bf16.msra.mxu0 %v7234_v40  ;;  %v7236_v61 = vld [vmem:[%s10231_s3 + $0xe8] sm:$0xff]   ;;  %v1907_v40 = vshll.u32 %v9118_v26, 16  ;;  %v2652_v11 = vshll.u32 %v9137_v25, 16  ;;  %v2634_v4 = vor.u32 %v2633_v52, %v2629_v53 }
 0x22b   : > { %v6539_v19 = vcombine.low %v2698_v29, %v2701_v50  ;;  %4379 = vmatprep.subr.bf16.mxu0 %v10337_v33  ;;  %4541 = vmatpush1.bf16.msra.mxu1 %v7235_v0  ;;  %v1902_v26 = vrot.slane %v1900_v57, 1  ;;  %v9163_v50 = vld [vmem:[#allocation2 + $0x68] sm:$0xf]  ;;  %v2643_v53 = vshrl.u32 %v9124_v51, 16  ;;  %v2704_v52 = vsel %vm752_vm5, %v9023_v55, %v2505_v18  ;;  %v9183_v18 = vld [vmem:[#allocation2 + $0x70] sm:$0xf] }
 0x22c   : > { %4542 = vmatprep.subr.bf16.mxu1 %v10337_v33  ;;  %v1909_v29 = vrot.slane %v1907_v40, 1  ;;  %v2647_v57 = vrot.slane %v2645_v5, 1  ;;  %v1914_v40 = vshll.u32 %v9154_v16, 16  ;;  %v2650_v55 = vshrl.u32 %v9137_v25, 16  ;;  %v1345_v25 = vld [vmem:[#allocation2 + $0x74] sm:$0x1] }
 0x22d   : > { %3311 = vmatmul.mubr.bf16.gmra.mrb[56].mxu0 %v6539_v19  ;;  %v1762_v56 = vpop.permute.xlu1 %1761  ;;  %v9166_v19 = vcombine.low %v9163_v50, %v1344_v1  ;;  %v2654_v51 = vrot.slane %v2652_v11, 1  ;;  %v7238_v1 = vld [vmem:[%s10231_s3 + $0xf8] sm:$0xff]  }
 0x22e   : > { %v1760_v8 = vpop.permute.xlu0 %1759  ;;  %v1962_v47 = vsel %vm752_vm5, %v9014_v36, %v1762_v56  ;;  %6554 = vmatprep.mubr.msk.bf16.mxu0 %vm752_vm5, %v6542_v39  ;;  %4380 = vmatpush1.bf16.msra.mxu0 %v7235_v0  ;;  %v2088_v36 = vld [vmem:[#allocation2 + $0x6c] sm:$0x1]  ;;  %v2641_v0 = vor.u32 %v2640_v30, %v2636_v38  ;;  %v6568_v39 = vcombine.low %v1889_v49, %v1896_v13  ;;  %v9175_v56 = vld [vmem:[#allocation2 + $0x68] sm:$0xf] }
 0x22f   : > { %v1959_v15 = vsel %vm752_vm5, %v9005_v60, %v1760_v8  ;;  %4381 = vmatprep.subr.bf16.mxu0 %v10337_v33  ;;  %4543 = vmatpush1.bf16.msra.mxu1 %v7236_v61  ;;  %v2089_v60 = vld [vmem:[#allocation2 + $0x74] sm:$0x1]  ;;  %v9178_v49 = vcombine.low %v9175_v56, %v2088_v36  ;;  %v1921_v8 = vshll.u32 %v9166_v19, 16  ;;  %v1910_v36 = vor.u32 %v1909_v29, %v1905_v12 }
 0x230   : > { %v6565_v2 = vcombine.low %v1959_v15, %v1962_v47  ;;  %4544 = vmatprep.subr.bf16.mxu1 %v10337_v33  ;;  %v6544_v5 = vcombine.low %v2634_v4, %v2641_v0  ;;  %v1903_v15 = vor.u32 %v1902_v26, %v1898_v10  ;;  %v1912_v0 = vshrl.u32 %v9154_v16, 16  ;;  %v9200_v10 = vld [vmem:[#allocation2 + $0x78] sm:$0xf]  ;;  %v7239_v16 = vld [vmem:[%s10231_s3 + $0x100] sm:$0xff]  }
 0x231   : > { %v2507_v20 = vpop.permute.xlu1 %2506 }
 0x232   : > { %v1764_v38 = vpop.permute.xlu0 %1763  ;;  %3464 = vmatmul.mubr.bf16.gmra.mrb[60].mxu1 %v6565_v2  ;;  %v2707_v30 = vsel %vm752_vm5, %v9033_v17, %v2507_v20  ;;  %4382 = vmatpush1.bf16.msra.mxu0 %v7236_v61  ;;  %v9186_v17 = vcombine.low %v9183_v18, %v2089_v60  ;;  %v1346_v61 = vld [vmem:[#allocation2 + $0x7c] sm:$0x1]  ;;  %v2659_v60 = vshll.u32 %v9178_v49, 16 }
 0x233   : > { %v6541_v13 = vcombine.low %v2704_v52, %v2707_v30  ;;  %6579 = vmatprep.mubr.msk.bf16.mxu1 %vm752_vm5, %v6568_v39  ;;  %4383 = vmatprep.subr.bf16.mxu0 %v10337_v33  ;;  %v1965_v11 = vsel %vm752_vm5, %v9050_v32, %v1764_v38  ;;  %v2090_v20 = vld [vmem:[#allocation2 + $0x7c] sm:$0x1]  ;;  %v9203_v12 = vcombine.low %v9200_v10, %v1346_v61  ;;  %v1916_v32 = vrot.slane %v1914_v40, 1  ;;  %v9211_v38 = vld [vmem:[#allocation2 + $0x70] sm:$0xf] }
 0x234   : > { %4545 = vmatpush1.bf16.msra.mxu1 %v7237_v9  ;;  %v2666_v29 = vshll.u32 %v9186_v17, 16  ;;  %v2655_v39 = vor.u32 %v2654_v51, %v2650_v55  ;;  %v1923_v52 = vrot.slane %v1921_v8, 1  ;;  %v9214_v30 = vcombine.low %v9211_v38, %v1345_v25 }
 0x235   : > { %3319 = vmatmul.mubr.bf16.gmra.mrb[60].mxu0 %v6541_v13  ;;  %4546 = vmatprep.subr.bf16.mxu1 %v10337_v33  ;;  %v2091_v13 = vld [vmem:[#allocation2 + $0x84] sm:$0x1]  ;;  %v6570_v40 = vcombine.low %v1903_v15, %v1910_v36  ;;  %v2661_v8 = vrot.slane %v2659_v60, 1  ;;  %v2664_v36 = vshrl.u32 %v9186_v17, 16 }
 0x236   : > { %v1766_v47 = vpop.permute.xlu1 %1765  ;;  %6555 = vmatprep.mubr.msk.bf16.mxu0 %vm752_vm5, %v6544_v5  ;;  %4384 = vmatpush1.bf16.msra.mxu0 %v7237_v9  ;;  %v1919_v9 = vshrl.u32 %v9166_v19, 16  ;;  %v2657_v5 = vshrl.u32 %v9178_v49, 16  ;;  %v2668_v25 = vrot.slane %v2666_v29, 1  ;;  %v7240_v49 = vld [vmem:[%s10231_s3 + $0x108] sm:$0xff]  }
 0x237   : > { %v2509_v2 = vpop.permute.xlu0 %2508  ;;  %v1968_v4 = vsel %vm752_vm5, %v9067_v45, %v1766_v47  ;;  %4385 = vmatprep.subr.bf16.mxu0 %v10337_v33  ;;  %v2648_v45 = vor.u32 %v2647_v57, %v2643_v53  ;;  %v9217_v53 = vld [vmem:[#allocation2 + $0x78] sm:$0xf]  ;;  %v1935_v47 = vshll.u32 %v9203_v12, 16 }
 0x238   : > { %v6567_v26 = vcombine.low %v1965_v11, %v1968_v4  ;;  %4547 = vmatpush1.bf16.msra.mxu1 %v7238_v1  ;;  %v9220_v57 = vcombine.low %v9217_v53, %v2090_v20  ;;  %v2710_v55 = vsel %vm752_vm5, %v9081_v23, %v2509_v2  ;;  %v9231_v23 = vld [vmem:[#allocation2 + $0x80] sm:$0xf]  ;;  %v1917_v4 = vor.u32 %v1916_v32, %v1912_v0  ;;  %v3546_v20 = vld [vmem:[#allocation2 + $0x14] sm:$0x1] }
 0x239   : > { %4548 = vmatprep.subr.bf16.mxu1 %v10337_v33  ;;  %v9234_v11 = vcombine.low %v9231_v23, %v2091_v13  ;;  %v1924_v60 = vor.u32 %v1923_v52, %v1919_v9  ;;  %v1933_v13 = vshrl.u32 %v9203_v12, 16  ;;  %v2662_v52 = vor.u32 %v2661_v8, %v2657_v5 }
 0x23a   : > { %v2511_v61 = vpop.permute.xlu1 %2510  ;;  %3472 = vmatmul.mubr.bf16.gmra.mrb[64].mxu1 %v6567_v26  ;;  %4386 = vmatpush1.bf16.msra.mxu0 %v7238_v1  ;;  %v1928_v1 = vshll.u32 %v9214_v30, 16  ;;  %v2673_v17 = vshll.u32 %v9220_v57, 16  ;;  %v3547_v26 = vld [vmem:[#allocation2 + $0x1c] sm:$0x1] }
 0x23b   : > { %v2513_v19 = vpop.permute.xlu0 %2512  ;;  %v2713_v51 = vsel %vm752_vm5, %v9087_v35, %v2511_v61  ;;  %6580 = vmatprep.mubr.msk.bf16.mxu1 %vm752_vm5, %v6570_v40  ;;  %4387 = vmatprep.subr.bf16.mxu0 %v10337_v33  ;;  %v6546_v35 = vcombine.low %v2648_v45, %v2655_v39  ;;  %v1926_v39 = vshrl.u32 %v9214_v30, 16  ;;  %v1937_v61 = vrot.slane %v1935_v47, 1  ;;  %v9254_v30 = vld [vmem:[#allocation2 + $0x10] sm:$0xf] }
 0x23c   : > { %v6543_v15 = vcombine.low %v2710_v55, %v2713_v51  ;;  %4549 = vmatpush1.bf16.msra.mxu1 %v7239_v16  ;;  %v2680_v32 = vshll.u32 %v9234_v11, 16  ;;  %v2669_v40 = vor.u32 %v2668_v25, %v2664_v36  ;;  %v6639_v12 = vcombine.low %v9254_v30, %v3546_v20 }
 0x23d   : > { %4550 = vmatprep.subr.bf16.mxu1 %v10337_v33  ;;  %v6640_v55 = vcombine.low %v8837_v43, %v3547_v26  ;;  %v6572_v51 = vcombine.low %v1917_v4, %v1924_v60  ;;  %v2716_v5 = vsel %vm752_vm5, %v9121_v28, %v2513_v19  ;;  %v2675_v25 = vrot.slane %v2673_v17, 1  ;;  %v7242_v28 = vld [vmem:[%s10231_s3 + $0x118] sm:$0xff]  }
 0x23e   : > { %3327 = vmatmul.mubr.bf16.gmra.mrb[64].mxu0 %v6543_v15  ;;  %v1770_v2 = vpop.permute.xlu1 %1769  ;;  %v2671_v15 = vshrl.u32 %v9220_v57, 16  ;;  %v4046_v19 = vshll.u32 %v6639_v12, 16  ;;  %v1938_v4 = vor.u32 %v1937_v61, %v1933_v13  ;;  %v4044_v26 = vshrl.u32 %v6639_v12, 16 }
 0x23f   : > { %v1768_v29 = vpop.permute.xlu0 %1767  ;;  %v1974_v45 = vsel %vm752_vm5, %v9115_v54, %v1770_v2  ;;  %6556 = vmatprep.mubr.msk.bf16.mxu0 %vm752_vm5, %v6546_v35  ;;  %4388 = vmatpush1.bf16.msra.mxu0 %v7239_v16  ;;  %v7241_v54 = vld [vmem:[%s10231_s3 + $0x110] sm:$0xff]   ;;  %v1930_v16 = vrot.slane %v1928_v1, 1  ;;  %v2678_v35 = vshrl.u32 %v9234_v11, 16  ;;  %v2682_v1 = vrot.slane %v2680_v32, 1  ;;  %v3549_v32 = vld [vmem:[#allocation2 + $0x2c] sm:$0x1] }
 0x240   : > { %v1971_v0 = vsel %vm752_vm5, %v9110_v59, %v1768_v29  ;;  %4389 = vmatprep.subr.bf16.mxu0 %v10337_v33  ;;  %4551 = vmatpush1.bf16.msra.mxu1 %v7240_v49  ;;  %v6548_v2 = vcombine.low %v2662_v52, %v2669_v40  ;;  %v3548_v29 = vld [vmem:[#allocation2 + $0x24] sm:$0x1]  ;;  %v4048_v13 = vrot.slane %v4046_v19, 1  ;;  %v4051_v61 = vshrl.u32 %v6640_v55, 16 }
 0x241   : > { %v6569_v9 = vcombine.low %v1971_v0, %v1974_v45  ;;  %4552 = vmatprep.subr.bf16.mxu1 %v10337_v33  ;;  %v1931_v57 = vor.u32 %v1930_v16, %v1926_v39  ;;  %v2676_v45 = vor.u32 %v2675_v25, %v2671_v15  ;;  %v2683_v39 = vor.u32 %v2682_v1, %v2678_v35  ;;  %v3551_v35 = vld [vmem:[#allocation2 + $0x3c] sm:$0x1] }
 0x242   : > { %v2515_v59 = vpop.permute.xlu1 %2514  ;;  %v6641_v16 = vcombine.low %v8854_v34, %v3548_v29  ;;  %v6642_v12 = vcombine.low %v8869_v46, %v3549_v32 }
 0x243   : > { %v1772_v8 = vpop.permute.xlu0 %1771  ;;  %3480 = vmatmul.mubr.bf16.gmra.mrb[68].mxu1 %v6569_v9  ;;  %v2719_v47 = vsel %vm752_vm5, %v9134_v44, %v2515_v59  ;;  %4390 = vmatpush1.bf16.msra.mxu0 %v7240_v49  ;;  %v4053_v44 = vshll.u32 %v6640_v55, 16  ;;  %v6574_v9 = vcombine.low %v1931_v57, %v1938_v4  ;;  %v6550_v55 = vcombine.low %v2676_v45, %v2683_v39  ;;  %v7385_v45 = vld [vmem:[#allocation3 + $0x18] sm:$0xf] }
 0x244   : > { %v6545_v36 = vcombine.low %v2716_v5, %v2719_v47  ;;  %6581 = vmatprep.mubr.msk.bf16.mxu1 %vm752_vm5, %v6572_v51  ;;  %4391 = vmatprep.subr.bf16.mxu0 %v10337_v33  ;;  %v1977_v60 = vsel %vm752_vm5, %v9151_v21, %v1772_v8  ;;  %v4049_v51 = vor.u32 %v4048_v13, %v4044_v26  ;;  %v4060_v47 = vshll.u32 %v6641_v16, 16  ;;  %v3552_v26 = vld [vmem:[#allocation2 + $0x44] sm:$0x1] }
 0x245   : > { %4553 = vmatpush1.bf16.msra.mxu1 %v7241_v54  ;;  %v4055_v0 = vrot.slane %v4053_v44, 1  ;;  %v4067_v15 = vshll.u32 %v6642_v12, 16  ;;  %v4058_v44 = vshrl.u32 %v6641_v16, 16  ;;  %v4065_v4 = vshrl.u32 %v6642_v12, 16 }
 0x246   : > { %3335 = vmatmul.mubr.bf16.gmra.mrb[68].mxu0 %v6545_v36  ;;  %v1774_v49 = vpop.permute.xlu1 %1773  ;;  %4554 = vmatprep.subr.bf16.mxu1 %v10337_v33  ;;  %v3550_v36 = vld [vmem:[#allocation2 + $0x34] sm:$0x1] }
 0x247   : > { %v2517_v17 = vpop.permute.xlu0 %2516  ;;  %v1980_v11 = vsel %vm752_vm5, %v9163_v50, %v1774_v49  ;;  %6557 = vmatprep.mubr.msk.bf16.mxu0 %vm752_vm5, %v6548_v2  ;;  %4392 = vmatpush1.bf16.msra.mxu0 %v7241_v54  ;;  %v6643_v49 = vcombine.low %v8878_v31, %v3550_v36 }
 0x248   : > { %v6571_v20 = vcombine.low %v1977_v60, %v1980_v11  ;;  %4393 = vmatprep.subr.bf16.mxu0 %v10337_v33  ;;  %v2722_v50 = vsel %vm752_vm5, %v9175_v56, %v2517_v17  ;;  %v4056_v56 = vor.u32 %v4055_v0, %v4051_v61  ;;  %v4069_v60 = vrot.slane %v4067_v15, 1  ;;  %v3553_v0 = vld [vmem:[#allocation2 + $0x4c] sm:$0x1] }
 0x249   : > { %4555 = vmatpush1.bf16.msra.mxu1 %v7242_v28  ;;  %v6644_v17 = vcombine.low %v8885_v3, %v3551_v35 }
 0x24a   : > { %v2519_v21 = vpop.permute.xlu1 %2518  ;;  %5675 = vmatprep.subr.bf16.mxu1 %v10337_v33  ;;  %v6692_v2 = vcombine.low %v4049_v51, %v4056_v56  ;;  %v4070_v61 = vor.u32 %v4069_v60, %v4065_v4  ;;  %v6646_v51 = vcombine.low %v8899_v22, %v3553_v0 }
 0x24b   : > { %v2521_v52 = vpop.permute.xlu0 %2520  ;;  %3488 = vmatmul.mubr.bf16.gmra.mrb[72].mxu1 %v6571_v20  ;;  %v2725_v40 = vsel %vm752_vm5, %v9183_v18, %v2519_v21  ;;  %4394 = vmatpush1.bf16.msra.mxu0 %v7242_v28  ;;  %v4081_v29 = vshll.u32 %v6644_v17, 16  ;;  %v6645_v21 = vcombine.low %v8892_v7, %v3552_v26 }
 0x24c   : > { %v6547_v54 = vcombine.low %v2722_v50, %v2725_v40  ;;  %6582 = vmatprep.mubr.msk.bf16.mxu1 %vm752_vm5, %v6574_v9  ;;  %5514 = vmatprep.subr.bf16.mxu0 %v10337_v33  ;;  %v2728_v28 = vsel %vm752_vm5, %v9217_v53, %v2521_v52  ;;  %v10360_v53 = vcombine.low %v8746_v63, %v8758_v58  ;;  %v7386_v9 = vld [vmem:[#allocation3 + $0x10] sm:$0xf]  ;;  %v4072_v40 = vshrl.u32 %v6643_v49, 16 }
 0x24e   : > { %3343 = vmatmul.mubr.bf16.gmra.mrb[72].mxu0 %v6547_v54  ;;  %v1778_v59 = vpop.permute.xlu1 %1777  ;;  %v4079_v54 = vshrl.u32 %v6644_v17, 16 }
 0x24f   : > { %v1776_v5 = vpop.permute.xlu0 %1775  ;;  %v1986_v8 = vsel %vm752_vm5, %v9200_v10, %v1778_v59  ;;  %6558 = vmatprep.mubr.msk.bf16.mxu0 %vm752_vm5, %v6550_v55  ;;  %v4083_v59 = vrot.slane %v4081_v29, 1 }
 0x250   : > { %v1983_v18 = vsel %vm752_vm5, %v9211_v38, %v1776_v5  ;;  %v4062_v38 = vrot.slane %v4060_v47, 1  ;;  %v7387_v47 = vld [vmem:[#allocation3 + $0x28] sm:$0xf] }
 0x251   : > { %v6573_v25 = vcombine.low %v1983_v18, %v1986_v8  ;;  %v4095_v8 = vshll.u32 %v6646_v51, 16  ;;  %v3554_v18 = vld [vmem:[#allocation2 + $0x54] sm:$0x1]  ;;  %v4084_v22 = vor.u32 %v4083_v59, %v4079_v54  ;;  %v10364_v59 = vld [vmem:[#allocation42_spill] sm:$0xff] }
 0x252   : > { %v2523_v1 = vpop.permute.xlu1 %2522  ;;  %v4063_v13 = vor.u32 %v4062_v38, %v4058_v44  ;;  %v6647_v44 = vcombine.low %v8906_v27, %v3554_v18  ;;  %v4093_v38 = vshrl.u32 %v6646_v51, 16 }
 0x253   : > { %3496 = vmatmul.mubr.bf16.gmra.mrb[76].mxu1 %v6573_v25  ;;  %v2731_v10 = vsel %vm752_vm5, %v9231_v23, %v2523_v1  ;;  %v4074_v23 = vshll.u32 %v6643_v49, 16  ;;  %v3555_v25 = vld [vmem:[#allocation2 + $0x5c] sm:$0x1]  ;;  %v4086_v1 = vshrl.u32 %v6645_v21, 16  ;;  %v4097_v4 = vrot.slane %v4095_v8, 1 }
 0x254   : > { %v3644_v19 = vpop.permute.xlu0 %3643  ;;  %v6549_v57 = vcombine.low %v2728_v28, %v2731_v10  ;;  %6707 = vmatprep.mubr.msk.bf16.mxu1 %vm752_vm5, %v6692_v2  ;;  %v6694_v56 = vcombine.low %v4063_v13, %v4070_v61  ;;  %v7388_v2 = vld [vmem:[#allocation3 + $0x20] sm:$0xf]  ;;  %v6648_v60 = vcombine.low %v8913_v48, %v3555_v25  ;;  %v4100_v13 = vshrl.u32 %v6647_v44, 16  ;;  %v7390_v61 = vld [vmem:[#allocation3 + $0x30] sm:$0xf] }
 0x255   : > { %v3869_v50 = vsel %vm752_vm5, %v7386_v9, %v3644_v19  ;;  %v4076_v55 = vrot.slane %v4074_v23, 1  ;;  %v7389_v23 = vld [vmem:[#allocation3 + $0x38] sm:$0xf]  ;;  %v4098_v48 = vor.u32 %v4097_v4, %v4093_v38  ;;  %v3559_v8 = vld [vmem:[#allocation2 + $0x7c] sm:$0x1] }
 0x256   : > { %3351 = vmatmul.mubr.bf16.gmra.mrb[76].mxu0 %v6549_v57  ;;  %v3646_v11 = vpop.permute.xlu1 %3645  ;;  %v4109_v27 = vshll.u32 %v6648_v60, 16 }
 0x257   : > { %6683 = vmatprep.mubr.msk.bf16.mxu0 %vm752_vm5, %v10360_v53  ;;  %v3872_v39 = vsel %vm752_vm5, %v7385_v45, %v3646_v11  ;;  %v4077_v36 = vor.u32 %v4076_v55, %v4072_v40  ;;  %v3556_v53 = vld [vmem:[#allocation2 + $0x64] sm:$0x1]  ;;  %v3557_v45 = vld [vmem:[#allocation2 + $0x6c] sm:$0x1] }
 0x258   : > { %v3964_v20 = vpop.permute.xlu0 %3963  ;;  %v6655_v16 = vcombine.low %v3869_v50, %v3872_v39  ;;  %v6649_v9 = vcombine.low %v8920_v42, %v3556_v53  ;;  %v10363_v40 = vld [vmem:[#allocation50_spill] sm:$0xff] }
 0x259   : > { %v4157_v63 = vsel %vm752_vm5, %v9254_v30, %v3964_v20  ;;  %v10361_v30 = vcombine.low %v8763_v24, %v8783_v14  ;;  %v6696_v17 = vcombine.low %v4077_v36, %v4084_v22  ;;  %v6650_v54 = vcombine.low %v10363_v40, %v3557_v45  ;;  %v7393_v22 = vld [vmem:[#allocation2 + $0x40] sm:$0xf]  ;;  %v7395_v45 = vld [vmem:[#allocation3 + $0x58] sm:$0xf] }
 0x25a   : > { %v3966_v32 = vpop.permute.xlu1 %3965 }
 0x25b   : > { %v4160_v52 = vsel %vm752_vm5, %v8837_v43, %v3966_v32  ;;  %v4088_v43 = vshll.u32 %v6645_v21, 16  ;;  %v4107_v21 = vshrl.u32 %v6648_v60, 16  ;;  %v4123_v42 = vshll.u32 %v6650_v54, 16 }
 0x25c   : > { %v3648_v58 = vpop.permute.xlu0 %3647  ;;  %v6691_v12 = vcombine.low %v4157_v63, %v4160_v52  ;;  %v4111_v52 = vrot.slane %v4109_v27, 1  ;;  %v10370_v27 = vld [vmem:[#allocation45_spill] sm:$0xff] }
 0x25d   : > { %v3875_v28 = vsel %vm752_vm5, %v7388_v2, %v3648_v58  ;;  %v4090_v10 = vrot.slane %v4088_v43, 1 }
 0x25e   : > { %4404 = vmatmul.mubr.bf16.vlgmr.msra.gmra.mrb[80].mxu0 %v6655_v16  ;;  %4565 = vmatmul.mubr.bf16.vlgmr.msra.gmra.mrb[80].mxu1 %v6691_v12  ;;  %v3650_v7 = vpop.permute.xlu1 %3649  ;;  %v4112_v43 = vor.u32 %v4111_v52, %v4107_v21 }
 0x25f   : > { %6684 = vmatprep.mubr.msk.bf16.mxu0 %vm752_vm5, %v10361_v30  ;;  %6708 = vmatprep.mubr.msk.bf16.mxu1 %vm752_vm5, %v6694_v56  ;;  %v3878_v15 = vsel %vm752_vm5, %v7387_v47, %v3650_v7  ;;  %v4091_v29 = vor.u32 %v4090_v10, %v4086_v1  ;;  %v3558_v56 = vld [vmem:[#allocation2 + $0x74] sm:$0x1]  ;;  %v7391_v7 = vld [vmem:[#allocation3 + $0x48] sm:$0xf]  ;;  %v4114_v47 = vshrl.u32 %v6649_v9, 16 }
 0x260   : > { %v3968_v5 = vpop.permute.xlu0 %3967  ;;  %v6657_v49 = vcombine.low %v3875_v28, %v3878_v15  ;;  %v7392_v15 = vld [vmem:[#allocation3 + $0x40] sm:$0xf]  ;;  %v7394_v1 = vld [vmem:[#allocation2 + $0x48] sm:$0xf]  ;;  %v4121_v28 = vshrl.u32 %v6650_v54, 16 }
 0x261   : > { %v4163_v24 = vsel %vm752_vm5, %v8854_v34, %v3968_v5  ;;  %v10362_v34 = vcombine.low %v8786_v62, %v8788_v6  ;;  %v6698_v16 = vcombine.low %v4091_v29, %v4098_v48  ;;  %v7398_v54 = vld [vmem:[#allocation2 + $0x58] sm:$0xf] }
 0x262   : > { %v3970_v35 = vpop.permute.xlu1 %3969 }
 0x263   : > { %v4166_v19 = vsel %vm752_vm5, %v8869_v46, %v3970_v35  ;;  %v4102_v46 = vshll.u32 %v6647_v44, 16 }
 0x264   : > { %v3652_v14 = vpop.permute.xlu0 %3651  ;;  %v6693_v57 = vcombine.low %v4163_v24, %v4166_v19  ;;  %v10367_v24 = vld [vmem:[#allocation51_spill] sm:$0xff] }
 0x265   : > { %v3881_v0 = vsel %vm752_vm5, %v7390_v61, %v3652_v14  ;;  %v4104_v58 = vrot.slane %v4102_v46, 1  ;;  %v6651_v14 = vcombine.low %v10367_v24, %v3558_v56  ;;  %v10369_v46 = vld [vmem:[#allocation44_spill] sm:$0xff]  ;;  %v7399_v24 = vld [vmem:[#allocation3 + $0x68] sm:$0xf] }
 0x266   : > { %4412 = vmatmul.mubr.bf16.gmra.mrb[84].mxu0 %v6657_v49  ;;  %4573 = vmatmul.mubr.bf16.gmra.mrb[84].mxu1 %v6693_v57  ;;  %v3654_v11 = vpop.permute.xlu1 %3653  ;;  %v4125_v49 = vrot.slane %v4123_v42, 1  ;;  %v10368_v57 = vld [vmem:[#allocation52_spill] sm:$0xff]  ;;  %v10371_v53 = vcombine.low %v10369_v46, %v10370_v27 }
 0x267   : > { %6685 = vmatprep.mubr.msk.bf16.mxu0 %vm752_vm5, %v10362_v34  ;;  %6709 = vmatprep.mubr.msk.bf16.mxu1 %vm752_vm5, %v6696_v17  ;;  %v3884_v26 = vsel %vm752_vm5, %v7389_v23, %v3654_v11  ;;  %v4105_v30 = vor.u32 %v4104_v58, %v4100_v13  ;;  %v6652_v38 = vcombine.low %v10368_v57, %v3559_v8  ;;  %v7397_v58 = vld [vmem:[#allocation2 + $0x50] sm:$0xf] }
 0x268   : > { %v3972_v20 = vpop.permute.xlu0 %3971  ;;  %v6659_v50 = vcombine.low %v3881_v0, %v3884_v26  ;;  %v4130_v26 = vshll.u32 %v6651_v14, 16  ;;  %v4126_v61 = vor.u32 %v4125_v49, %v4121_v28  ;;  %v4128_v0 = vshrl.u32 %v6651_v14, 16 }
 0x269   : > { %v4169_v62 = vsel %vm752_vm5, %v8878_v31, %v3972_v20  ;;  %v10365_v31 = vld [vmem:[#allocation43_spill] sm:$0xff]  ;;  %v6700_v4 = vcombine.low %v4105_v30, %v4112_v43  ;;  %v3560_v20 = vld [vmem:[#allocation2 + $0x84] sm:$0x1]  ;;  %v4137_v48 = vshll.u32 %v6652_v38, 16 }
 0x26a   : > { %v3974_v39 = vpop.permute.xlu1 %3973  ;;  %v10366_v51 = vcombine.low %v10364_v59, %v10365_v31  ;;  %v4132_v59 = vrot.slane %v4130_v26, 1  ;;  %v4135_v31 = vshrl.u32 %v6652_v38, 16  ;;  %v7400_v38 = vld [vmem:[#allocation3 + $0x60] sm:$0xf] }
 0x26b   : > { %v4172_v32 = vsel %vm752_vm5, %v8885_v3, %v3974_v39  ;;  %v4116_v3 = vshll.u32 %v6649_v9, 16  ;;  %v4139_v56 = vrot.slane %v4137_v48, 1 }
 0x26c   : > { %v3656_v6 = vpop.permute.xlu0 %3655  ;;  %v6695_v63 = vcombine.low %v4169_v62, %v4172_v32  ;;  %v10372_v62 = vld [vmem:[#allocation53_spill] sm:$0xff]  ;;  %v3561_v32 = vld [vmem:[#allocation2 + $0x8c] sm:$0x1]  ;;  %v4133_v28 = vor.u32 %v4132_v59, %v4128_v0 }
 0x26d   : > { %v3887_v36 = vsel %vm752_vm5, %v7392_v15, %v3656_v6  ;;  %v4118_v44 = vrot.slane %v4116_v3, 1  ;;  %v9354_v6 = vcombine.low %v10372_v62, %v3560_v20  ;;  %v7402_v20 = vld [vmem:[#allocation2 + $0x68] sm:$0xf] }
 0x26e   : > { %4420 = vmatmul.mubr.bf16.gmra.mrb[88].mxu0 %v6659_v50  ;;  %4581 = vmatmul.mubr.bf16.gmra.mrb[88].mxu1 %v6695_v63  ;;  %v3658_v12 = vpop.permute.xlu1 %3657  ;;  %v7396_v50 = vld [vmem:[#allocation3 + $0x50] sm:$0xf] }
 0x26f   : > { %6686 = vmatprep.mubr.msk.bf16.mxu0 %vm752_vm5, %v10366_v51  ;;  %6710 = vmatprep.mubr.msk.bf16.mxu1 %vm752_vm5, %v6698_v16  ;;  %v3890_v5 = vsel %vm752_vm5, %v7391_v7, %v3658_v12  ;;  %v4119_v13 = vor.u32 %v4118_v44, %v4114_v47  ;;  %v10373_v7 = vld [vmem:[#allocation54_spill] sm:$0xff] }
 0x270   : > { %v3976_v55 = vpop.permute.xlu0 %3975  ;;  %v6661_v19 = vcombine.low %v3887_v36, %v3890_v5  ;;  %v6654_v5 = vcombine.low %v10373_v7, %v3561_v32 }
 0x271   : > { %v4175_v25 = vsel %vm752_vm5, %v7393_v22, %v3976_v55  ;;  %v6702_v8 = vcombine.low %v4119_v13, %v4126_v61  ;;  %v10374_v22 = vld [vmem:[#allocation46_spill] sm:$0xff] }
 0x272   : > { %v3978_v18 = vpop.permute.xlu1 %3977  ;;  %v4151_v44 = vshll.u32 %v6654_v5, 16  ;;  %v4149_v48 = vshrl.u32 %v6654_v5, 16  ;;  %v7406_v5 = vld [vmem:[#allocation2 + $0x78] sm:$0xf] }
 0x273   : > { %v4178_v2 = vsel %vm752_vm5, %v7394_v1, %v3978_v18  ;;  %v2934_v60 = vpop.f32.mrb[16].mxu0 }
 0x274   : > { %v3660_v35 = vpop.permute.xlu0 %3659  ;;  %v6697_v10 = vcombine.low %v4175_v25, %v4178_v2  ;;  %v2936_v11 = vpop.f32.mrb[17].mxu0  ;;  %v10375_v25 = vld [vmem:[#allocation47_spill] sm:$0xff]  ;;  %v4153_v62 = vrot.slane %v4151_v44, 1 }
 0x275   : > { %v2937_v23 = vpop.f32.mrb[18].mxu0  ;;  %v3893_v63 = vsel %vm752_vm5, %v7396_v50, %v3660_v35  ;;  %v10376_v35 = vcombine.low %v10374_v22, %v10375_v25  ;;  %v10377_v50 = vld [vmem:[#allocation48_spill] sm:$0xff] }
 0x276   : > { %4428 = vmatmul.mubr.bf16.gmra.mrb[92].mxu0 %v6661_v19  ;;  %4589 = vmatmul.mubr.bf16.gmra.mrb[92].mxu1 %v6697_v10  ;;  %v3662_v17 = vpop.permute.xlu1 %3661  ;;  %v2939_v29 = vpop.f32.mrb[19].mxu0  ;;  %v4140_v19 = vor.u32 %v4139_v56, %v4135_v31  ;;  %v4144_v10 = vshll.u32 %v9354_v6, 16 }
 0x277   : > { %6687 = vmatprep.mubr.msk.bf16.mxu0 %vm752_vm5, %v10371_v53  ;;  %6711 = vmatprep.mubr.msk.bf16.mxu1 %vm752_vm5, %v6700_v4  ;;  %v3896_v39 = vsel %vm752_vm5, %v7395_v45, %v3662_v17  ;;  %v4142_v29 = vshrl.u32 %v9354_v6, 16 }
 0x278   : > { %v3980_v34 = vpop.permute.xlu0 %3979  ;;  %v6663_v51 = vcombine.low %v3893_v63, %v3896_v39  ;;  %v6704_v13 = vcombine.low %v4133_v28, %v4140_v19  ;;  %v4146_v0 = vrot.slane %v4144_v10, 1  ;;  %v10378_v63 = vld [vmem:[#allocation49_spill] sm:$0xff] }
 0x279   : > { %v3151_v21 = vpop.f32.mrb[16].mxu1  ;;  %v4181_v52 = vsel %vm752_vm5, %v7397_v58, %v3980_v34  ;;  %v10379_v58 = vcombine.low %v10377_v50, %v10378_v63  ;;  %v7407_v19 = vld [vmem:[#allocation3 + $0x88] sm:$0xf] }
 0x27a   : > { %v3982_v9 = vpop.permute.xlu1 %3981  ;;  %v3153_v12 = vpop.f32.mrb[17].mxu1  ;;  %v9359_v55 = vadd.f32 %v3151_v21, %v2934_v60  ;;  %v7401_v60 = vld [vmem:[#allocation2 + $0x60] sm:$0xf] }
 0x27b   : > { %v4184_v16 = vsel %vm752_vm5, %v7398_v54, %v3982_v9  ;;  %v3154_v42 = vpop.f32.mrb[18].mxu1  ;;  %v4154_v12 = vor.u32 %v4153_v62, %v4149_v48 }
 0x27c   : > { %v3664_v40 = vpop.permute.xlu0 %3663  ;;  %v6699_v3 = vcombine.low %v4181_v52, %v4184_v16  ;;  %v3156_v30 = vpop.f32.mrb[19].mxu1  ;;  %v9362_v43 = vadd.f32 %v3154_v42, %v2937_v23  ;;  %v4147_v16 = vor.u32 %v4146_v0, %v4142_v29  ;;  %v7405_v42 = vld [vmem:[#allocation2 + $0x70] sm:$0xf] }
 0x27d   : > { %v2942_v18 = vpop.f32.mrb[20].mxu0  ;;  %v3899_v4 = vsel %vm752_vm5, %v7400_v38, %v3664_v40  ;;  %v7403_v40 = vld [vmem:[#allocation3 + $0x78] sm:$0xf]  ;;  %v7408_v38 = vld [vmem:[#allocation3 + $0x80] sm:$0xf] }
 0x27e   : > { %4436 = vmatmul.mubr.bf16.gmra.mrb[96].mxu0 %v6663_v51  ;;  %4597 = vmatmul.mubr.bf16.gmra.mrb[96].mxu1 %v6699_v3  ;;  %v3666_v47 = vpop.permute.xlu1 %3665  ;;  %v2944_v15 = vpop.f32.mrb[21].mxu0  ;;  %v7404_v51 = vld [vmem:[#allocation3 + $0x70] sm:$0xf] }
 0x27f   : > { %6688 = vmatprep.mubr.msk.bf16.mxu0 %vm752_vm5, %v10376_v35  ;;  %6712 = vmatprep.mubr.msk.bf16.mxu1 %vm752_vm5, %v6702_v8  ;;  %v2945_v1 = vpop.f32.mrb[22].mxu0  ;;  %v3902_v14 = vsel %vm752_vm5, %v7399_v24, %v3666_v47  ;;  %v6706_v35 = vcombine.low %v4147_v16, %v4154_v12 }
 0x280   : > { %v3984_v36 = vpop.permute.xlu0 %3983  ;;  %v2947_v2 = vpop.f32.mrb[23].mxu0  ;;  %v6665_v53 = vcombine.low %v3899_v4, %v3902_v14 }
 0x281   : > { %v4187_v17 = vsel %vm752_vm5, %v7401_v60, %v3984_v36  ;;  %v10380_v2 = vcombine.low %v8860_v41, %v8862_v37  ;;  %v7409_v60 = vld [vmem:[#allocation2 + $0x80] sm:$0xf]  ;;  %v7410_v41 = vld [vmem:[#allocation2 + $0x88] sm:$0xf] }
 0x282   : > { %v3159_v49 = vpop.f32.mrb[20].mxu1  ;;  %v3986_v57 = vpop.permute.xlu1 %3985 }
 0x283   : > { %v4190_v34 = vsel %vm752_vm5, %v7402_v20, %v3986_v57  ;;  %v3161_v46 = vpop.f32.mrb[21].mxu1  ;;  %v9374_v27 = vadd.f32 %v3159_v49, %v2942_v18 }
 0x284   : > { %v3668_v11 = vpop.permute.xlu0 %3667  ;;  %v6701_v23 = vcombine.low %v4187_v17, %v4190_v34  ;;  %v3162_v26 = vpop.f32.mrb[22].mxu1 }
 0x285   : > { %v3164_v45 = vpop.f32.mrb[23].mxu1  ;;  %v9377_v39 = vadd.f32 %v3162_v26, %v2945_v1  ;;  %v2950_v61 = vpop.f32.mrb[24].mxu0  ;;  %v3905_v3 = vsel %vm752_vm5, %v7404_v51, %v3668_v11 }
 0x286   : > { %4444 = vmatmul.mubr.bf16.gmra.mrb[100].mxu0 %v6665_v53  ;;  %4605 = vmatmul.mubr.bf16.gmra.mrb[100].mxu1 %v6701_v23  ;;  %v3670_v32 = vpop.permute.xlu1 %3669  ;;  %v2952_v21 = vpop.f32.mrb[25].mxu0 }
 0x287   : > { %6689 = vmatprep.mubr.msk.bf16.mxu0 %vm752_vm5, %v10379_v58  ;;  %6713 = vmatprep.mubr.msk.bf16.mxu1 %vm752_vm5, %v6704_v13  ;;  %v2953_v6 = vpop.f32.mrb[26].mxu0  ;;  %v3908_v54 = vsel %vm752_vm5, %v7403_v40, %v3670_v32 }
 0x288   : > { %v3988_v9 = vpop.permute.xlu0 %3987  ;;  %v2955_v52 = vpop.f32.mrb[27].mxu0  ;;  %v6667_v47 = vcombine.low %v3905_v3, %v3908_v54 }
 0x289   : > { %v4193_v56 = vsel %vm752_vm5, %v7405_v42, %v3988_v9 }
 0x28a   : > { %v3167_v59 = vpop.f32.mrb[24].mxu1  ;;  %v3990_v31 = vpop.permute.xlu1 %3989 }
 0x28b   : > { %v4196_v30 = vsel %vm752_vm5, %v7406_v5, %v3990_v31  ;;  %v3169_v8 = vpop.f32.mrb[25].mxu1  ;;  %v9388_v18 = vadd.f32 %v3167_v59, %v2950_v61 }
 0x28c   : > { %v3672_v7 = vpop.permute.xlu0 %3671  ;;  %v6703_v15 = vcombine.low %v4193_v56, %v4196_v30  ;;  %v3170_v36 = vpop.f32.mrb[26].mxu1 }
 0x28d   : > { %v3172_v22 = vpop.f32.mrb[27].mxu1  ;;  %v9390_v25 = vadd.f32 %v3170_v36, %v2953_v6  ;;  %v3911_v4 = vsel %vm752_vm5, %v7408_v38, %v3672_v7 }
 0x28e   : > { %4452 = vmatmul.mubr.bf16.gmra.mrb[104].mxu0 %v6667_v47  ;;  %4613 = vmatmul.mubr.bf16.gmra.mrb[104].mxu1 %v6703_v15  ;;  %v3674_v1 = vpop.permute.xlu1 %3673 }
 0x28f   : > { %6690 = vmatprep.mubr.msk.bf16.mxu0 %vm752_vm5, %v10380_v2  ;;  %6714 = vmatprep.mubr.msk.bf16.mxu1 %vm752_vm5, %v6706_v35  ;;  %v2958_v28 = vpop.f32.mrb[28].mxu0  ;;  %v3914_v10 = vsel %vm752_vm5, %v7407_v19, %v3674_v1 }
 0x290   : > { %v3992_v24 = vpop.permute.xlu0 %3991  ;;  %v2960_v14 = vpop.f32.mrb[29].mxu0  ;;  %v6669_v46 = vcombine.low %v3911_v4, %v3914_v10 }
 0x291   : > { %v2961_v44 = vpop.f32.mrb[30].mxu0  ;;  %v4199_v17 = vsel %vm752_vm5, %v7409_v60, %v3992_v24 }
 0x292   : > { %v3175_v49 = vpop.f32.mrb[28].mxu1  ;;  %v3994_v57 = vpop.permute.xlu1 %3993 }
 0x293   : > { %v4202_v37 = vsel %vm752_vm5, %v7410_v41, %v3994_v57  ;;  %v3177_v11 = vpop.f32.mrb[29].mxu1  ;;  %v9401_v20 = vadd.f32 %v3175_v49, %v2958_v28  ;;  %v2963_v34 = vpop.f32.mrb[31].mxu0  ;;  %v9421_v49 = vld [vmem:[#allocation4 + $0x4] sm:$0x1] }
 0x294   : > { %v6705_v53 = vcombine.low %v4199_v17, %v4202_v37  ;;  %v3178_v23 = vpop.f32.mrb[30].mxu1 }
 0x295   : > { %v3180_v26 = vpop.f32.mrb[31].mxu1  ;;  %v9403_v29 = vadd.f32 %v3178_v23, %v2961_v44  ;;  %v4937_v44 = vld [vmem:[#allocation4] sm:$0xf] }
 0x296   : > { %4460 = vmatmul.mubr.bf16.gmra.mrb[108].mxu0 %v6669_v46  ;;  %4621 = vmatmul.mubr.bf16.gmra.mrb[108].mxu1 %v6705_v53  ;;  %v6724_v57 = vcombine.low %v4937_v44, %v9421_v49 }
 0x297   : > { %v2966_v48 = vpop.f32.mrb[32].mxu0 }
 0x298   : > { %v2968_v45 = vpop.f32.mrb[33].mxu0  ;;  %v5002_v38 = vshrl.u32 %v6724_v57, 16  ;;  %v5004_v4 = vshll.u32 %v6724_v57, 16 }
 0x299   : > { %v2969_v13 = vpop.f32.mrb[34].mxu0 }
 0x29a   : > { %v3183_v61 = vpop.f32.mrb[32].mxu1  ;;  %v2971_v0 = vpop.f32.mrb[35].mxu0  ;;  %v5006_v41 = vrot.slane %v5004_v4, 1 }
 0x29b   : > { %v3185_v62 = vpop.f32.mrb[33].mxu1  ;;  %v9405_v32 = vadd.f32 %v3183_v61, %v2966_v48 }
 0x29c   : > { %v3186_v21 = vpop.f32.mrb[34].mxu1  ;;  %v5007_v34 = vor.u32 %v5006_v41, %v5002_v38 }
 0x29d   : > { %v3188_v9 = vpop.f32.mrb[35].mxu1  ;;  %v9407_v50 = vadd.f32 %v3186_v21, %v2969_v13 }
 0x29e   : > { %5057 = vrot.lane.b32.xlu0 %v5007_v34, %s7478_s10 }
 0x29f   : > { %v2974_v63 = vpop.f32.mrb[36].mxu0 }
 0x2a0   : > { %v2976_v58 = vpop.f32.mrb[37].mxu0 }
 0x2a1   : > { %v2977_v6 = vpop.f32.mrb[38].mxu0 }
 0x2a2   : > { %v3191_v52 = vpop.f32.mrb[36].mxu1  ;;  %v2979_v40 = vpop.f32.mrb[39].mxu0 }
 0x2a3   : > { %v3193_v54 = vpop.f32.mrb[37].mxu1  ;;  %v9409_v16 = vadd.f32 %v3191_v52, %v2974_v63 }
 0x2a4   : > { %v3194_v12 = vpop.f32.mrb[38].mxu1 }
 0x2a5   : > { %v3196_v59 = vpop.f32.mrb[39].mxu1  ;;  %v9411_v31 = vadd.f32 %v3194_v12, %v2977_v6 }
 0x2a7   : > { %v2982_v51 = vpop.f32.mrb[40].mxu0 }
 0x2a8   : > { %v2984_v3 = vpop.f32.mrb[41].mxu0 }
 0x2a9   : > { %v2985_v42 = vpop.f32.mrb[42].mxu0 }
 0x2aa   : > { %v3199_v56 = vpop.f32.mrb[40].mxu1  ;;  %v2987_v7 = vpop.f32.mrb[43].mxu0 }
 0x2ab   : > { %v3201_v5 = vpop.f32.mrb[41].mxu1  ;;  %v9413_v30 = vadd.f32 %v3199_v56, %v2982_v51 }
 0x2ac   : > { %v3202_v8 = vpop.f32.mrb[42].mxu1 }
 0x2ad   : > { %v3204_v47 = vpop.f32.mrb[43].mxu1  ;;  %v9415_v15 = vadd.f32 %v3202_v8, %v2985_v42 }
 0x2af   : > { %v2990_v36 = vpop.f32.mrb[44].mxu0 }
 0x2b0   : > { %v2992_v22 = vpop.f32.mrb[45].mxu0 }
 0x2b1   : > { %v2993_v35 = vpop.f32.mrb[46].mxu0 }
 0x2b2   : > { %v3207_v1 = vpop.f32.mrb[44].mxu1  ;;  %v2995_v2 = vpop.f32.mrb[47].mxu0 }
 0x2b3   : > { %v3209_v28 = vpop.f32.mrb[45].mxu1  ;;  %v9417_v24 = vadd.f32 %v3207_v1, %v2990_v36 }
 0x2b4   : > { %v3210_v14 = vpop.f32.mrb[46].mxu1 }
 0x2b5   : > { %v3212_v19 = vpop.f32.mrb[47].mxu1  ;;  %v9419_v10 = vadd.f32 %v3210_v14, %v2993_v35 }
 0x2ea   : > { %v3441_v60 = vpop.f32.mrb[48].mxu1 }
 0x2eb   : > { %v3443_v17 = vpop.f32.mrb[49].mxu1 }
 0x2ec   : > { %v3444_v37 = vpop.f32.mrb[50].mxu1 }
 0x2ed   : > { %v3446_v11 = vpop.f32.mrb[51].mxu1 }
 0x2f0   : > { %v3296_v46 = vpop.f32.mrb[48].mxu0 }
 0x2f1   : > { %v9424_v53 = vadd.f32 %v3441_v60, %v3296_v46  ;;  %v3298_v23 = vpop.f32.mrb[49].mxu0 }
 0x2f2   : > { %v3299_v26 = vpop.f32.mrb[50].mxu0 }
 0x2f3   : > { %v9427_v48 = vadd.f32 %v3444_v37, %v3299_v26  ;;  %v3301_v45 = vpop.f32.mrb[51].mxu0  ;;  %v3449_v13 = vpop.f32.mrb[52].mxu1 }
 0x2f4   : > { %v3451_v61 = vpop.f32.mrb[53].mxu1 }
 0x2f5   : > { %v3452_v0 = vpop.f32.mrb[54].mxu1 }
 0x2f6   : > { %v3454_v62 = vpop.f32.mrb[55].mxu1 }
 0x2f8   : > { %v3304_v21 = vpop.f32.mrb[52].mxu0 }
 0x2f9   : > { %v9429_v9 = vadd.f32 %v3449_v13, %v3304_v21  ;;  %v3306_v63 = vpop.f32.mrb[53].mxu0 }
 0x2fa   : > { %v3307_v58 = vpop.f32.mrb[54].mxu0 }
 0x2fb   : > { %v9431_v6 = vadd.f32 %v3452_v0, %v3307_v58  ;;  %v3309_v52 = vpop.f32.mrb[55].mxu0 }
 0x2fc   : > { %v3457_v40 = vpop.f32.mrb[56].mxu1 }
 0x2fd   : > { %v3459_v54 = vpop.f32.mrb[57].mxu1 }
 0x2fe   : > { %v3460_v12 = vpop.f32.mrb[58].mxu1 }
 0x2ff   : > { %v3462_v59 = vpop.f32.mrb[59].mxu1 }
 0x300   : > { %v3312_v51 = vpop.f32.mrb[56].mxu0  ;;  %v7270_v59 = vld [vmem:[%s10233_s5 + $0x60] sm:$0xff]  }
 0x301   : > { %v9433_v3 = vadd.f32 %v3457_v40, %v3312_v51  ;;  %v3314_v42 = vpop.f32.mrb[57].mxu0  ;;  %v7271_v51 = vld [vmem:[%s10233_s5] sm:$0xff]   ;;  %5515 = vmatpush1.bf16.msra.mxu0 %v7270_v59 }
 0x302   : > { %v3315_v56 = vpop.f32.mrb[58].mxu0  ;;  %5676 = vmatpush1.bf16.msra.mxu1 %v7271_v51  ;;  %5516 = vmatprep.subr.bf16.mxu0 %v10337_v33 }
 0x303   : > { %v9435_v7 = vadd.f32 %v3460_v12, %v3315_v56  ;;  %v3317_v5 = vpop.f32.mrb[59].mxu0  ;;  %5677 = vmatprep.subr.bf16.mxu1 %v10337_v33 }
 0x305   : > { %v3465_v8 = vpop.f32.mrb[60].mxu1 }
 0x306   : > { %v3467_v47 = vpop.f32.mrb[61].mxu1 }
 0x307   : > { %v3468_v36 = vpop.f32.mrb[62].mxu1 }
 0x308   : > { %v3470_v22 = vpop.f32.mrb[63].mxu1  ;;  %v3320_v35 = vpop.f32.mrb[60].mxu0 }
 0x309   : > { %v9437_v1 = vadd.f32 %v3465_v8, %v3320_v35  ;;  %v3322_v2 = vpop.f32.mrb[61].mxu0 }
 0x30a   : > { %v3323_v28 = vpop.f32.mrb[62].mxu0 }
 0x30b   : > { %v9439_v14 = vadd.f32 %v3468_v36, %v3323_v28  ;;  %v3325_v19 = vpop.f32.mrb[63].mxu0  ;;  %v7273_v36 = vld [vmem:[%s10233_s5 + $0x8] sm:$0xff]  }
 0x30c   : > { %5678 = vmatpush1.bf16.msra.mxu1 %v7273_v36 }
 0x30d   : > { %v3473_v44 = vpop.f32.mrb[64].mxu1  ;;  %5679 = vmatprep.subr.bf16.mxu1 %v10337_v33 }
 0x30e   : > { %v3475_v57 = vpop.f32.mrb[65].mxu1 }
 0x30f   : > { %v3476_v38 = vpop.f32.mrb[66].mxu1  ;;  %v7275_v57 = vld [vmem:[%s10233_s5 + $0x10] sm:$0xff]  }
 0x310   : > { %v3478_v4 = vpop.f32.mrb[67].mxu1  ;;  %5680 = vmatpush1.bf16.msra.mxu1 %v7275_v57  ;;  %v7282_v57 = vld [vmem:[%s10233_s5 + $0x30] sm:$0xff]  }
 0x311   : > { %v3328_v60 = vpop.f32.mrb[64].mxu0  ;;  %5681 = vmatprep.subr.bf16.mxu1 %v10337_v33 }
 0x312   : > { %v9441_v17 = vadd.f32 %v3473_v44, %v3328_v60  ;;  %v3330_v41 = vpop.f32.mrb[65].mxu0  ;;  %v7274_v44 = vld [vmem:[%s10233_s5 + $0x68] sm:$0xff]  }
 0x313   : > { %v3331_v37 = vpop.f32.mrb[66].mxu0  ;;  %5517 = vmatpush1.bf16.msra.mxu0 %v7274_v44  ;;  %v7281_v44 = vld [vmem:[%s10233_s5 + $0x80] sm:$0xff]  }
 0x314   : > { %v9443_v11 = vadd.f32 %v3476_v38, %v3331_v37  ;;  %v3333_v34 = vpop.f32.mrb[67].mxu0  ;;  %5518 = vmatprep.subr.bf16.mxu0 %v10337_v33 }
 0x315   : > { %v7276_v34 = vld [vmem:[%s10233_s5 + $0x70] sm:$0xff]  }
 0x316   : > { %v3481_v46 = vpop.f32.mrb[68].mxu1 }
 0x317   : > { %v3483_v23 = vpop.f32.mrb[69].mxu1  ;;  %5519 = vmatpush1.bf16.msra.mxu0 %v7276_v34 }
 0x318   : > { %v3484_v26 = vpop.f32.mrb[70].mxu1  ;;  %5520 = vmatprep.subr.bf16.mxu0 %v10337_v33  ;;  %v9488_v23 = vld [vmem:[%s10232_s4] ss:$0 sm:$0xff] }
 0x319   : > { %v3486_v45 = vpop.f32.mrb[71].mxu1  ;;  %v3336_v13 = vpop.f32.mrb[68].mxu0 }
 0x31a   : > { %v9445_v61 = vadd.f32 %v3481_v46, %v3336_v13  ;;  %v3338_v0 = vpop.f32.mrb[69].mxu0  ;;  %v7277_v46 = vld [vmem:[%s10233_s5 + $0x18] sm:$0xff]  }
 0x31b   : > { %v3339_v62 = vpop.f32.mrb[70].mxu0  ;;  %5682 = vmatpush1.bf16.msra.mxu1 %v7277_v46  ;;  %v7278_v13 = vld [vmem:[%s10233_s5 + $0x78] sm:$0xff]   ;;  %v7279_v0 = vld [vmem:[%s10233_s5 + $0x20] sm:$0xff]  }
 0x31c   : > { %v9447_v21 = vadd.f32 %v3484_v26, %v3339_v62  ;;  %v3341_v63 = vpop.f32.mrb[71].mxu0  ;;  %5683 = vmatprep.subr.bf16.mxu1 %v10337_v33  ;;  %5521 = vmatpush1.bf16.msra.mxu0 %v7278_v13 }
 0x31d   : > { %5522 = vmatprep.subr.bf16.mxu0 %v10337_v33 }
 0x31e   : > { %v3489_v58 = vpop.f32.mrb[72].mxu1 }
 0x31f   : > { %v3491_v52 = vpop.f32.mrb[73].mxu1  ;;  %5684 = vmatpush1.bf16.msra.mxu1 %v7279_v0 }
 0x320   : > { %v3492_v40 = vpop.f32.mrb[74].mxu1  ;;  %5685 = vmatprep.subr.bf16.mxu1 %v10337_v33  ;;  %5523 = vmatpush1.bf16.msra.mxu0 %v7281_v44 }
 0x321   : > { %v3494_v54 = vpop.f32.mrb[75].mxu1  ;;  %v3344_v12 = vpop.f32.mrb[72].mxu0  ;;  %5524 = vmatprep.subr.bf16.mxu0 %v10337_v33 }
 0x322   : > { %v9455_v42 = vadd.f32 %v3489_v58, %v3344_v12  ;;  %v3346_v56 = vpop.f32.mrb[73].mxu0 }
 0x323   : > { %v3347_v5 = vpop.f32.mrb[74].mxu0 }
 0x324   : > { %v9457_v8 = vadd.f32 %v3492_v40, %v3347_v5  ;;  %v3349_v47 = vpop.f32.mrb[75].mxu0 }
 0x326   : > { %v3497_v22 = vpop.f32.mrb[76].mxu1 }
 0x327   : > { %v3499_v35 = vpop.f32.mrb[77].mxu1 }
 0x328   : > { %v3500_v2 = vpop.f32.mrb[78].mxu1 }
 0x329   : > { %v3502_v28 = vpop.f32.mrb[79].mxu1  ;;  %v3352_v19 = vpop.f32.mrb[76].mxu0 }
 0x32a   : > { %v9471_v38 = vadd.f32 %v3497_v22, %v3352_v19  ;;  %v3354_v4 = vpop.f32.mrb[77].mxu0 }
 0x32b   : > { %v3355_v60 = vpop.f32.mrb[78].mxu0 }
 0x32c   : > { %v9473_v41 = vadd.f32 %v3500_v2, %v3355_v60  ;;  %v3357_v37 = vpop.f32.mrb[79].mxu0 }
 0x331   : > { %v4405_v26 = vpop.f32.mrb[80].mxu0  ;;  %v4566_v45 = vpop.f32.mrb[80].mxu1 }
 0x332   : > { %v4468_v62 = vadd.f32 %v4405_v26, %v9359_v55  ;;  %v4629_v63 = vadd.f32 %v4566_v45, %v9424_v53  ;;  %v4407_v58 = vpop.f32.mrb[81].mxu0  ;;  %v4568_v52 = vpop.f32.mrb[81].mxu1  ;;  %v7280_v55 = vld [vmem:[%s10233_s5 + $0x28] sm:$0xff]  }
 0x333   : > { %v4408_v40 = vpop.f32.mrb[82].mxu0  ;;  %v4569_v54 = vpop.f32.mrb[82].mxu1  ;;  %5686 = vmatpush1.bf16.msra.mxu1 %v7280_v55 }
 0x334   : > { %v4651_v12 = vadd.f32 %v9488_v23, %v4468_v62  ;;  %v4683_v59 = vadd.f32 %v9488_v23, %v4629_v63  ;;  %v4469_v51 = vadd.f32 %v4408_v40, %v9362_v43  ;;  %v4630_v56 = vadd.f32 %v4569_v54, %v9427_v48  ;;  %v4410_v5 = vpop.f32.mrb[83].mxu0  ;;  %v4571_v47 = vpop.f32.mrb[83].mxu1  ;;  %5687 = vmatprep.subr.bf16.mxu1 %v10337_v33  ;;  %v7283_v54 = vld [vmem:[%s10233_s5 + $0x88] sm:$0xff]  }
 0x335   : > { %5525 = vmatpush1.bf16.msra.mxu0 %v7283_v54 }
 0x336   : > { %v4667_v53 = vmax.f32 %v4651_v12, 0.0  ;;  %v4699_v36 = vmax.f32 %v4683_v59, 0.0  ;;  %v4652_v22 = vadd.f32 %v9488_v23, %v4469_v51  ;;  %v4684_v35 = vadd.f32 %v9488_v23, %v4630_v56  ;;  %v7284_v12 = vld [vmem:[%s10233_s5 + $0x38] sm:$0xff]   ;;  %5526 = vmatprep.subr.bf16.mxu0 %v10337_v33 }
 0x337   : > { %5688 = vmatpush1.bf16.msra.mxu1 %v7282_v57 }
 0x338   : > { %v4715_v43 = vmax.f32 %v4667_v53, %v4699_v36  ;;  %v4668_v2 = vmax.f32 %v4652_v22, 0.0  ;;  %v4700_v48 = vmax.f32 %v4684_v35, 0.0  ;;  %5689 = vmatprep.subr.bf16.mxu1 %v10337_v33  ;;  %v7285_v35 = vld [vmem:[%s10233_s5 + $0x90] sm:$0xff]  }
 0x339   : > { %v4413_v28 = vpop.f32.mrb[84].mxu0  ;;  %v4574_v19 = vpop.f32.mrb[84].mxu1  ;;  %5527 = vmatpush1.bf16.msra.mxu0 %v7285_v35 }
 0x33a   : > { %v4716_v4 = vmax.f32 %v4668_v2, %v4700_v48  ;;  %v4470_v60 = vadd.f32 %v4413_v28, %v9374_v27  ;;  %v4631_v37 = vadd.f32 %v4574_v19, %v9429_v9  ;;  %v4415_v34 = vpop.f32.mrb[85].mxu0  ;;  %v4576_v46 = vpop.f32.mrb[85].mxu1  ;;  %v4731_v26 = vsel %vm752_vm5, %v4715_v43, -inf  ;;  %v7286_v19 = vld [vmem:[%s10233_s5 + $0x40] sm:$0xff]   ;;  %5528 = vmatprep.subr.bf16.mxu0 %v10337_v33 }
 0x33b   : > { %v4416_v45 = vpop.f32.mrb[86].mxu0  ;;  %v4577_v13 = vpop.f32.mrb[86].mxu1  ;;  %5690 = vmatpush1.bf16.msra.mxu1 %v7284_v12  ;;  %v4889_v34 = vld [vmem:[#allocation4 + $0x8] sm:$0xf]  ;;  %v4892_v46 = vld [vmem:[#allocation4 + $0xc] sm:$0x1] }
 0x33c   : > { %v4732_v0 = vsel %vm752_vm5, %v4716_v4, -inf  ;;  %v4653_v62 = vadd.f32 %v9488_v23, %v4470_v60  ;;  %v4685_v63 = vadd.f32 %v9488_v23, %v4631_v37  ;;  %v4471_v58 = vadd.f32 %v4416_v45, %v9377_v39  ;;  %v4418_v52 = vpop.f32.mrb[87].mxu0  ;;  %v4579_v27 = vpop.f32.mrb[87].mxu1  ;;  %5691 = vmatprep.subr.bf16.mxu1 %v10337_v33 }
 0x33d   : > { %v4733_v9 = vmax.f32 %v4731_v26, %v4732_v0  ;;  %v4632_v40 = vadd.f32 %v4577_v13, %v9431_v6  ;;  %v7287_v27 = vld [vmem:[%s10233_s5 + $0x98] sm:$0xff]  }
 0x33e   : > { %v4669_v59 = vmax.f32 %v4653_v62, 0.0  ;;  %v4701_v51 = vmax.f32 %v4685_v63, 0.0  ;;  %v4654_v39 = vadd.f32 %v9488_v23, %v4471_v58  ;;  %5529 = vmatpush1.bf16.msra.mxu0 %v7287_v27 }
 0x33f   : > { %v6916_v56 = vpack.c.bf16 %v4733_v9, %v4733_v9  ;;  %v4686_v5 = vadd.f32 %v9488_v23, %v4632_v40  ;;  %5692 = vmatpush1.bf16.msra.mxu1 %v7286_v19  ;;  %5530 = vmatprep.subr.bf16.mxu0 %v10337_v33 }
 0x340   : > { %v4717_v47 = vmax.f32 %v4669_v59, %v4701_v51  ;;  %v4670_v55 = vmax.f32 %v4654_v39, 0.0  ;;  %5693 = vmatprep.subr.bf16.mxu1 %v10337_v33 }
 0x341   : > { %v4809_v6 = vshrl.u32 %v6916_v56, 16  ;;  %v4702_v53 = vmax.f32 %v4686_v5, 0.0  ;;  %v4421_v36 = vpop.f32.mrb[88].mxu0  ;;  %v4582_v22 = vpop.f32.mrb[88].mxu1  ;;  %v4812_v57 = vshll.u32 %v6916_v56, 16  ;;  %v7289_v5 = vld [vmem:[%s10233_s5 + $0xa0] sm:$0xff]  }
 0x342   : > { %v4472_v43 = vadd.f32 %v4421_v36, %v9388_v18  ;;  %v4633_v2 = vadd.f32 %v4582_v22, %v9433_v3  ;;  %v4423_v48 = vpop.f32.mrb[89].mxu0  ;;  %v4584_v28 = vpop.f32.mrb[89].mxu1  ;;  %v4734_v58 = vsel %vm752_vm5, %v4717_v47, -inf  ;;  %v7290_v36 = vld [vmem:[%s10233_s5 + $0x50] sm:$0xff]   ;;  %5531 = vmatpush1.bf16.msra.mxu0 %v7289_v5 }
 0x343   : > { %v4811_v44 = vrot.slane %v4809_v6, 7  ;;  %v4718_v4 = vmax.f32 %v4670_v55, %v4702_v53  ;;  %v4424_v60 = vpop.f32.mrb[90].mxu0  ;;  %v4585_v37 = vpop.f32.mrb[90].mxu1  ;;  %v4953_v53 = vld [vmem:[#allocation4] sm:$0xe]  ;;  %5532 = vmatprep.subr.bf16.mxu0 %v10337_v33 }
 0x344   : > { %v4655_v26 = vadd.f32 %v9488_v23, %v4472_v43  ;;  %v4687_v18 = vadd.f32 %v9488_v23, %v4633_v2  ;;  %v4473_v3 = vadd.f32 %v4424_v60, %v9390_v25  ;;  %v4634_v45 = vadd.f32 %v4585_v37, %v9435_v7  ;;  %v4426_v13 = vpop.f32.mrb[91].mxu0  ;;  %v4587_v0 = vpop.f32.mrb[91].mxu1  ;;  %v7288_v25 = vld [vmem:[%s10233_s5 + $0x48] sm:$0xff]  }
 0x345   : > { %v4814_v62 = vor.u32 %v4812_v57, %v4811_v44  ;;  %v4815_v63 = vrot.slane %v4811_v44, 4  ;;  %v4735_v52 = vsel %vm752_vm5, %v4718_v4, -inf  ;;  %5694 = vmatpush1.bf16.msra.mxu1 %v7288_v25  ;;  %v4895_v13 = vld [vmem:[#allocation4 + $0x10] sm:$0xf]  ;;  %v4898_v0 = vld [vmem:[#allocation4 + $0x14] sm:$0x1] }
 0x346   : > { %v4736_v7 = vmax.f32 %v4734_v58, %v4735_v52  ;;  %v4671_v9 = vmax.f32 %v4655_v26, 0.0  ;;  %v4703_v40 = vmax.f32 %v4687_v18, 0.0  ;;  %v4656_v54 = vadd.f32 %v9488_v23, %v4473_v3  ;;  %5695 = vmatprep.subr.bf16.mxu1 %v10337_v33 }
 0x347   : > { %v4890_v59 = vsel %vm8084_vm7, %v4814_v62, %v4889_v34  ;;  %v4893_v39 = vsel %vm7691_vm4, %v4815_v63, %v4892_v46  ;;  %v4688_v56 = vadd.f32 %v9488_v23, %v4634_v45  ;;  %v6732_v34 = vcombine.low %v4953_v53, %v9421_v49 }
 0x348   : > { %4891 = vst [vmem:[#allocation4 + $0x8] sm:$0xf] %v4890_v59  ;;  %4894 = vst [vmem:[#allocation4 + $0xc] sm:$0x1] %v4893_v39  ;;  %v6917_v47 = vpack.c.bf16 %v4736_v7, %v4736_v7  ;;  %v4719_v55 = vmax.f32 %v4671_v9, %v4703_v40  ;;  %v4672_v6 = vmax.f32 %v4656_v54, 0.0 }
 0x349   : > { %v4704_v22 = vmax.f32 %v4688_v56, 0.0  ;;  %v4429_v35 = vpop.f32.mrb[92].mxu0  ;;  %v4590_v43 = vpop.f32.mrb[92].mxu1  ;;  %5696 = vmatpush1.bf16.msra.mxu1 %v7290_v36  ;;  %v5097_v40 = vrot.slane %v6732_v34, 1 }
 0x34a   : > { %v4817_v2 = vshrl.u32 %v6917_v47, 16  ;;  %v4474_v48 = vadd.f32 %v4429_v35, %v9401_v20  ;;  %v4431_v28 = vpop.f32.mrb[93].mxu0  ;;  %v4592_v19 = vpop.f32.mrb[93].mxu1  ;;  %v4820_v44 = vshll.u32 %v6917_v47, 16  ;;  %v4635_v4 = vadd.f32 %v4590_v43, %v9437_v1  ;;  %5697 = vmatprep.subr.bf16.mxu1 %v10337_v33 }
 0x34b   : > { %v4720_v57 = vmax.f32 %v4672_v6, %v4704_v22  ;;  %v4432_v60 = vpop.f32.mrb[94].mxu0  ;;  %v4593_v37 = vpop.f32.mrb[94].mxu1  ;;  %v4737_v1 = vsel %vm752_vm5, %v4719_v55, -inf }
 0x34c   : > { %v4819_v46 = vrot.slane %v4817_v2, 7  ;;  %v4657_v26 = vadd.f32 %v9488_v23, %v4474_v48  ;;  %v4475_v18 = vadd.f32 %v4432_v60, %v9403_v29  ;;  %v4636_v3 = vadd.f32 %v4593_v37, %v9439_v14  ;;  %v4434_v45 = vpop.f32.mrb[95].mxu0  ;;  %v4595_v20 = vpop.f32.mrb[95].mxu1 }
 0x34d   : > { %v4738_v62 = vsel %vm752_vm5, %v4720_v57, -inf  ;;  %v4689_v49 = vadd.f32 %v9488_v23, %v4635_v4  ;;  %v4901_v57 = vld [vmem:[#allocation4 + $0x18] sm:$0xf] }
 0x34e   : > { %v4822_v63 = vor.u32 %v4820_v44, %v4819_v46  ;;  %v4823_v58 = vrot.slane %v4819_v46, 4  ;;  %v4739_v29 = vmax.f32 %v4737_v1, %v4738_v62  ;;  %v4673_v52 = vmax.f32 %v4657_v26, 0.0  ;;  %v4904_v1 = vld [vmem:[#allocation4 + $0x1c] sm:$0x1] }
 0x34f   : > { %v4705_v14 = vmax.f32 %v4689_v49, 0.0  ;;  %v4658_v27 = vadd.f32 %v9488_v23, %v4475_v18  ;;  %v4690_v25 = vadd.f32 %v9488_v23, %v4636_v3  ;;  %v4946_v7 = vld [vmem:[#allocation4 + $0xc] sm:$0x1]  ;;  %v4954_v9 = vld [vmem:[#allocation4 + $0x8] sm:$0xe] }
 0x350   : > { %v4896_v54 = vsel %vm8084_vm7, %v4822_v63, %v4895_v13  ;;  %v4899_v59 = vsel %vm7691_vm4, %v4823_v58, %v4898_v0  ;;  %v6918_v39 = vpack.c.bf16 %v4739_v29, %v4739_v29  ;;  %v6733_v56 = vcombine.low %v4954_v9, %v4946_v7  ;;  %v9589_v5 = vld [vmem:[#allocation4 + $0x8] sm:$0xf]  ;;  %v9591_v47 = vld [vmem:[#allocation4 + $0xc] sm:$0x1]  ;;  %v7292_v0 = vld [vmem:[%s10233_s5 + $0x58] sm:$0xff]  }
 0x351   : > { %4897 = vst [vmem:[#allocation4 + $0x10] sm:$0xf] %v4896_v54  ;;  %4900 = vst [vmem:[#allocation4 + $0x14] sm:$0x1] %v4899_v59  ;;  %v4721_v55 = vmax.f32 %v4673_v52, %v4705_v14  ;;  %v4674_v6 = vmax.f32 %v4658_v27, 0.0  ;;  %v4706_v53 = vmax.f32 %v4690_v25, 0.0  ;;  %v6740_v35 = vcombine.low %v9589_v5, %v9591_v47  ;;  %5698 = vmatpush1.bf16.msra.mxu1 %v7292_v0 }
 0x352   : > { %v4437_v36 = vpop.f32.mrb[96].mxu0  ;;  %v4598_v22 = vpop.f32.mrb[96].mxu1  ;;  %v4825_v43 = vshrl.u32 %v6918_v39, 16  ;;  %v4828_v2 = vshll.u32 %v6918_v39, 16  ;;  %v5098_v46 = vrot.slane %v6733_v56, 1  ;;  %v7293_v25 = vld [vmem:[%s10233_s5 + $0xb0] sm:$0xff]   ;;  %6985 = vmatprep.subr.bf16.mxu1 %v10337_v33 }
 0x353   : > { %v4476_v48 = vadd.f32 %v4437_v36, %v9405_v32  ;;  %v4637_v28 = vadd.f32 %v4598_v22, %v9441_v17  ;;  %v4439_v19 = vpop.f32.mrb[97].mxu0  ;;  %v4600_v44 = vpop.f32.mrb[97].mxu1  ;;  %v4740_v4 = vsel %vm752_vm5, %v4721_v55, -inf  ;;  %v4722_v60 = vmax.f32 %v4674_v6, %v4706_v53  ;;  %v7291_v17 = vld [vmem:[%s10233_s5 + $0xa8] sm:$0xff]  }
 0x354   : > { %v4440_v37 = vpop.f32.mrb[98].mxu0  ;;  %v4601_v34 = vpop.f32.mrb[98].mxu1  ;;  %v5242_v26 = vshrl.u32 %v6740_v35, 16  ;;  %v4827_v18 = vrot.slane %v4825_v43, 7  ;;  %v6805_v63 = vcombine.low %v5097_v40, %v5098_v46  ;;  %v5244_v58 = vshll.u32 %v6740_v35, 16  ;;  %5533 = vmatpush1.bf16.msra.mxu0 %v7291_v17 }
 0x355   : > { %v4659_v3 = vadd.f32 %v9488_v23, %v4476_v48  ;;  %v4691_v45 = vadd.f32 %v9488_v23, %v4637_v28  ;;  %v4477_v20 = vadd.f32 %v4440_v37, %v9407_v50  ;;  %v4442_v32 = vpop.f32.mrb[99].mxu0  ;;  %v4603_v13 = vpop.f32.mrb[99].mxu1  ;;  %v4741_v62 = vsel %vm752_vm5, %v4722_v60, -inf  ;;  %v9609_v29 = vld [vmem:[#allocation4 + $0x8] sm:$0xf]  ;;  %5534 = vmatprep.subr.bf16.mxu0 %v10337_v33 }
 0x356   : > { %v4638_v49 = vadd.f32 %v4601_v34, %v9443_v11  ;;  %v4830_v50 = vor.u32 %v4828_v2, %v4827_v18  ;;  %v4831_v52 = vrot.slane %v4827_v18, 4  ;;  %v4742_v14 = vmax.f32 %v4740_v4, %v4741_v62  ;;  %6824 = vmatprep.mubr.msk.bf16.mxu1 %vm752_vm5, %v6805_v63  ;;  %v5193_v2 = vld [vmem:[#allocation4 + $0x8] sm:$0xe]  ;;  %v4907_v60 = vld [vmem:[#allocation4 + $0x20] sm:$0xf] }
 0x357   : > { %v4675_v27 = vmax.f32 %v4659_v3, 0.0  ;;  %v4707_v9 = vmax.f32 %v4691_v45, 0.0  ;;  %v4660_v54 = vadd.f32 %v9488_v23, %v4477_v20  ;;  %v5246_v11 = vrot.slane %v5244_v58, 1  ;;  %v4910_v45 = vld [vmem:[#allocation4 + $0x24] sm:$0x1] }
 0x358   : > { %v4692_v59 = vadd.f32 %v9488_v23, %v4638_v49  ;;  %v4902_v40 = vsel %vm8084_vm7, %v4830_v50, %v4901_v57  ;;  %v4905_v39 = vsel %vm7691_vm4, %v4831_v52, %v4904_v1  ;;  %v6919_v56 = vpack.c.bf16 %v4742_v14, %v4742_v14  ;;  %5535 = vmatpush1.bf16.msra.mxu0 %v7293_v25  ;;  %v5194_v49 = vld [vmem:[#allocation4 + $0x10] sm:$0xe] }
 0x359   : > { %v6725_v55 = vcombine.low %v9609_v29, %v4946_v7  ;;  %4903 = vst [vmem:[#allocation4 + $0x18] sm:$0xf] %v4902_v40  ;;  %4906 = vst [vmem:[#allocation4 + $0x1c] sm:$0x1] %v4905_v39  ;;  %v4723_v6 = vmax.f32 %v4675_v27, %v4707_v9  ;;  %v4676_v53 = vmax.f32 %v4660_v54, 0.0  ;;  %v5247_v22 = vor.u32 %v5246_v11, %v5242_v26  ;;  %v4445_v35 = vpop.f32.mrb[100].mxu0 }
 0x35a   : > { %v4708_v36 = vmax.f32 %v4692_v59, 0.0  ;;  %v4606_v43 = vpop.f32.mrb[100].mxu1  ;;  %v4833_v48 = vshrl.u32 %v6919_v56, 16  ;;  %v4836_v28 = vshll.u32 %v6919_v56, 16  ;;  %v4447_v57 = vpop.f32.mrb[101].mxu0  ;;  %v4478_v34 = vadd.f32 %v4445_v35, %v9409_v16  ;;  %5536 = vmatprep.subr.bf16.mxu0 %v10337_v33 }
 0x35b   : > { %v5009_v19 = vshrl.u32 %v6725_v55, 16  ;;  %v5011_v44 = vshll.u32 %v6725_v55, 16  ;;  %v4608_v4 = vpop.f32.mrb[101].mxu1  ;;  %v4743_v7 = vsel %vm752_vm5, %v4723_v6, -inf  ;;  %5297 = vrot.lane.b32.xlu0 %v5247_v22, %s7478_s10  ;;  %v4639_v46 = vadd.f32 %v4606_v43, %v9445_v61  ;;  %v4448_v26 = vpop.f32.mrb[102].mxu0 }
 0x35c   : > { %v4724_v37 = vmax.f32 %v4676_v53, %v4708_v36  ;;  %v4609_v18 = vpop.f32.mrb[102].mxu1  ;;  %v4835_v3 = vrot.slane %v4833_v48, 7  ;;  %v4479_v32 = vadd.f32 %v4448_v26, %v9411_v31  ;;  %v4450_v17 = vpop.f32.mrb[103].mxu0  ;;  %v4661_v62 = vadd.f32 %v9488_v23, %v4478_v34  ;;  %v5186_v61 = vld [vmem:[#allocation4 + $0x14] sm:$0x1]  ;;  %v7296_v31 = vld [vmem:[%s10233_s5 + $0xb8] sm:$0xff]  }
 0x35d   : > { %v5013_v20 = vrot.slane %v5011_v44, 1  ;;  %v4640_v13 = vadd.f32 %v4609_v18, %v9447_v21  ;;  %v4611_v0 = vpop.f32.mrb[103].mxu1  ;;  %v4693_v16 = vadd.f32 %v9488_v23, %v4639_v46  ;;  %v6748_v63 = vcombine.low %v5193_v2, %v9591_v47  ;;  %v9640_v54 = vld [vmem:[#allocation4 + $0x10] sm:$0xf]  ;;  %v9649_v56 = vld [vmem:[#allocation4 + $0x14] sm:$0x1]  ;;  %5537 = vmatpush1.bf16.msra.mxu0 %v7296_v31 }
 0x35e   : > { %v4744_v1 = vsel %vm752_vm5, %v4724_v37, -inf  ;;  %v4838_v58 = vor.u32 %v4836_v28, %v4835_v3  ;;  %v4839_v50 = vrot.slane %v4835_v3, 4  ;;  %v4677_v21 = vmax.f32 %v4661_v62, 0.0  ;;  %v9647_v39 = vld [vmem:[#allocation4 + $0x10] sm:$0xf]  ;;  %6078 = vmatprep.subr.bf16.mxu0 %v10337_v33 }
 0x35f   : > { %v4745_v52 = vmax.f32 %v4743_v7, %v4744_v1  ;;  %v5014_v14 = vor.u32 %v5013_v20, %v5009_v19  ;;  %v4709_v27 = vmax.f32 %v4693_v16, 0.0  ;;  %v4662_v25 = vadd.f32 %v9488_v23, %v4479_v32  ;;  %v4913_v57 = vld [vmem:[#allocation4 + $0x28] sm:$0xf] }
 0x360   : > { %v4694_v9 = vadd.f32 %v9488_v23, %v4640_v13  ;;  %v4908_v59 = vsel %vm8084_vm7, %v4838_v58, %v4907_v60  ;;  %v4911_v47 = vsel %vm7691_vm4, %v4839_v50, %v4910_v45  ;;  %v6749_v40 = vcombine.low %v5194_v49, %v5186_v61  ;;  %v4916_v13 = vld [vmem:[#allocation4 + $0x2c] sm:$0x1]  ;;  %v9662_v58 = vld [vmem:[#allocation4 + $0x1c] sm:$0x1] }
 0x361   : > { %v6920_v11 = vpack.c.bf16 %v4745_v52, %v4745_v52  ;;  %5059 = vrot.lane.b32.xlu1 %v5014_v14, %s7478_s10  ;;  %4909 = vst [vmem:[#allocation4 + $0x20] sm:$0xf] %v4908_v59  ;;  %4912 = vst [vmem:[#allocation4 + $0x24] sm:$0x1] %v4911_v47  ;;  %v4725_v55 = vmax.f32 %v4677_v21, %v4709_v27  ;;  %v4678_v6 = vmax.f32 %v4662_v25, 0.0  ;;  %v5337_v36 = vrot.slane %v6748_v63, 1 }
 0x362   : > { %v4710_v53 = vmax.f32 %v4694_v9, 0.0  ;;  %v4453_v22 = vpop.f32.mrb[104].mxu0  ;;  %v4614_v35 = vpop.f32.mrb[104].mxu1  ;;  %v5338_v48 = vrot.slane %v6749_v40, 1  ;;  %v6741_v28 = vcombine.low %v9640_v54, %v5186_v61  ;;  %v6726_v7 = vcombine.low %v9647_v39, %v9649_v56  ;;  %v9660_v63 = vld [vmem:[#allocation4 + $0x18] sm:$0xf] }
 0x363   : > { %v4841_v43 = vshrl.u32 %v6920_v11, 16  ;;  %v4844_v2 = vshll.u32 %v6920_v11, 16  ;;  %v4455_v19 = vpop.f32.mrb[105].mxu0  ;;  %v4616_v44 = vpop.f32.mrb[105].mxu1  ;;  %v4746_v4 = vsel %vm752_vm5, %v4725_v55, -inf  ;;  %v4480_v37 = vadd.f32 %v4453_v22, %v9413_v30 }
 0x364   : > { %v4726_v60 = vmax.f32 %v4678_v6, %v4710_v53  ;;  %v4456_v34 = vpop.f32.mrb[106].mxu0  ;;  %v4617_v46 = vpop.f32.mrb[106].mxu1  ;;  %v6781_v18 = vcombine.low %v5337_v36, %v5338_v48  ;;  %v5249_v3 = vshrl.u32 %v6741_v28, 16  ;;  %v5251_v45 = vshll.u32 %v6741_v28, 16  ;;  %v9666_v21 = vld [vmem:[#allocation4 + $0x18] sm:$0xf] }
 0x365   : > { %v4843_v26 = vrot.slane %v4841_v43, 7  ;;  %v4458_v20 = vpop.f32.mrb[107].mxu0  ;;  %v4619_v32 = vpop.f32.mrb[107].mxu1  ;;  %v5016_v0 = vshrl.u32 %v6726_v7, 16  ;;  %v5018_v1 = vshll.u32 %v6726_v7, 16  ;;  %v4663_v62 = vadd.f32 %v9488_v23, %v4480_v37 }
 0x366   : > { %v4747_v17 = vsel %vm752_vm5, %v4726_v60, -inf  ;;  %6800 = vmatprep.mubr.msk.bf16.mxu0 %vm752_vm5, %v6781_v18  ;;  %v5253_v30 = vrot.slane %v5251_v45, 1  ;;  %v4641_v14 = vadd.f32 %v4614_v35, %v9455_v42  ;;  %v4481_v31 = vadd.f32 %v4456_v34, %v9415_v15  ;;  %v9668_v27 = vld [vmem:[#allocation4 + $0x1c] sm:$0x1]  ;;  %v4919_v48 = vld [vmem:[#allocation4 + $0x30] sm:$0xf] }
 0x367   : > { %v4846_v16 = vor.u32 %v4844_v2, %v4843_v26  ;;  %v4847_v61 = vrot.slane %v4843_v26, 4  ;;  %v4748_v49 = vmax.f32 %v4746_v4, %v4747_v17  ;;  %v5020_v50 = vrot.slane %v5018_v1, 1  ;;  %v4922_v18 = vld [vmem:[#allocation4 + $0x34] sm:$0x1] }
 0x368   : > { %v4679_v52 = vmax.f32 %v4663_v62, 0.0  ;;  %v5254_v47 = vor.u32 %v5253_v30, %v5249_v3  ;;  %v4695_v40 = vadd.f32 %v9488_v23, %v4641_v14  ;;  %v4664_v42 = vadd.f32 %v9488_v23, %v4481_v31  ;;  %v9689_v62 = vld [vmem:[#allocation4 + $0x24] sm:$0x1] }
 0x369   : > { %v4914_v25 = vsel %vm8084_vm7, %v4846_v16, %v4913_v57  ;;  %v4917_v9 = vsel %vm7691_vm4, %v4847_v61, %v4916_v13  ;;  %v6921_v59 = vpack.c.bf16 %v4748_v49, %v4748_v49  ;;  %v5021_v11 = vor.u32 %v5020_v50, %v5016_v0  ;;  %v4461_v55 = vpop.f32.mrb[108].mxu0  ;;  %v4622_v6 = vpop.f32.mrb[108].mxu1  ;;  %v9686_v13 = vld [vmem:[#allocation4 + $0x20] sm:$0xf] }
 0x36a   : > { %4915 = vst [vmem:[#allocation4 + $0x28] sm:$0xf] %v4914_v25  ;;  %4918 = vst [vmem:[#allocation4 + $0x2c] sm:$0x1] %v4917_v9  ;;  %v4642_v15 = vadd.f32 %v4617_v46, %v9457_v8  ;;  %5299 = vrot.lane.b32.xlu1 %v5254_v47, %s7478_s10  ;;  %v6742_v22 = vcombine.low %v9660_v63, %v9662_v58  ;;  %v6727_v35 = vcombine.low %v9666_v21, %v9668_v27  ;;  %v4463_v43 = vpop.f32.mrb[109].mxu0  ;;  %v4624_v2 = vpop.f32.mrb[109].mxu1 }
 0x36b   : > { %v4849_v53 = vshrl.u32 %v6921_v59, 16  ;;  %v4852_v36 = vshll.u32 %v6921_v59, 16  ;;  %5061 = vrot.lane.b32.xlu0 %v5021_v11, %s7478_s10  ;;  %v4711_v28 = vmax.f32 %v4695_v40, 0.0  ;;  %v4680_v19 = vmax.f32 %v4664_v42, 0.0  ;;  %v4464_v57 = vpop.f32.mrb[110].mxu0  ;;  %v4625_v4 = vpop.f32.mrb[110].mxu1 }
 0x36c   : > { %v4696_v8 = vadd.f32 %v9488_v23, %v4642_v15  ;;  %v4482_v44 = vadd.f32 %v4461_v55, %v9417_v24  ;;  %v5256_v7 = vshrl.u32 %v6742_v22, 16  ;;  %v5258_v37 = vshll.u32 %v6742_v22, 16  ;;  %v4466_v46 = vpop.f32.mrb[111].mxu0  ;;  %v4627_v26 = vpop.f32.mrb[111].mxu1  ;;  %v9691_v16 = vld [vmem:[#allocation4 + $0x20] sm:$0xf] }
 0x36d   : > { %v4851_v60 = vrot.slane %v4849_v53, 7  ;;  %v5023_v34 = vshrl.u32 %v6727_v35, 16  ;;  %v4727_v3 = vmax.f32 %v4679_v52, %v4711_v28  ;;  %v5025_v20 = vshll.u32 %v6727_v35, 16  ;;  %v9694_v52 = vld [vmem:[#allocation4 + $0x24] sm:$0x1] }
 0x36e   : > { %v4712_v45 = vmax.f32 %v4696_v8, 0.0  ;;  %v4665_v32 = vadd.f32 %v9488_v23, %v4482_v44  ;;  %v5260_v1 = vrot.slane %v5258_v37, 1  ;;  %v4643_v24 = vadd.f32 %v4622_v6, %v9471_v38  ;;  %v4925_v46 = vld [vmem:[#allocation4 + $0x38] sm:$0xf]  ;;  %v4928_v26 = vld [vmem:[#allocation4 + $0x3c] sm:$0x1] }
 0x36f   : > { %v4854_v17 = vor.u32 %v4852_v36, %v4851_v60  ;;  %v4855_v0 = vrot.slane %v4851_v60, 4  ;;  %v4749_v61 = vsel %vm752_vm5, %v4727_v3, -inf  ;;  %v5027_v30 = vrot.slane %v5025_v20, 1 }
 0x370   : > { %v4728_v49 = vmax.f32 %v4680_v19, %v4712_v45  ;;  %v4681_v50 = vmax.f32 %v4665_v32, 0.0  ;;  %v5261_v25 = vor.u32 %v5260_v1, %v5256_v7  ;;  %v4697_v38 = vadd.f32 %v9488_v23, %v4643_v24  ;;  %v9727_v32 = vld [vmem:[#allocation4 + $0x14] sm:$0x1] }
 0x371   : > { %v4920_v14 = vsel %vm8084_vm7, %v4854_v17, %v4919_v48  ;;  %v4923_v31 = vsel %vm7691_vm4, %v4855_v0, %v4922_v18  ;;  %v9701_v9 = vld [vmem:[#allocation4 + $0x28] sm:$0xf]  ;;  %v9703_v59 = vld [vmem:[#allocation4 + $0x2c] sm:$0x1]  ;;  %v5028_v40 = vor.u32 %v5027_v30, %v5023_v34  ;;  %v4483_v42 = vadd.f32 %v4464_v57, %v9419_v10 }
 0x372   : > { %v9705_v47 = vld [vmem:[#allocation4 + $0x28] sm:$0xf]  ;;  %4921 = vst [vmem:[#allocation4 + $0x30] sm:$0xf] %v4920_v14  ;;  %4924 = vst [vmem:[#allocation4 + $0x34] sm:$0x1] %v4923_v31  ;;  %v4644_v15 = vadd.f32 %v4625_v4, %v9473_v41  ;;  %5301 = vrot.lane.b32.xlu0 %v5261_v25, %s7478_s10  ;;  %v6743_v36 = vcombine.low %v9686_v13, %v9689_v62  ;;  %v6728_v22 = vcombine.low %v9691_v16, %v9694_v52 }
 0x373   : > { %v4750_v11 = vsel %vm752_vm5, %v4728_v49, -inf  ;;  %v9710_v55 = vld [vmem:[#allocation4 + $0x2c] sm:$0x1]  ;;  %v4713_v53 = vmax.f32 %v4697_v38, 0.0  ;;  %5063 = vrot.lane.b32.xlu1 %v5028_v40, %s7478_s10  ;;  %v4666_v35 = vadd.f32 %v9488_v23, %v4483_v42  ;;  %v6744_v41 = vcombine.low %v9701_v9, %v9703_v59 }
 0x374   : > { %v4751_v6 = vmax.f32 %v4749_v61, %v4750_v11  ;;  %v4698_v10 = vadd.f32 %v9488_v23, %v4644_v15  ;;  %v6729_v43 = vcombine.low %v9705_v47, %v9710_v55  ;;  %v5263_v28 = vshrl.u32 %v6743_v36, 16  ;;  %v9725_v23 = vld [vmem:[#allocation4 + $0x10] sm:$0xf]  ;;  %v9731_v49 = vld [vmem:[#allocation4 + $0x4c] sm:$0x1] }
 0x375   : > { %v4729_v48 = vmax.f32 %v4681_v50, %v4713_v53  ;;  %v5265_v19 = vshll.u32 %v6743_v36, 16  ;;  %v4682_v8 = vmax.f32 %v4666_v35, 0.0  ;;  %v5030_v57 = vshrl.u32 %v6728_v22, 16  ;;  %10383 = vst [vmem:[#allocation50_spill] sm:$0xff] %v9725_v23 }
 0x376   : > { %v6922_v2 = vpack.c.bf16 %v4751_v6, %v4751_v6  ;;  %v4714_v44 = vmax.f32 %v4698_v10, 0.0  ;;  %v5032_v4 = vshll.u32 %v6728_v22, 16  ;;  %v5270_v45 = vshrl.u32 %v6744_v41, 16  ;;  %v5764_v6 = vld [vmem:[#allocation4 + $0x48] sm:$0xe] }
 0x377   : > { %v4752_v37 = vsel %vm752_vm5, %v4729_v48, -inf  ;;  %v5267_v34 = vrot.slane %v5265_v19, 1  ;;  %v5272_v20 = vshll.u32 %v6744_v41, 16  ;;  %v5037_v1 = vshrl.u32 %v6729_v43, 16  ;;  %v9758_v19 = vld [vmem:[#allocation4 + $0x20] sm:$0xf] }
 0x378   : > { %v4857_v60 = vshrl.u32 %v6922_v2, 16  ;;  %v4860_v7 = vshll.u32 %v6922_v2, 16  ;;  %v4730_v18 = vmax.f32 %v4682_v8, %v4714_v44  ;;  %v5034_v3 = vrot.slane %v5032_v4, 1  ;;  %10385 = vst [vmem:[#allocation43_spill] sm:$0xff] %v9758_v19  ;;  %v9760_v8 = vld [vmem:[#allocation4 + $0x24] sm:$0x1] }
 0x379   : > { %v5268_v0 = vor.u32 %v5267_v34, %v5263_v28  ;;  %v5039_v24 = vshll.u32 %v6729_v43, 16  ;;  %v9729_v61 = vld [vmem:[#allocation4 + $0x30] sm:$0xf]  ;;  %v5274_v14 = vrot.slane %v5272_v20, 1  ;;  %v9734_v31 = vld [vmem:[#allocation4 + $0x34] sm:$0x1]  ;;  %v9748_v35 = vcombine.low %v9725_v23, %v9727_v32 }
 0x37a   : > { %v4859_v17 = vrot.slane %v4857_v60, 7  ;;  %v4753_v30 = vsel %vm752_vm5, %v4730_v18, -inf  ;;  %v5035_v50 = vor.u32 %v5034_v3, %v5030_v57  ;;  %v9736_v25 = vld [vmem:[#allocation4 + $0x30] sm:$0xf]  ;;  %v9739_v15 = vld [vmem:[#allocation4 + $0x34] sm:$0x1]  ;;  %v6745_v36 = vcombine.low %v9729_v61, %v9734_v31 }
 0x37b   : > { %v4754_v40 = vmax.f32 %v4752_v37, %v4753_v30  ;;  %5303 = vrot.lane.b32.xlu1 %v5268_v0, %s7478_s10  ;;  %v5041_v42 = vrot.slane %v5039_v24, 1  ;;  %v5275_v53 = vor.u32 %v5274_v14, %v5270_v45  ;;  %v6730_v22 = vcombine.low %v9736_v25, %v9739_v15  ;;  %v9750_v10 = vld [vmem:[#allocation4 + $0x30] sm:$0xf]  ;;  %v9752_v41 = vld [vmem:[#allocation4 + $0x34] sm:$0x1] }
 0x37c   : > { %v4862_v38 = vor.u32 %v4860_v7, %v4859_v17  ;;  %v4863_v11 = vrot.slane %v4859_v17, 4  ;;  %5065 = vrot.lane.b32.xlu0 %v5035_v50, %s7478_s10  ;;  %10384 = vst [vmem:[#allocation42_spill] sm:$0xff] %v9750_v10  ;;  %v5279_v44 = vshll.u32 %v6745_v36, 16  ;;  %v6843_v4 = vcombine.low %v5764_v6, %v9731_v49  ;;  %v9770_v20 = vld [vmem:[#allocation4 + $0x18] sm:$0xf] }
 0x37d   : > { %v6923_v48 = vpack.c.bf16 %v4754_v40, %v4754_v40  ;;  %v5042_v28 = vor.u32 %v5041_v42, %v5037_v1  ;;  %v5046_v57 = vshll.u32 %v6730_v22, 16  ;;  %v5277_v7 = vshrl.u32 %v6745_v36, 16  ;;  %10386 = vst [vmem:[#allocation51_spill] sm:$0xff] %v9770_v20  ;;  %v9772_v24 = vld [vmem:[#allocation4 + $0x1c] sm:$0x1] }
 0x37e   : > { %v4926_v43 = vsel %vm8084_vm7, %v4862_v38, %v4925_v46  ;;  %v4929_v2 = vsel %vm7691_vm4, %v4863_v11, %v4928_v26  ;;  %v5044_v37 = vshrl.u32 %v6730_v22, 16  ;;  %v6832_v34 = vcombine.low %v9750_v10, %v9752_v41  ;;  %v4931_v46 = vld [vmem:[#allocation4 + $0x40] sm:$0xf]  ;;  %v4934_v30 = vld [vmem:[#allocation4 + $0x44] sm:$0x1] }
 0x37f   : > { %4927 = vst [vmem:[#allocation4 + $0x38] sm:$0xf] %v4926_v43  ;;  %4930 = vst [vmem:[#allocation4 + $0x3c] sm:$0x1] %v4929_v2  ;;  %v4865_v60 = vshrl.u32 %v6923_v48, 16  ;;  %5067 = vrot.lane.b32.xlu1 %v5042_v28, %s7478_s10  ;;  %v5281_v26 = vrot.slane %v5279_v44, 1  ;;  %v6830_v45 = vcombine.low %v9758_v19, %v9760_v8 }
 0x380   : > { %5305 = vrot.lane.b32.xlu0 %v5275_v53, %s7478_s10  ;;  %v5048_v18 = vrot.slane %v5046_v57, 1  ;;  %v5808_v3 = vshll.u32 %v9748_v35, 16  ;;  %v4868_v0 = vshll.u32 %v6923_v48, 16  ;;  %v5836_v1 = vshll.u32 %v6832_v34, 16  ;;  %v9774_v11 = vld [vmem:[#allocation4 + $0x48] sm:$0xf] }
 0x381   : > { %v4867_v17 = vrot.slane %v4865_v60, 7  ;;  %v5282_v50 = vor.u32 %v5281_v26, %v5277_v7  ;;  %v5822_v38 = vshll.u32 %v6830_v45, 16  ;;  %10387 = vst [vmem:[#allocation52_spill] sm:$0xff] %v9774_v11  ;;  %v4955_v6 = vld [vmem:[#allocation4 + $0x10] sm:$0xe]  ;;  %v9776_v36 = vrot.slane %v6843_v4, 1 }
 0x382   : > { %v5049_v14 = vor.u32 %v5048_v18, %v5044_v37  ;;  %v4956_v53 = vld [vmem:[#allocation4 + $0x18] sm:$0xe]  ;;  %v5810_v22 = vrot.slane %v5808_v3, 1  ;;  %v5838_v43 = vrot.slane %v5836_v1, 1  ;;  %v9782_v48 = vcombine.low %v9770_v20, %v9772_v24  ;;  %v9784_v28 = vld [vmem:[#allocation4 + $0x28] sm:$0xf] }
 0x383   : > { %v4870_v40 = vor.u32 %v4868_v0, %v4867_v17  ;;  %v4871_v42 = vrot.slane %v4867_v17, 4  ;;  %5307 = vrot.lane.b32.xlu1 %v5282_v50, %s7478_s10  ;;  %v5824_v2 = vrot.slane %v5822_v38, 1  ;;  %10388 = vst [vmem:[#allocation44_spill] sm:$0xff] %v9784_v28  ;;  %v5806_v18 = vshrl.u32 %v9748_v35, 16  ;;  %v5196_v50 = vld [vmem:[#allocation4 + $0x20] sm:$0xe] }
 0x384   : > { %5069 = vrot.lane.b32.xlu0 %v5049_v14, %s7478_s10  ;;  %v5834_v12 = vshrl.u32 %v6832_v34, 16  ;;  %v9805_v51 = vcombine.low %v9774_v11, %v9731_v49  ;;  %v5820_v17 = vshrl.u32 %v6830_v45, 16  ;;  %v6734_v0 = vcombine.low %v4955_v6, %v9649_v56  ;;  %v4958_v56 = vld [vmem:[#allocation4 + $0x28] sm:$0xe] }
 0x385   : > { %v4932_v44 = vsel %vm8084_vm7, %v4870_v40, %v4931_v46  ;;  %v4935_v57 = vsel %vm7691_vm4, %v4871_v42, %v4934_v30  ;;  %v9801_v46 = vld [vmem:[#allocation4 + $0x2c] sm:$0x1]  ;;  %v6735_v1 = vcombine.low %v4956_v53, %v9668_v27  ;;  %v5195_v30 = vld [vmem:[#allocation4 + $0x18] sm:$0xe]  ;;  %v5811_v38 = vor.u32 %v5810_v22, %v5806_v18  ;;  %v4957_v40 = vld [vmem:[#allocation4 + $0x20] sm:$0xe] }
 0x386   : > { %v9790_v4 = vld [vmem:[#allocation4 + $0x38] sm:$0xf]  ;;  %v9792_v60 = vld [vmem:[#allocation4 + $0x3c] sm:$0x1]  ;;  %4933 = vst [vmem:[#allocation4 + $0x40] sm:$0xf] %v4932_v44  ;;  %v9813_v49 = vor.u32 %v5838_v43, %v5834_v12  ;;  %v9815_v44 = vor.u32 %v5824_v2, %v5820_v17  ;;  %v9819_v45 = vcombine.low %v9784_v28, %v9801_v46  ;;  %v6750_v43 = vcombine.low %v5195_v30, %v9662_v58 }
 0x387   : > { %v9794_v7 = vld [vmem:[#allocation4 + $0x38] sm:$0xf]  ;;  %4936 = vst [vmem:[#allocation4 + $0x44] sm:$0x1] %v4935_v57  ;;  %v6746_v37 = vcombine.low %v9790_v4, %v9792_v60  ;;  %v9798_v26 = vld [vmem:[#allocation4 + $0x3c] sm:$0x1]  ;;  %v6751_v2 = vcombine.low %v5196_v50, %v9689_v62  ;;  %v6737_v58 = vcombine.low %v4958_v56, %v9710_v55 }
 0x388   : > { %v6731_v3 = vcombine.low %v9794_v7, %v9798_v26  ;;  %v5813_v35 = vshrl.u32 %v9782_v48, 16  ;;  %v5815_v34 = vshll.u32 %v9782_v48, 16  ;;  %v5197_v27 = vld [vmem:[#allocation4 + $0x28] sm:$0xe]  ;;  %v9821_v57 = vrot.slane %v6734_v0, 1 }
 0x389   : > { %v5286_v14 = vshll.u32 %v6746_v37, 16  ;;  %v5284_v6 = vshrl.u32 %v6746_v37, 16  ;;  %v9823_v22 = vrot.slane %v6735_v1, 1  ;;  %v5198_v18 = vld [vmem:[#allocation4 + $0x30] sm:$0xe]  ;;  %v6736_v0 = vcombine.low %v4957_v40, %v9694_v52 }
 0x38a   : > { %v5053_v42 = vshll.u32 %v6731_v3, 16  ;;  %v5051_v48 = vshrl.u32 %v6731_v3, 16  ;;  %v5817_v17 = vrot.slane %v5815_v34, 1  ;;  %v9827_v19 = vld [vmem:[#allocation4 + $0x38] sm:$0xf]  ;;  %v6752_v62 = vcombine.low %v5197_v27, %v9703_v59 }
 0x38b   : > { %v5288_v53 = vrot.slane %v5286_v14, 1  ;;  %10389 = vst [vmem:[#allocation45_spill] sm:$0xff] %v9827_v19  ;;  %v5754_v28 = vld [vmem:[#allocation4 + $0x3c] sm:$0x1]  ;;  %v4959_v14 = vld [vmem:[#allocation4 + $0x30] sm:$0xe]  ;;  %v6753_v30 = vcombine.low %v5198_v18, %v9734_v31 }
 0x38c   : > { %v5055_v11 = vrot.slane %v5053_v42, 1  ;;  %v9842_v40 = vrot.slane %v6750_v43, 1  ;;  %v9851_v59 = vcombine.low %v9827_v19, %v5754_v28  ;;  %v9853_v31 = vrot.slane %v6736_v0, 1  ;;  %v4960_v27 = vld [vmem:[#allocation4 + $0x38] sm:$0xe] }
 0x38d   : > { %v5289_v12 = vor.u32 %v5288_v53, %v5284_v6  ;;  %v9832_v10 = vld [vmem:[#allocation4 + $0x40] sm:$0xf]  ;;  %v5761_v6 = vld [vmem:[#allocation4 + $0x30] sm:$0xe]  ;;  %v9855_v56 = vrot.slane %v6737_v58, 1  ;;  %v9859_v43 = vrot.slane %v6752_v62, 1  ;;  %v5818_v37 = vor.u32 %v5817_v17, %v5813_v35 }
 0x38e   : > { %v5056_v1 = vor.u32 %v5055_v11, %v5051_v48  ;;  %v5192_v3 = vld [vmem:[#allocation4 + $0x44] sm:$0x1]  ;;  %v9834_v42 = vld [vmem:[#allocation4 + $0x40] sm:$0xf]  ;;  %v9844_v11 = vrot.slane %v6751_v2, 1  ;;  %v9861_v2 = vrot.slane %v6753_v30, 1  ;;  %v6738_v0 = vcombine.low %v4959_v14, %v9739_v15 }
 0x38f   : > { %10390 = vst [vmem:[#allocation53_spill] sm:$0xff] %v9834_v42  ;;  %5309 = vrot.lane.b32.xlu0 %v5289_v12, %s7478_s10  ;;  %v6747_v50 = vcombine.low %v9832_v10, %v5192_v3  ;;  %v5755_v34 = vld [vmem:[#allocation4 + $0x44] sm:$0x1]  ;;  %v5199_v53 = vld [vmem:[#allocation4 + $0x38] sm:$0xe]  ;;  %v6739_v62 = vcombine.low %v4960_v27, %v9798_v26  ;;  %v5843_v35 = vshll.u32 %v9851_v59, 16  ;;  %v6840_v52 = vcombine.low %v5761_v6, %v9752_v41 }
 0x390   : > { %5071 = vrot.lane.b32.xlu1 %v5056_v1, %s7478_s10  ;;  %v9848_v55 = vcombine.low %v9834_v42, %v5755_v34  ;;  %v5200_v12 = vld [vmem:[#allocation4 + $0x40] sm:$0xe]  ;;  %v5762_v58 = vld [vmem:[#allocation4 + $0x38] sm:$0xe]  ;;  %v6754_v30 = vcombine.low %v5199_v53, %v9792_v60  ;;  %v5757_v48 = vld [vmem:[#allocation4 + $0x10] sm:$0xe] }
 0x391   : > { %v5293_v18 = vshll.u32 %v6747_v50, 16  ;;  %v5291_v1 = vshrl.u32 %v6747_v50, 16  ;;  %v6755_v17 = vcombine.low %v5200_v12, %v5192_v3  ;;  %v5758_v15 = vld [vmem:[#allocation4 + $0x18] sm:$0xe]  ;;  %v5759_v14 = vld [vmem:[#allocation4 + $0x20] sm:$0xe]  ;;  %v6841_v19 = vcombine.low %v5762_v58, %v5754_v28 }
 0x392   : > { %v5850_v50 = vshll.u32 %v9848_v55, 16  ;;  %v5760_v20 = vld [vmem:[#allocation4 + $0x28] sm:$0xe]  ;;  %v5763_v26 = vld [vmem:[#allocation4 + $0x40] sm:$0xe]  ;;  %v9878_v27 = vrot.slane %v6754_v30, 1  ;;  %v6836_v3 = vcombine.low %v5757_v48, %v9727_v32  ;;  %v6837_v28 = vcombine.low %v5758_v15, %v9772_v24 }
 0x393   : > { %5861 = vrot.lane.b32.xlu0 %v5811_v38, %s7478_s10  ;;  %v5295_v42 = vrot.slane %v5293_v18, 1  ;;  %v9874_v38 = vrot.slane %v6738_v0, 1  ;;  %v9876_v18 = vrot.slane %v6739_v62, 1  ;;  %v9880_v60 = vrot.slane %v6755_v17, 1 }
 0x394   : > { %v9882_v53 = vrot.slane %v6840_v52, 1  ;;  %v6838_v6 = vcombine.low %v5759_v14, %v9760_v8  ;;  %v5845_v12 = vrot.slane %v5843_v35, 1  ;;  %v6839_v32 = vcombine.low %v5760_v20, %v9801_v46  ;;  %v10392_v14 = vld [vmem:[#allocation26_spill] sm:$0xff] }
 0x395   : > { %v5296_v23 = vor.u32 %v5295_v42, %v5291_v1  ;;  %v6811_v41 = vcombine.low %v9874_v38, %v9876_v18  ;;  %v9890_v42 = vrot.slane %v6841_v19, 1  ;;  %v6787_v52 = vcombine.low %v9878_v27, %v9880_v60  ;;  %v7322_v18 = vld [vmem:[%s10233_s5 + $0x118] sm:$0xff]  }
 0x396   : > { %v6842_v48 = vcombine.low %v5763_v26, %v5755_v34  ;;  %v5852_v1 = vrot.slane %v5850_v50, 1  ;;  %v9901_v0 = vrot.slane %v6837_v28, 1  ;;  %v9903_v19 = vrot.slane %v6838_v6, 1  ;;  %v10394_v28 = vld [vmem:[#allocation31_spill] sm:$0xff] }
 0x397   : > { %5869 = vrot.lane.b32.xlu0 %v9813_v49, %s7478_s10  ;;  %5311 = vrot.lane.b32.xlu1 %v5296_v23, %s7478_s10  ;;  %v6873_v23 = vcombine.low %v9882_v53, %v9890_v42  ;;  %v9899_v49 = vrot.slane %v6836_v3, 1  ;;  %v9905_v24 = vrot.slane %v6839_v32, 1  ;;  %v5848_v20 = vshrl.u32 %v9848_v55, 16  ;;  %v10393_v3 = vld [vmem:[#allocation25_spill] sm:$0xff]  ;;  %v10397_v6 = vld [vmem:[#allocation27_spill] sm:$0xff] }
 0x398   : > { %v9907_v8 = vrot.slane %v6842_v48, 1  ;;  %v5841_v46 = vshrl.u32 %v9851_v59, 16  ;;  %v5857_v34 = vshll.u32 %v9805_v51, 16  ;;  %v5827_v55 = vshrl.u32 %v9819_v45, 16  ;;  %v10399_v32 = vld [vmem:[#allocation33_spill] sm:$0xff]  ;;  %v10400_v48 = vld [vmem:[#allocation34_spill] sm:$0xff] }
 0x399   : > { %v6869_v58 = vcombine.low %v9899_v49, %v9901_v0  ;;  %v6871_v62 = vcombine.low %v9903_v19, %v9905_v24  ;;  %v5853_v50 = vor.u32 %v5852_v1, %v5848_v20  ;;  %v5855_v59 = vshrl.u32 %v9805_v51, 16  ;;  %v10396_v51 = vld [vmem:[#allocation30_spill] sm:$0xff]  ;;  %v10401_v1 = vld [vmem:[#allocation32_spill] sm:$0xff]  ;;  %v10402_v20 = vld [vmem:[#allocation39_spill] sm:$0xff] }
 0x39a   : > { %v6875_v30 = vcombine.low %v9907_v8, %v9776_v36  ;;  %v5846_v35 = vor.u32 %v5845_v12, %v5841_v46  ;;  %v5859_v17 = vrot.slane %v5857_v34, 1  ;;  %v10398_v12 = vld [vmem:[#allocation35_spill] sm:$0xff]  ;;  %v10403_v46 = vld [vmem:[#allocation37_spill] sm:$0xff]  ;;  %v10404_v34 = vld [vmem:[#allocation38_spill] sm:$0xff] }
 0x39b   : > { %5865 = vrot.lane.b32.xlu0 %v9815_v44, %s7478_s10  ;;  %5863 = vrot.lane.b32.xlu1 %v5818_v37, %s7478_s10  ;;  %v10391_v44 = vshll.u32 %v9819_v45, 16  ;;  %v10395_v45 = vld [vmem:[#allocation28_spill] sm:$0xff]  ;;  %v10412_v53 = vld [vmem:[#allocation51_spill] sm:$0xff]  ;;  %v10420_v24 = vld [vmem:[#allocation9_spill] sm:$0xff] }
 0x39c   : > { %v5860_v26 = vor.u32 %v5859_v17, %v5855_v59  ;;  %v10421_v36 = vld [vmem:[#allocation52_spill] sm:$0xff] }
 0x39d   : > { %v5831_v37 = vrot.slane %v10391_v44, 1  ;;  %v10407_v44 = vld [vmem:[#allocation40_spill] sm:$0xff] }
 0x39f   : > { %5873 = vrot.lane.b32.xlu0 %v5853_v50, %s7478_s10  ;;  %5871 = vrot.lane.b32.xlu1 %v5846_v35, %s7478_s10  ;;  %v5832_v15 = vor.u32 %v5831_v37, %v5827_v55  ;;  %v10405_v50 = vld [vmem:[#allocation36_spill] sm:$0xff]  ;;  %v10406_v35 = vld [vmem:[#allocation41_spill] sm:$0xff]  ;;  %v5058_v37 = vpop.permute.xlu0 %5057  ;;  %v7411_v55 = vld [vmem:[#allocation4] sm:$0xf] }
 0x3a0   : > { %v5107_v59 = vsel %vm752_vm5, %v7411_v55, %v5058_v37 }
 0x3a3   : > { %704 = vrot.lane.b32.xlu0 %v10392_v14, %s7478_s10  ;;  %5867 = vrot.lane.b32.xlu1 %v5832_v15, %s7478_s10  ;;  %v7301_v14 = vld [vmem:[%s10233_s5 + $0xc0] sm:$0xff]  }
 0x3a7   : > { %708 = vrot.lane.b32.xlu0 %v10393_v3, %s7478_s10  ;;  %5875 = vrot.lane.b32.xlu1 %v5860_v26, %s7478_s10  ;;  %v10408_v3 = vcombine.low %v9821_v57, %v9823_v22 }
 0x3ab   : > { %712 = vrot.lane.b32.xlu0 %v10394_v28, %s7478_s10  ;;  %706 = vrot.lane.b32.xlu1 %v10395_v45, %s7478_s10  ;;  %v7302_v28 = vld [vmem:[%s10233_s5 + $0xc8] sm:$0xff]  }
 0x3af   : > { %716 = vrot.lane.b32.xlu0 %v10396_v51, %s7478_s10  ;;  %710 = vrot.lane.b32.xlu1 %v10397_v6, %s7478_s10 }
 0x3b3   : > { %720 = vrot.lane.b32.xlu0 %v10398_v12, %s7478_s10  ;;  %714 = vrot.lane.b32.xlu1 %v10399_v32, %s7478_s10  ;;  %v7306_v12 = vld [vmem:[%s10233_s5 + $0xd8] sm:$0xff]   ;;  %v10409_v32 = vcombine.low %v9842_v40, %v9844_v11 }
 0x3b7   : > { %724 = vrot.lane.b32.xlu0 %v10400_v48, %s7478_s10  ;;  %718 = vrot.lane.b32.xlu1 %v10401_v1, %s7478_s10 }
 0x3bb   : > { %728 = vrot.lane.b32.xlu0 %v10402_v20, %s7478_s10  ;;  %722 = vrot.lane.b32.xlu1 %v10403_v46, %s7478_s10  ;;  %v7310_v20 = vld [vmem:[%s10233_s5 + $0xe8] sm:$0xff]  }
 0x3bf   : > { %732 = vrot.lane.b32.xlu0 %v10404_v34, %s7478_s10  ;;  %726 = vrot.lane.b32.xlu1 %v10405_v50, %s7478_s10  ;;  %v10410_v34 = vcombine.low %v9853_v31, %v9855_v56 }
 0x3c3   : > { %730 = vrot.lane.b32.xlu1 %v10406_v35, %s7478_s10 }
 0x3c7   : > { %734 = vrot.lane.b32.xlu1 %v10407_v44, %s7478_s10  ;;  %v7314_v44 = vld [vmem:[%s10233_s5 + $0xf8] sm:$0xff]   ;;  %s7479_s10 = smov [#allocation5]  }
 0x3cd   : > { %v5298_v45 = vpop.permute.xlu0 %5297 }
 0x3ce   : > { %v5347_v57 = vsel %vm752_vm5, %v9589_v5, %v5298_v45 }
 0x3d3   : > { %v5060_v17 = vpop.permute.xlu1 %5059 }
 0x3d4   : > { %v5110_v15 = vsel %vm752_vm5, %v9609_v29, %v5060_v17  ;;  %v7305_v29 = vld [vmem:[%s10233_s5 + $0xd0] sm:$0xff]  }
 0x3d5   : > { %v6804_v26 = vcombine.low %v5107_v59, %v5110_v15  ;;  %v7315_v15 = vld [vmem:[%s10233_s5 + $0x100] sm:$0xff]  }
 0x3d7   : > { %5708 = vmatmul.mubr.bf16.vlgmr.msra.gmra.mrb[112].mxu1 %v6804_v26 }
 0x3d8   : > { %6825 = vmatprep.mubr.msk.bf16.mxu1 %vm752_vm5, %v10408_v3  ;;  %6997 = vmatpush1.bf16.msra.mxu1 %v7301_v14 }
 0x3d9   : > { %6986 = vmatprep.subr.bf16.mxu1 %v10337_v33 }
 0x3dc   : > { %6998 = vmatpush1.bf16.msra.mxu1 %v7302_v28  ;;  %v5300_v51 = vpop.permute.xlu1 %5299 }
 0x3dd   : > { %6987 = vmatprep.subr.bf16.mxu1 %v10337_v33  ;;  %v5350_v22 = vsel %vm752_vm5, %v9640_v54, %v5300_v51  ;;  %v5062_v5 = vpop.permute.xlu0 %5061  ;;  %v7309_v54 = vld [vmem:[%s10233_s5 + $0xe0] sm:$0xff]  }
 0x3de   : > { %v6780_v6 = vcombine.low %v5347_v57, %v5350_v22  ;;  %v5113_v1 = vsel %vm752_vm5, %v9647_v39, %v5062_v5  ;;  %v7313_v39 = vld [vmem:[%s10233_s5 + $0xf0] sm:$0xff]   ;;  %v10414_v22 = vld [vmem:[#allocation42_spill] sm:$0xff] }
 0x3df   : > { %v10416_v5 = vld [vmem:[#allocation10_spill] sm:$0xff] }
 0x3e0   : > { %6999 = vmatpush1.bf16.msra.mxu1 %v7305_v29  ;;  %5547 = vmatmul.mubr.bf16.vlgmr.msra.gmra.mrb[112].mxu0 %v6780_v6 }
 0x3e1   : > { %6988 = vmatprep.subr.bf16.mxu1 %v10337_v33  ;;  %6801 = vmatprep.mubr.msk.bf16.mxu0 %vm752_vm5, %v10409_v32 }
 0x3e2   : > { %6079 = vmatpush1.bf16.msra.mxu0 %v7301_v14  ;;  %v7318_v14 = vld [vmem:[%s10233_s5 + $0x108] sm:$0xff]  }
 0x3e3   : > { %6080 = vmatprep.subr.bf16.mxu0 %v10337_v33 }
 0x3e4   : > { %7000 = vmatpush1.bf16.msra.mxu1 %v7306_v12  ;;  %v5302_v46 = vpop.permute.xlu0 %5301 }
 0x3e5   : > { %6989 = vmatprep.subr.bf16.mxu1 %v10337_v33  ;;  %v5064_v48 = vpop.permute.xlu1 %5063  ;;  %v5353_v50 = vsel %vm752_vm5, %v9660_v63, %v5302_v46 }
 0x3e6   : > { %6081 = vmatpush1.bf16.msra.mxu0 %v7302_v28  ;;  %v5116_v40 = vsel %vm752_vm5, %v9666_v21, %v5064_v48  ;;  %v10417_v48 = vld [vmem:[#allocation44_spill] sm:$0xff] }
 0x3e7   : > { %6082 = vmatprep.subr.bf16.mxu0 %v10337_v33  ;;  %v6806_v11 = vcombine.low %v5113_v1, %v5116_v40 }
 0x3e8   : > { %7001 = vmatpush1.bf16.msra.mxu1 %v7309_v54 }
 0x3e9   : > { %6990 = vmatprep.subr.bf16.mxu1 %v10337_v33  ;;  %5716 = vmatmul.mubr.bf16.gmra.mrb[116].mxu1 %v6806_v11 }
 0x3ea   : > { %6083 = vmatpush1.bf16.msra.mxu0 %v7305_v29  ;;  %6826 = vmatprep.mubr.msk.bf16.mxu1 %vm752_vm5, %v10410_v34  ;;  %v10419_v34 = vld [vmem:[#allocation53_spill] sm:$0xff] }
 0x3eb   : > { %6084 = vmatprep.subr.bf16.mxu0 %v10337_v33 }
 0x3ec   : > { %7002 = vmatpush1.bf16.msra.mxu1 %v7310_v20 }
 0x3ed   : > { %v5304_v21 = vpop.permute.xlu1 %5303  ;;  %6991 = vmatprep.subr.bf16.mxu1 %v10337_v33 }
 0x3ee   : > { %v5356_v35 = vsel %vm752_vm5, %v9686_v13, %v5304_v21  ;;  %6085 = vmatpush1.bf16.msra.mxu0 %v7306_v12  ;;  %v5066_v31 = vpop.permute.xlu0 %5065  ;;  %v10411_v13 = vcombine.low %v9859_v43, %v9861_v2  ;;  %v10415_v12 = vld [vmem:[#allocation45_spill] sm:$0xff] }
 0x3ef   : > { %v6782_v56 = vcombine.low %v5353_v50, %v5356_v35  ;;  %6086 = vmatprep.subr.bf16.mxu0 %v10337_v33  ;;  %v5119_v63 = vsel %vm752_vm5, %v9691_v16, %v5066_v31  ;;  %v10422_v35 = vld [vmem:[#allocation14_spill] sm:$0xff] }
 0x3f0   : > { %7003 = vmatpush1.bf16.msra.mxu1 %v7313_v39 }
 0x3f1   : > { %5555 = vmatmul.mubr.bf16.gmra.mrb[116].mxu0 %v6782_v56  ;;  %v5068_v37 = vpop.permute.xlu1 %5067  ;;  %6992 = vmatprep.subr.bf16.mxu1 %v10337_v33  ;;  %v10423_v56 = vld [vmem:[#allocation12_spill] sm:$0xff] }
 0x3f2   : > { %6802 = vmatprep.mubr.msk.bf16.mxu0 %vm752_vm5, %v10411_v13  ;;  %v5122_v55 = vsel %vm752_vm5, %v9705_v47, %v5068_v37  ;;  %6087 = vmatpush1.bf16.msra.mxu0 %v7309_v54  ;;  %v5306_v17 = vpop.permute.xlu0 %5305  ;;  %v10424_v13 = vld [vmem:[#allocation13_spill] sm:$0xff] }
 0x3f3   : > { %v6808_v59 = vcombine.low %v5119_v63, %v5122_v55  ;;  %6088 = vmatprep.subr.bf16.mxu0 %v10337_v33  ;;  %v5359_v47 = vsel %vm752_vm5, %v9701_v9, %v5306_v17 }
 0x3f4   : > { %7004 = vmatpush1.bf16.msra.mxu1 %v7314_v44 }
 0x3f5   : > { %5724 = vmatmul.mubr.bf16.gmra.mrb[120].mxu1 %v6808_v59  ;;  %6993 = vmatprep.subr.bf16.mxu1 %v10337_v33  ;;  %v5308_v16 = vpop.permute.xlu1 %5307  ;;  %v10425_v59 = vld [vmem:[#allocation11_spill] sm:$0xff] }
 0x3f6   : > { %6827 = vmatprep.mubr.msk.bf16.mxu1 %vm752_vm5, %v6811_v41  ;;  %6089 = vmatpush1.bf16.msra.mxu0 %v7310_v20  ;;  %v5362_v43 = vsel %vm752_vm5, %v9729_v61, %v5308_v16  ;;  %v5070_v9 = vpop.permute.xlu0 %5069  ;;  %v7319_v61 = vld [vmem:[%s10233_s5 + $0x110] sm:$0xff]   ;;  %v10418_v20 = vld [vmem:[#allocation43_spill] sm:$0xff] }
 0x3f7   : > { %6090 = vmatprep.subr.bf16.mxu0 %v10337_v33  ;;  %v6784_v2 = vcombine.low %v5359_v47, %v5362_v43  ;;  %v5125_v60 = vsel %vm752_vm5, %v9736_v25, %v5070_v9  ;;  %v10426_v47 = vld [vmem:[#allocation18_spill] sm:$0xff] }
 0x3f8   : > { %7005 = vmatpush1.bf16.msra.mxu1 %v7315_v15 }
 0x3f9   : > { %6994 = vmatprep.subr.bf16.mxu1 %v10337_v33  ;;  %5563 = vmatmul.mubr.bf16.gmra.mrb[120].mxu0 %v6784_v2  ;;  %v10427_v2 = vld [vmem:[#allocation16_spill] sm:$0xff] }
 0x3fa   : > { %6803 = vmatprep.mubr.msk.bf16.mxu0 %vm752_vm5, %v6787_v52  ;;  %6091 = vmatpush1.bf16.msra.mxu0 %v7313_v39 }
 0x3fb   : > { %6092 = vmatprep.subr.bf16.mxu0 %v10337_v33 }
 0x3fc   : > { %7006 = vmatpush1.bf16.msra.mxu1 %v7318_v14 }
 0x3fd   : > { %6995 = vmatprep.subr.bf16.mxu1 %v10337_v33 }
 0x3fe   : > { %6093 = vmatpush1.bf16.msra.mxu0 %v7314_v44 }
 0x3ff   : > { %6094 = vmatprep.subr.bf16.mxu0 %v10337_v33 }
 0x400   : > { %7007 = vmatpush1.bf16.msra.mxu1 %v7319_v61 }
 0x401   : > { %v5310_v38 = vpop.permute.xlu0 %5309  ;;  %6996 = vmatprep.subr.bf16.mxu1 %v10337_v33 }
 0x402   : > { %v5072_v27 = vpop.permute.xlu1 %5071  ;;  %6095 = vmatpush1.bf16.msra.mxu0 %v7315_v15  ;;  %v5365_v25 = vsel %vm752_vm5, %v9790_v4, %v5310_v38  ;;  %v10428_v38 = vld [vmem:[#allocation17_spill] sm:$0xff] }
 0x403   : > { %v5128_v41 = vsel %vm752_vm5, %v9794_v7, %v5072_v27  ;;  %6096 = vmatprep.subr.bf16.mxu0 %v10337_v33  ;;  %v10429_v27 = vld [vmem:[#allocation15_spill] sm:$0xff] }
 0x404   : > { %v6810_v52 = vcombine.low %v5125_v60, %v5128_v41  ;;  %7008 = vmatpush1.bf16.msra.mxu1 %v7322_v18 }
 0x405   : > { %v5862_v26 = vpop.permute.xlu0 %5861 }
 0x406   : > { %5732 = vmatmul.mubr.bf16.gmra.mrb[124].mxu1 %v6810_v52  ;;  %6097 = vmatpush1.bf16.msra.mxu0 %v7318_v14 }
 0x407   : > { %6890 = vmatprep.mubr.msk.bf16.mxu1 %vm752_vm5, %v6873_v23  ;;  %6098 = vmatprep.subr.bf16.mxu0 %v10337_v33 }
 0x409   : > { %v5870_v3 = vpop.permute.xlu0 %5869  ;;  %v5312_v28 = vpop.permute.xlu1 %5311 }
 0x40a   : > { %v5368_v7 = vsel %vm752_vm5, %v9832_v10, %v5312_v28  ;;  %6099 = vmatpush1.bf16.msra.mxu0 %v7319_v61  ;;  %v10413_v10 = vld [vmem:[#allocation50_spill] sm:$0xff]  ;;  %v5923_v6 = vsel %vm752_vm5, %v10414_v22, %v5870_v3  ;;  %v10431_v28 = vld [vmem:[#allocation20_spill] sm:$0xff]  ;;  %v10435_v22 = vld [vmem:[#allocation23_spill] sm:$0xff] }
 0x40b   : > { %v6786_v45 = vcombine.low %v5365_v25, %v5368_v7  ;;  %6100 = vmatprep.subr.bf16.mxu0 %v10337_v33  ;;  %v5911_v57 = vsel %vm752_vm5, %v10413_v10, %v5862_v26  ;;  %v10430_v26 = vld [vmem:[#allocation22_spill] sm:$0xff] }
 0x40d   : > { %v5866_v29 = vpop.permute.xlu0 %5865  ;;  %5571 = vmatmul.mubr.bf16.gmra.mrb[124].mxu0 %v6786_v45  ;;  %v5864_v51 = vpop.permute.xlu1 %5863 }
 0x40e   : > { %6888 = vmatprep.mubr.msk.bf16.mxu0 %vm752_vm5, %v6869_v58  ;;  %v5914_v42 = vsel %vm752_vm5, %v10412_v53, %v5864_v51  ;;  %6101 = vmatpush1.bf16.msra.mxu0 %v7322_v18  ;;  %v5917_v46 = vsel %vm752_vm5, %v10418_v20, %v5866_v29  ;;  %v10432_v29 = vld [vmem:[#allocation21_spill] sm:$0xff]  ;;  %v10433_v53 = vld [vmem:[#allocation19_spill] sm:$0xff] }
 0x40f   : > { %v6868_v32 = vcombine.low %v5911_v57, %v5914_v42 }
 0x411   : > { %v5874_v4 = vpop.permute.xlu0 %5873  ;;  %v5872_v23 = vpop.permute.xlu1 %5871 }
 0x412   : > { %v5926_v33 = vsel %vm752_vm5, %v10415_v12, %v5872_v23  ;;  %v5929_v19 = vsel %vm752_vm5, %v10419_v34, %v5874_v4  ;;  %v10434_v23 = vld [vmem:[#allocation24_spill] sm:$0xff] }
 0x413   : > { %v6872_v49 = vcombine.low %v5923_v6, %v5926_v33 }
 0x415   : > { %v705_v0 = vpop.permute.xlu0 %704  ;;  %6111 = vmatmul.mubr.bf16.vlgmr.msra.gmra.mrb[128].mxu0 %v6868_v32  ;;  %6127 = vmatmul.mubr.bf16.vlgmr.msra.gmra.mrb[128].mxu1 %v6872_v49  ;;  %v5868_v58 = vpop.permute.xlu1 %5867 }
 0x416   : > { %v753_v54 = vsel %vm752_vm5, %v10416_v5, %v705_v0  ;;  %6889 = vmatprep.mubr.msk.bf16.mxu0 %vm752_vm5, %v6871_v62  ;;  %6891 = vmatprep.mubr.msk.bf16.mxu1 %vm752_vm5, %v6875_v30  ;;  %v5920_v1 = vsel %vm752_vm5, %v10417_v48, %v5868_v58 }
 0x417   : > { %769 = vst [vmem:[%s10094_s12] sm:$0xff] %v753_v54  ;;  %v6870_v30 = vcombine.low %v5917_v46, %v5920_v1 }
 0x419   : > { %v709_v40 = vpop.permute.xlu0 %708  ;;  %v5876_v11 = vpop.permute.xlu1 %5875 }
 0x41a   : > { %v755_v62 = vsel %vm752_vm5, %v10420_v24, %v709_v40  ;;  %v5932_v8 = vsel %vm752_vm5, %v10421_v36, %v5876_v11 }
 0x41b   : > { %771 = vst [vmem:[%s10094_s12 + $0x10] sm:$0xff] %v755_v62  ;;  %v6874_v39 = vcombine.low %v5929_v19, %v5932_v8 }
 0x41d   : > { %v713_v21 = vpop.permute.xlu0 %712  ;;  %6119 = vmatmul.mubr.bf16.gmra.mrb[132].mxu0 %v6870_v30  ;;  %6135 = vmatmul.mubr.bf16.gmra.mrb[132].mxu1 %v6874_v39  ;;  %v707_v50 = vpop.permute.xlu1 %706 }
 0x41e   : > { %v757_v31 = vsel %vm752_vm5, %v10422_v35, %v713_v21  ;;  %v754_v44 = vsel %vm752_vm5, %v10423_v56, %v707_v50 }
 0x41f   : > { %773 = vst [vmem:[%s10094_s12 + $0x20] sm:$0xff] %v757_v31  ;;  %770 = vst [vmem:[%s10094_s12 + $0x8] sm:$0xff] %v754_v44 }
 0x421   : > { %v717_v37 = vpop.permute.xlu0 %716  ;;  %v711_v63 = vpop.permute.xlu1 %710 }
 0x422   : > { %v759_v55 = vsel %vm752_vm5, %v10424_v13, %v717_v37  ;;  %v756_v17 = vsel %vm752_vm5, %v10425_v59, %v711_v63 }
 0x423   : > { %775 = vst [vmem:[%s10094_s12 + $0x30] sm:$0xff] %v759_v55  ;;  %772 = vst [vmem:[%s10094_s12 + $0x18] sm:$0xff] %v756_v17 }
 0x425   : > { %v721_v15 = vpop.permute.xlu0 %720  ;;  %v715_v16 = vpop.permute.xlu1 %714 }
 0x426   : > { %v761_v43 = vsel %vm752_vm5, %v10426_v47, %v721_v15  ;;  %v758_v14 = vsel %vm752_vm5, %v10427_v2, %v715_v16 }
 0x427   : > { %777 = vst [vmem:[%s10094_s12 + $0x40] sm:$0xff] %v761_v43  ;;  %774 = vst [vmem:[%s10094_s12 + $0x28] sm:$0xff] %v758_v14 }
 0x429   : > { %v725_v9 = vpop.permute.xlu0 %724  ;;  %v719_v61 = vpop.permute.xlu1 %718 }
 0x42a   : > { %v763_v18 = vsel %vm752_vm5, %v10428_v38, %v725_v9  ;;  %v760_v60 = vsel %vm752_vm5, %v10429_v27, %v719_v61  ;;  %v6892_v61 = vld [vmem:[%s10234_s6] ss:$0 sm:$0xff] }
 0x42b   : > { %779 = vst [vmem:[%s10094_s12 + $0x50] sm:$0xff] %v763_v18  ;;  %776 = vst [vmem:[%s10094_s12 + $0x38] sm:$0xff] %v760_v60 }
 0x42d   : > { %v729_v41 = vpop.permute.xlu0 %728  ;;  %v723_v52 = vpop.permute.xlu1 %722 }
 0x42e   : > { %v765_v3 = vsel %vm752_vm5, %v10430_v26, %v729_v41  ;;  %v762_v25 = vsel %vm752_vm5, %v10431_v28, %v723_v52 }
 0x42f   : > { %781 = vst [vmem:[%s10094_s12 + $0x60] sm:$0xff] %v765_v3  ;;  %778 = vst [vmem:[%s10094_s12 + $0x48] sm:$0xff] %v762_v25 }
 0x431   : > { %v733_v7 = vpop.permute.xlu0 %732  ;;  %v727_v45 = vpop.permute.xlu1 %726 }
 0x432   : > { %v767_v51 = vsel %vm752_vm5, %v10432_v29, %v733_v7  ;;  %v764_v42 = vsel %vm752_vm5, %v10433_v53, %v727_v45 }
 0x433   : > { %783 = vst [vmem:[%s10094_s12 + $0x70] sm:$0xff] %v767_v51  ;;  %780 = vst [vmem:[%s10094_s12 + $0x58] sm:$0xff] %v764_v42 }
 0x435   : > { %v731_v4 = vpop.permute.xlu1 %730 }
 0x436   : > { %v766_v10 = vsel %vm752_vm5, %v10434_v23, %v731_v4 }
 0x437   : > { %782 = vst [vmem:[%s10094_s12 + $0x68] sm:$0xff] %v766_v10 }
 0x439   : > { %v735_v57 = vpop.permute.xlu1 %734 }
 0x43a   : > { %v768_v6 = vsel %vm752_vm5, %v10435_v22, %v735_v57 }
 0x43b   : > { %784 = vst [vmem:[%s10094_s12 + $0x78] sm:$0xff] %v768_v6  ;;  %s7416_s12 = sshll.u32 %s7479_s10, 4  ;;  %s7417_s12 = int_to_ptr.vmem [resolvable:$false] %s7416_s12 }
 0x43c   : > { %s7418_s13 = scalar_lea.vmem %s7417_s12, 2048  ;;  %p7419_p0 = scmp.lt.s32.totalorder %s10179_s22, %s7417_s12 }
 0x43d   : > { %p7420_p1 = scmp.lt.s32.totalorder %s7418_s13, %s7412_s26 }
 0x43f   : > { %p7421_p2 = por %p7420_p1, %p7419_p0 }
 0x441   : > { %p7422_p3 = pnand %p7421_p2, %p7415_p13 }
 0x4aa   : > { %v5709_v12 = vpop.f32.mrb[112].mxu1 }
 0x4ab   : > { %v5711_v33 = vpop.f32.mrb[113].mxu1 }
 0x4ac   : > { %v5712_v32 = vpop.f32.mrb[114].mxu1 }
 0x4ad   : > { %v5714_v49 = vpop.f32.mrb[115].mxu1 }
 0x4b3   : > { %v5548_v0 = vpop.f32.mrb[112].mxu0 }
 0x4b4   : > { %v5710_v58 = vadd.f32 %v5709_v12, %v5548_v0  ;;  %v5550_v5 = vpop.f32.mrb[113].mxu0 }
 0x4b5   : > { %v5551_v54 = vpop.f32.mrb[114].mxu0 }
 0x4b6   : > { %v5713_v48 = vadd.f32 %v5712_v32, %v5551_v54  ;;  %v5553_v1 = vpop.f32.mrb[115].mxu0 }
 0x4bc   : > { %v5717_v40 = vpop.f32.mrb[116].mxu1 }
 0x4bd   : > { %v5719_v11 = vpop.f32.mrb[117].mxu1 }
 0x4be   : > { %v5720_v20 = vpop.f32.mrb[118].mxu1 }
 0x4bf   : > { %v5722_v46 = vpop.f32.mrb[119].mxu1 }
 0x4c4   : > { %v5556_v34 = vpop.f32.mrb[116].mxu0 }
 0x4c5   : > { %v5718_v19 = vadd.f32 %v5717_v40, %v5556_v34  ;;  %v5558_v24 = vpop.f32.mrb[117].mxu0 }
 0x4c6   : > { %v5559_v62 = vpop.f32.mrb[118].mxu0 }
 0x4c7   : > { %v5721_v36 = vadd.f32 %v5720_v20, %v5559_v62  ;;  %v5561_v8 = vpop.f32.mrb[119].mxu0 }
 0x4c8   : > { %v5725_v30 = vpop.f32.mrb[120].mxu1 }
 0x4c9   : > { %v5727_v39 = vpop.f32.mrb[121].mxu1 }
 0x4ca   : > { %v5728_v21 = vpop.f32.mrb[122].mxu1 }
 0x4cb   : > { %v5730_v50 = vpop.f32.mrb[123].mxu1 }
 0x4cc   : > { %v5564_v35 = vpop.f32.mrb[120].mxu0 }
 0x4cd   : > { %v5726_v31 = vadd.f32 %v5725_v30, %v5564_v35  ;;  %v5566_v56 = vpop.f32.mrb[121].mxu0 }
 0x4ce   : > { %v5567_v44 = vpop.f32.mrb[122].mxu0 }
 0x4cf   : > { %v5729_v37 = vadd.f32 %v5728_v21, %v5567_v44  ;;  %v5569_v63 = vpop.f32.mrb[123].mxu0 }
 0x4d9   : > { %v5733_v13 = vpop.f32.mrb[124].mxu1 }
 0x4da   : > { %v5735_v55 = vpop.f32.mrb[125].mxu1 }
 0x4db   : > { %v5736_v59 = vpop.f32.mrb[126].mxu1 }
 0x4dc   : > { %v5738_v17 = vpop.f32.mrb[127].mxu1 }
 0x4e0   : > { %v5572_v15 = vpop.f32.mrb[124].mxu0 }
 0x4e1   : > { %v5734_v16 = vadd.f32 %v5733_v13, %v5572_v15  ;;  %v5574_v47 = vpop.f32.mrb[125].mxu0 }
 0x4e2   : > { %v5575_v43 = vpop.f32.mrb[126].mxu0 }
 0x4e3   : > { %v5737_v2 = vadd.f32 %v5736_v59, %v5575_v43  ;;  %v5577_v14 = vpop.f32.mrb[127].mxu0 }
 0x4e8   : > { %v6112_v9 = vpop.f32.mrb[128].mxu0  ;;  %v6128_v38 = vpop.f32.mrb[128].mxu1 }
 0x4e9   : > { %v6143_v18 = vadd.f32 %v6112_v9, %v5710_v58  ;;  %v6147_v27 = vadd.f32 %v6128_v38, %v5726_v31  ;;  %v6114_v60 = vpop.f32.mrb[129].mxu0  ;;  %v6130_v41 = vpop.f32.mrb[129].mxu1 }
 0x4ea   : > { %v6115_v52 = vpop.f32.mrb[130].mxu0  ;;  %v6131_v26 = vpop.f32.mrb[130].mxu1 }
 0x4eb   : > { %v6158_v3 = vadd.f32 %v6892_v61, %v6143_v18  ;;  %v6162_v28 = vadd.f32 %v6892_v61, %v6147_v27  ;;  %v6144_v25 = vadd.f32 %v6115_v52, %v5713_v48  ;;  %v6148_v7 = vadd.f32 %v6131_v26, %v5729_v37  ;;  %v6117_v45 = vpop.f32.mrb[131].mxu0  ;;  %v6133_v29 = vpop.f32.mrb[131].mxu1 }
 0x4ed   : > { %v6166_v51 = vmax.f32 %v6158_v3, 0.0  ;;  %v6170_v53 = vmax.f32 %v6162_v28, 0.0  ;;  %v6159_v42 = vadd.f32 %v6892_v61, %v6144_v25  ;;  %v6163_v4 = vadd.f32 %v6892_v61, %v6148_v7 }
 0x4ef   : > { %6174 = vst [vmem:[%s10166_s19] sm:$0xff] %v6166_v51  ;;  %6178 = vst [vmem:[%s10166_s19 + $0x20] sm:$0xff] %v6170_v53  ;;  %v6167_v23 = vmax.f32 %v6159_v42, 0.0  ;;  %v6171_v10 = vmax.f32 %v6163_v4, 0.0 }
 0x4f0   : > { %v6120_v57 = vpop.f32.mrb[132].mxu0  ;;  %v6136_v22 = vpop.f32.mrb[132].mxu1 }
 0x4f1   : > { %6175 = vst [vmem:[%s10166_s19 + $0x8] sm:$0xff] %v6167_v23  ;;  %6179 = vst [vmem:[%s10166_s19 + $0x28] sm:$0xff] %v6171_v10  ;;  %v6145_v6 = vadd.f32 %v6120_v57, %v5718_v19  ;;  %v6149_v12 = vadd.f32 %v6136_v22, %v5734_v16  ;;  %v6122_v33 = vpop.f32.mrb[133].mxu0  ;;  %v6138_v32 = vpop.f32.mrb[133].mxu1 }
 0x4f2   : > { %v6123_v49 = vpop.f32.mrb[134].mxu0  ;;  %v6139_v0 = vpop.f32.mrb[134].mxu1 }
 0x4f3   : > { %v6160_v58 = vadd.f32 %v6892_v61, %v6145_v6  ;;  %v6164_v5 = vadd.f32 %v6892_v61, %v6149_v12  ;;  %v6146_v54 = vadd.f32 %v6123_v49, %v5721_v36  ;;  %v6150_v48 = vadd.f32 %v6139_v0, %v5737_v2  ;;  %v6125_v1 = vpop.f32.mrb[135].mxu0  ;;  %v6141_v40 = vpop.f32.mrb[135].mxu1 }
 0x4f5   : > { %v6168_v11 = vmax.f32 %v6160_v58, 0.0  ;;  %v6172_v20 = vmax.f32 %v6164_v5, 0.0  ;;  %v6161_v46 = vadd.f32 %v6892_v61, %v6146_v54  ;;  %v6165_v34 = vadd.f32 %v6892_v61, %v6150_v48 }
 0x4f7   : > { %6176 = vst [vmem:[%s10166_s19 + $0x10] sm:$0xff] %v6168_v11  ;;  %6180 = vst [vmem:[%s10166_s19 + $0x30] sm:$0xff] %v6172_v20  ;;  %v6169_v19 = vmax.f32 %v6161_v46, 0.0  ;;  %v6173_v24 = vmax.f32 %v6165_v34, 0.0 }
 0x4f9   : > { %6177 = vst [vmem:[%s10166_s19 + $0x18] sm:$0xff] %v6169_v19  ;;  %6181 = vst [vmem:[%s10166_s19 + $0x38] sm:$0xff] %v6173_v24 }
 0x4fa   : > { %7425 = shalt.err (!%p7422_p3)
}
 0x4fb   : > { %s7426_s21 = scalar_lea.hbm %s10177_s25, 1024  ;;  %s7430_s19 = scalar_lea.hbm %s10236_s8, 2048 }
 0x4fc   : > { %p7427_p4 = scmp.ne.s32.totalorder %s10177_s25, %s7426_s21  ;;  %p7431_p9 = scmp.lt.u32.totalorder %s10177_s25, %s10236_s8 }
 0x4fd   : > { %p7432_p10 = scmp.lt.u32.totalorder %s7430_s19, %s7426_s21  ;;  %p7434_p12 = scmp.lt.u32.totalorder %s7426_s21, %s10177_s25 }
 0x4fe   : > { %p7428_p7 = pnand %p7427_p4, %p7565_p5 }
 0x4ff   : > { %p7433_p11 = por %p7432_p10, %p7431_p9 }
 0x500   : > { %p7429_p8 = pneg %p7428_p7 }
 0x501   : > { %p7435_p13 = por %p7434_p12, %p7433_p11 }
 0x503   : > { %p7436_p0 = pnand %p7435_p13, %p7429_p8 }
 0x505   : > { %7439 = shalt.err (!%p7436_p0)
}
 0x506   : > { %s7480_s24 = smov 128   ;;  %s7481_s26 = smov 8  }
 0x507   : > { %7009 = dma.vmem_to_hbm [thread:$0]  (%p7565_p5), %s10179_s22, 1024, %s10177_s25, %s10187_s9, %s7480_s24, %s7480_s24, %s7481_s26  }
 0x508 PF: > { %p7015_p1 = scmp.ge.s32.totalorder %s7474_s30, 2  ;;  %s6227_s10 = sand.u32 1, %s7462_s27  }
 0x509   : > { %s6228_s12 = scalar_lea.sflag [#allocation6], %s6227_s10 }
 0x50a   : > { %p7012_p2 = pnand %p7015_p1, %p7569_p6 }
 0x50c   : > { %7457 = dma.done.wait (!%p7012_p2), %s6228_s12, 1024  }
 0x50d   : > { %7459 = vsyncadd (!%p7012_p2), %s6228_s12, 4294966272  ;;  %p19_p3 = scmp.ge.s32.totalorder %s7552_s11, 4   ;;  %s10436_s27 = smov %s7466_s28 }
 0x50e   : > { %s10437_s28 = smov %s7470_s29  ;;  %s10438_s29 = smov %s7563_s14 }
 0x50f   : > { %s10439_s30 = smov %s7552_s11  ;;  %21 = sbr.rel (!%p19_p3) target bundleno = 3 (0x3), region = 105 }
 0x516   :  { %6233 = vsyncpa [#allocation6], 1 }
 0x517   :  { %6235 = vsyncpa [#allocation6 + $0x1], 1 }

</bundles_post_ra>
